<compile_context>
chip_gen: v7x
topology: tpu7x:2x2x1
jax: 0.10.0
libtpu: 0.0.40
codegen_flags: <defaults>
</compile_context>

<pallas_src>
import functools

import jax
import jax.numpy as jnp
import numpy as np
from jax.experimental import pallas as pl
from jax.experimental.pallas import tpu as pltpu


# MXU operand dtype for the convolution matmuls (accumulation is always f32).
# Set to jnp.float32 for bit-exact f32 forward semantics.
COMPUTE_DTYPE = jnp.bfloat16
_TM_CAP = 512            # max rows per grid step (blocks stay << VMEM on v5e/v6e/v7x)


# ----------------------------------------------------------------------------
# small helpers (pure layout glue, outside the kernels)
# ----------------------------------------------------------------------------
def _round_up(x, m):
    return ((x + m - 1) // m) * m


def _tile_rows(M, cap=_TM_CAP):
    """Pick a row tile TM.  Prefer TM that divides M exactly (no pad/slice glue)."""
    if M <= cap:
        return M, M, False                       # one block covering all rows
    t = cap - (cap % 8)
    while t >= 8:
        if M % t == 0:
            return t, M, False
        t -= 8
    Mp = _round_up(M, cap)                       # rare ragged fallback
    return cap, Mp, True


def _im2col_nhwc(x, kh, kw, stride, pad):
    """x: (N,H,W,C) -> (N*OH*OW, kh*kw*C); column order (kh, kw, C)."""
    if pad:
        x = jnp.pad(x, ((0, 0), (pad, pad), (pad, pad), (0, 0)))
    N, H, W, C = x.shape
    OH = (H - kh) // stride + 1
    OW = (W - kw) // stride + 1
    slabs = [x[:, i:i + stride * OH:stride, j:j + stride * OW:stride, :]
             for i in range(kh) for j in range(kw)]
    cols = jnp.concatenate(slabs, axis=-1)       # (N, OH, OW, kh*kw*C)
    # TODO(synk): for large H/W gather the patches inside the kernel
    # (memory_space=pl.ANY + shifted pl.ds loads) to avoid this kh*kw x
    # HBM duplication of the input stream.
    return cols.reshape(N * OH * OW, kh * kw * C), OH, OW


def _prep_conv_w(w, dtype):
    """PyTorch Conv2d weight (OC, IC, kh, kw) -> matmul weight (kh*kw*IC, OC)."""
    OC, IC, kh, kw = w.shape
    return w.transpose(2, 3, 1, 0).reshape(kh * kw * IC, OC).astype(dtype)


def _prep_convT_w(w, dtype):
    """PyTorch ConvTranspose2d weight (IC, OC, kh, kw) -> (kh*kw*IC, OC)."""
    IC, OC, kh, kw = w.shape
    return jnp.flip(w, (2, 3)).transpose(2, 3, 0, 1).reshape(kh * kw * IC, OC).astype(dtype)


# ----------------------------------------------------------------------------
# Pallas kernel 1: conv as matmul   out = cols @ W + b  (optional output ReLU)
# cols/W are COMPUTE_DTYPE (bf16), accumulation + epilogue are f32.
# ----------------------------------------------------------------------------
def _conv_kernel(cols_ref, w_ref, b_ref, o_ref, *, act_out):
    acc = jnp.dot(cols_ref[...], w_ref[...], preferred_element_type=jnp.float32)
    acc = acc + b_ref[...]                       # (1, OC) broadcast, f32
    if act_out:
        acc = jnp.maximum(acc, 0.0)
    o_ref[...] = acc.astype(o_ref.dtype)


def _matmul_bias(cols, w, b, *, act_out):
    M, K = cols.shape
    OC = w.shape[1]
    TM, Mp, padded = _tile_rows(M)
    if padded:
        cols = jnp.pad(cols, ((0, Mp - M), (0, 0)))
    out = pl.pallas_call(
        functools.partial(_conv_kernel, act_out=act_out),
        out_shape=jax.ShapeDtypeStruct((Mp, OC), jnp.float32),
        grid_spec=pltpu.PrefetchScalarGridSpec(
            num_scalar_prefetch=0,
            grid=(Mp // TM,),
            in_specs=[pl.BlockSpec((TM, K), lambda i: (i, 0)),
                      pl.BlockSpec((K, OC), lambda i: (0, 0)),
                      pl.BlockSpec((1, OC), lambda i: (0, 0))],
            out_specs=pl.BlockSpec((TM, OC), lambda i: (i, 0)),
        ),
        compiler_params=pltpu.CompilerParams(dimension_semantics=("parallel",)),
    )(cols, w, b.reshape(1, OC))
    return out[:M] if padded else out


def conv2d_nhwc(x, w_mat, b, kh, kw, stride, pad, *, act_out=False):
    """PyTorch-style Conv2d on NHWC input.  w_mat: (kh*kw*IC, OC)."""
    N = x.shape[0]
    if kh == 1 and kw == 1 and stride == 1 and pad == 0:
        cols, OH, OW = x.reshape(-1, x.shape[-1]), x.shape[1], x.shape[2]
    else:
        cols, OH, OW = _im2col_nhwc(x, kh, kw, stride, pad)
    out = _matmul_bias(cols.astype(w_mat.dtype), w_mat, b, act_out=act_out)
    return out.reshape(N, OH, OW, -1)


def conv_transpose2d_nhwc(x, w_mat, b, kh, kw, stride, pad, *, act_in=False, act_out=False):
    """PyTorch-style ConvTranspose2d on NHWC input (outer + interior lax.pad)."""
    if act_in:
        x = jnp.maximum(x, 0.0)                  # relu commutes with zero dilation
    outer = kh - 1 - pad
    # TODO(synk): sub-pixel (s^2 weight-split) decomposition would avoid the
    # ~s^2 x MXU-FLOP / column-byte waste of convolving the zero-dilated input.
    xp = jax.lax.pad(x, jnp.array(0.0, x.dtype),
                     ((0, 0, 0),
                      (outer, outer, stride - 1),
                      (outer, outer, stride - 1),
                      (0, 0, 0)))
    return conv2d_nhwc(xp, w_mat, b, kh, kw, 1, 0, act_out=act_out)


# ----------------------------------------------------------------------------
# Pallas kernel 2: fused residual layer
#   out = x + relu( relu(x) conv3x3 W1 ) conv1x1 W2
# (the input ReLU is folded into the im2col columns by the caller; the
#  intermediate never leaves VMEM/vregs)
# ----------------------------------------------------------------------------
def _res_layer_kernel(cols_ref, x_ref, w1_ref, w2_ref, o_ref):
    w2 = w2_ref[...]
    t = jnp.dot(cols_ref[...], w1_ref[...], preferred_element_type=jnp.float32)
    t = jnp.maximum(t, 0.0).astype(w2.dtype)     # narrow only at the dot operand
    acc = x_ref[...] + jnp.dot(t, w2, preferred_element_type=jnp.float32)
    o_ref[...] = acc.astype(o_ref.dtype)


def residual_stack_nhwc(x, res_w):
    """n fused residual layers (the stack's final ReLU is fused downstream)."""
    N, H, W, C = x.shape
    M = N * H * W
    for (w1_mat, w2_mat) in res_w:
        cols, _, _ = _im2col_nhwc(jnp.maximum(x, 0.0), 3, 3, 1, 1)
        cols = cols.astype(w1_mat.dtype)
        x_flat = x.reshape(M, C)
        TM, Mp, padded = _tile_rows(M)
        if padded:
            cols = jnp.pad(cols, ((0, Mp - M), (0, 0)))
            x_flat = jnp.pad(x_flat, ((0, Mp - M), (0, 0)))
        K1, RH = w1_mat.shape
        out = pl.pallas_call(
            _res_layer_kernel,
            out_shape=jax.ShapeDtypeStruct((Mp, C), jnp.float32),
            grid_spec=pltpu.PrefetchScalarGridSpec(
                num_scalar_prefetch=0,
                grid=(Mp // TM,),
                in_specs=[pl.BlockSpec((TM, K1), lambda i: (i, 0)),
                          pl.BlockSpec((TM, C), lambda i: (i, 0)),
                          pl.BlockSpec((K1, RH), lambda i: (0, 0)),
                          pl.BlockSpec((RH, C), lambda i: (0, 0))],
                out_specs=pl.BlockSpec((TM, C), lambda i: (i, 0)),
            ),
            compiler_params=pltpu.CompilerParams(dimension_semantics=("parallel",)),
        )(cols, x_flat, w1_mat, w2_mat)
        x = (out[:M] if padded else out).reshape(N, H, W, C)
    return x


# ----------------------------------------------------------------------------
# Pallas kernel 3: fused  ReLU -> pre-quant 1x1 conv -> vector quantization.
# Per-tile SSE / code-count partials are emitted (parallel grid, megacore
# friendly on v7x) and reduced in XLA.  Entire body stays f32.
# ----------------------------------------------------------------------------
def _vq_kernel(h_ref, wq_ref, bq_ref, e_ref, esq_ref,
               zq_ref, cnt_ref, sse_ref, *, masked, m_total, tm):
    # pre-quantization: z_e = relu(h) @ Wq + bq
    h = jnp.maximum(h_ref[...], 0.0)
    z = jnp.dot(h, wq_ref[...], preferred_element_type=jnp.float32) + bq_ref[...]

    e = e_ref[...]                                          # (K_pad, D), padded rows = 0
    K_pad = e.shape[0]
    z_sq = jnp.sum(z * z, axis=1, keepdims=True)            # (TM, 1)
    cross = jax.lax.dot_general(z, e, (((1,), (1,)), ((), ())),
                                preferred_element_type=jnp.float32)   # (TM, K_pad)
    d = z_sq + esq_ref[...] - 2.0 * cross                   # padded cols get +1e30

    kk = jax.lax.broadcasted_iota(jnp.int32, d.shape, 1)
    dmin = jnp.min(d, axis=1, keepdims=True)
    idx = jnp.min(jnp.where(d == dmin, kk, K_pad), axis=1, keepdims=True)  # first argmin
    onehot = (kk == idx).astype(jnp.float32)                # (TM, K_pad)
    zq = jnp.dot(onehot, e, preferred_element_type=jnp.float32)            # (TM, D)

    if masked:                                              # ragged-tail fallback only
        rows = jax.lax.broadcasted_iota(jnp.int32, (tm, 1), 0) + pl.program_id(0) * tm
        valid = (rows < m_total).astype(jnp.float32)
        diff = (zq - z) * valid
        cnt = jnp.sum(onehot * valid, axis=0, keepdims=True)
    else:
        diff = zq - z
        cnt = jnp.sum(onehot, axis=0, keepdims=True)

    zq_ref[...] = zq
    cnt_ref[...] = cnt.reshape(cnt_ref.shape)               # (1, 1, K_pad), lane dense
    sse_ref[...] = jnp.zeros_like(sse_ref) + jnp.sum(diff * diff)


def prequant_and_vq(h, wq_mat, bq, codebook, beta):
    """h: (N,H,W,h_dim) f32 (before the stack-final ReLU) -> loss, z_q NHWC, perplexity."""
    N, H, W, C = h.shape
    D = wq_mat.shape[1]
    K = codebook.shape[0]
    K_pad = _round_up(K, 128)
    M = N * H * W
    h_flat = h.reshape(M, C)

    e_pad = jnp.pad(codebook, ((0, K_pad - K), (0, 0)))
    e_sq = jnp.pad(jnp.sum(codebook * codebook, axis=1),
                   (0, K_pad - K), constant_values=1e30).reshape(1, K_pad)

    TM, Mp, padded = _tile_rows(M)
    if padded:
        h_flat = jnp.pad(h_flat, ((0, Mp - M), (0, 0)))
    G = Mp // TM

    zq, cnt_p, sse_p = pl.pallas_call(
        functools.partial(_vq_kernel, masked=padded, m_total=M, tm=TM),
        out_shape=(jax.ShapeDtypeStruct((Mp, D), jnp.float32),
                   jax.ShapeDtypeStruct((G, 1, K_pad), jnp.float32),
                   jax.ShapeDtypeStruct((G, 1, 128), jnp.float32)),
        grid_spec=pltpu.PrefetchScalarGridSpec(
            num_scalar_prefetch=0,
            grid=(G,),
            in_specs=[pl.BlockSpec((TM, C), lambda i: (i, 0)),
                      pl.BlockSpec((C, D), lambda i: (0, 0)),
                      pl.BlockSpec((1, D), lambda i: (0, 0)),
                      pl.BlockSpec((K_pad, D), lambda i: (0, 0)),
                      pl.BlockSpec((1, K_pad), lambda i: (0, 0))],
            out_specs=(pl.BlockSpec((TM, D), lambda i: (i, 0)),
                       pl.BlockSpec((1, 1, K_pad), lambda i: (i, 0, 0)),
                       pl.BlockSpec((1, 1, 128), lambda i: (i, 0, 0))),
        ),
        compiler_params=pltpu.CompilerParams(dimension_semantics=("parallel",)),
    )(h_flat, wq_mat, bq.reshape(1, D), e_pad, e_sq)

    z_q = (zq[:M] if padded else zq).reshape(N, H, W, D)
    sse = jnp.sum(sse_p[:, 0, 0])
    cnt = jnp.sum(cnt_p[:, 0, :], axis=0)[:K]
    mse = sse / (M * D)
    # forward value of mean((zq.detach()-z)^2) + beta*mean((zq-z.detach())^2).
    # TODO(synk): straight-through / detach semantics only matter for autodiff.
    loss = (1.0 + beta) * mse
    e_mean = cnt / M
    perplexity = jnp.exp(-jnp.sum(e_mean * jnp.log(e_mean + 1e-10)))
    return loss, z_q, perplexity


# ----------------------------------------------------------------------------
# parameters (PyTorch-compatible layout / init)
# ----------------------------------------------------------------------------
def _init_conv(key, oc, ic, kh, kw, bias=True):
    k1, k2 = jax.random.split(key)
    bound = 1.0 / np.sqrt(ic * kh * kw)
    w = jax.random.uniform(k1, (oc, ic, kh, kw), jnp.float32, -bound, bound)
    b = (jax.random.uniform(k2, (oc,), jnp.float32, -bound, bound)
         if bias else jnp.zeros((oc,), jnp.float32))
    return w, b


def _init_convT(key, ic, oc, kh, kw):
    k1, k2 = jax.random.split(key)
    bound = 1.0 / np.sqrt(ic * kh * kw)
    w = jax.random.uniform(k1, (ic, oc, kh, kw), jnp.float32, -bound, bound)
    b = jax.random.uniform(k2, (oc,), jnp.float32, -bound, bound)
    return w, b


def init_vqvae_params(key, h_dim, res_h_dim, n_res_layers,
                      n_embeddings, embedding_dim, n_dim_changes):
    keys = iter(jax.random.split(key, 128))
    p = {}
    enc_down, in_c = [], 3
    for i in range(n_dim_changes):
        out_c = h_dim // 2 if i < n_dim_changes - 1 else h_dim
        enc_down.append(_init_conv(next(keys), out_c, in_c, 4, 4))
        in_c = out_c
    p["enc_down"] = enc_down
    p["enc_conv3"] = _init_conv(next(keys), h_dim, h_dim, 3, 3)
    p["enc_res"] = [(_init_conv(next(keys), res_h_dim, h_dim, 3, 3, bias=False)[0],
                     _init_conv(next(keys), h_dim, res_h_dim, 1, 1, bias=False)[0])
                    for _ in range(n_res_layers)]
    p["pre_quant"] = _init_conv(next(keys), embedding_dim, h_dim, 1, 1)
    p["codebook"] = jax.random.uniform(
        next(keys), (n_embeddings, embedding_dim), jnp.float32,
        -1.0 / n_embeddings, 1.0 / n_embeddings)
    p["dec_conv3"] = _init_convT(next(keys), embedding_dim, h_dim, 3, 3)
    p["dec_res"] = [(_init_conv(next(keys), res_h_dim, h_dim, 3, 3, bias=False)[0],
                     _init_conv(next(keys), h_dim, res_h_dim, 1, 1, bias=False)[0])
                    for _ in range(n_res_layers)]
    dec_up, in_c = [], h_dim
    for i in range(n_dim_changes):
        out_c = 3 if i == n_dim_changes - 1 else h_dim // 2
        dec_up.append(_init_convT(next(keys), in_c, out_c, 4, 4))
        in_c = out_c
    p["dec_up"] = dec_up
    return p


# ----------------------------------------------------------------------------
# forward pass
# ----------------------------------------------------------------------------
def vqvae_forward(params, x, beta):
    cd = COMPUTE_DTYPE
    h = x.transpose(0, 2, 3, 1)                            # single NCHW -> NHWC transpose

    # ---------------- encoder ----------------
    for (w, b) in params["enc_down"]:
        h = conv2d_nhwc(h, _prep_conv_w(w, cd), b, 4, 4, 2, 1, act_out=True)
    w, b = params["enc_conv3"]
    h = conv2d_nhwc(h, _prep_conv_w(w, cd), b, 3, 3, 1, 1)
    h = residual_stack_nhwc(
        h, [(_prep_conv_w(w1, cd), _prep_conv_w(w2, cd)) for (w1, w2) in params["enc_res"]])

    # --------- pre-quant 1x1 conv + vector quantization (one fused kernel) ---------
    wq, bq = params["pre_quant"]                           # (D, h_dim, 1, 1)
    wq_mat = wq.reshape(wq.shape[0], wq.shape[1]).T        # (h_dim, D), kept f32
    loss, z_q, perplexity = prequant_and_vq(h, wq_mat, bq, params["codebook"], beta)

    # ---------------- decoder ----------------
    w, b = params["dec_conv3"]
    h = conv_transpose2d_nhwc(z_q, _prep_convT_w(w, cd), b, 3, 3, 1, 1)
    h = residual_stack_nhwc(
        h, [(_prep_conv_w(w1, cd), _prep_conv_w(w2, cd)) for (w1, w2) in params["dec_res"]])
    ups = params["dec_up"]
    for i, (w, b) in enumerate(ups):
        h = conv_transpose2d_nhwc(h, _prep_convT_w(w, cd), b, 4, 4, 2, 1,
                                  act_in=(i == 0),          # stack-final ReLU
                                  act_out=(i < len(ups) - 1))  # ReLU between upsamples
    x_hat = h.transpose(0, 3, 1, 2)                        # single NHWC -> NCHW transpose
    return loss, x_hat, perplexity


# ----------------------------------------------------------------------------
if __name__ == "__main__":
    key = jax.random.PRNGKey(0)
    kp, kx = jax.random.split(key)

    h_dim, res_h_dim, n_res_layers = 32, 16, 2
    n_embeddings, embedding_dim, beta, n_dim_changes = 64, 16, 0.25, 2

    params = init_vqvae_params(kp, h_dim, res_h_dim, n_res_layers,
                               n_embeddings, embedding_dim, n_dim_changes)
    x = jax.random.normal(kx, (2, 3, 16, 16), jnp.float32)   # NCHW, like PyTorch

    fwd = jax.jit(vqvae_forward)
    loss, x_hat, perplexity = fwd(params, x, beta)
    jax.block_until_ready((loss, x_hat, perplexity))

    assert x_hat.shape == x.shape, x_hat.shape
    assert np.isfinite(float(loss)) and np.isfinite(float(perplexity))
    assert np.all(np.isfinite(np.asarray(x_hat)))
    print("KERNEL_OK")
</pallas_src>

<mosaic_0001>
module attributes {stable_mosaic.version = 11 : i64} {
  func.func @_conv_kernel(%arg0: i32, %arg1: memref<128x48xbf16, #tpu.memory_space<vmem>>, %arg2: memref<48x16xbf16, #tpu.memory_space<vmem>>, %arg3: memref<1x16xf32, #tpu.memory_space<vmem>>, %arg4: memref<128x16xf32, #tpu.memory_space<vmem>>) attributes {dimension_semantics = [#tpu.dimension_semantics<parallel>], iteration_bounds = array<i64: 1>, scalar_prefetch = 0 : i64, scratch_operands = 0 : i64, tpu.core_type = #tpu.core_type<tc>, window_params = [{transform_indices = @transform_0, window_bounds = array<i64: 128, 48>}, {pipeline_mode = #tpu.pipeline_mode<synchronous>, transform_indices = @transform_1, window_bounds = array<i64: 48, 16>}, {pipeline_mode = #tpu.pipeline_mode<synchronous>, transform_indices = @transform_2, window_bounds = array<i64: 1, 16>}, {transform_indices = @transform_3, window_bounds = array<i64: 128, 16>}]} {
    %c0 = arith.constant 0 : index
    %c0_0 = arith.constant 0 : index
    %0 = vector.load %arg1[%c0, %c0_0] : memref<128x48xbf16, #tpu.memory_space<vmem>>, vector<128x48xbf16>
    %c0_1 = arith.constant 0 : index
    %c0_2 = arith.constant 0 : index
    %1 = vector.load %arg2[%c0_1, %c0_2] : memref<48x16xbf16, #tpu.memory_space<vmem>>, vector<48x16xbf16>
    %cst = arith.constant dense<0.000000e+00> : vector<128x16xf32>
    %2 = tpu.matmul %0, %1, %cst {dimension_numbers = #tpu.dot_dimension_numbers<[1], [0], [0], [1], [0, 0, 1, 1], [], []>} : vector<128x48xbf16>, vector<48x16xbf16>, vector<128x16xf32> -> vector<128x16xf32>
    %c0_3 = arith.constant 0 : index
    %c0_4 = arith.constant 0 : index
    %3 = vector.load %arg3[%c0_3, %c0_4] : memref<1x16xf32, #tpu.memory_space<vmem>>, vector<1x16xf32>
    %4 = vector.broadcast %3 : vector<1x16xf32> to vector<128x16xf32>
    %5 = arith.addf %2, %4 : vector<128x16xf32>
    %cst_5 = arith.constant 0.000000e+00 : f32
    %6 = vector.broadcast %cst_5 : f32 to vector<128x16xf32>
    %7 = arith.maximumf %5, %6 : vector<128x16xf32>
    %c0_6 = arith.constant 0 : index
    %c0_7 = arith.constant 0 : index
    %8 = vector.load %arg4[%c0_6, %c0_7] : memref<128x16xf32, #tpu.memory_space<vmem>>, vector<128x16xf32>
    tpu.vector_store %arg4[%c0_6, %c0_7], %7 {strides = array<i32>} : memref<128x16xf32, #tpu.memory_space<vmem>>, vector<128x16xf32>,
    return
  }
  func.func @transform_0(%arg0: i32) -> (i32, i32) {
    %c0_i32 = arith.constant 0 : i32
    %c0_i32_0 = arith.constant 0 : i32
    return %arg0, %c0_i32 : i32, i32
  }
  func.func @transform_1(%arg0: i32) -> (i32, i32) {
    %c0_i32 = arith.constant 0 : i32
    %c0_i32_0 = arith.constant 0 : i32
    %c0_i32_1 = arith.constant 0 : i32
    return %c0_i32, %c0_i32_0 : i32, i32
  }
  func.func @transform_2(%arg0: i32) -> (i32, i32) {
    %c0_i32 = arith.constant 0 : i32
    %c0_i32_0 = arith.constant 0 : i32
    %c0_i32_1 = arith.constant 0 : i32
    return %c0_i32, %c0_i32_0 : i32, i32
  }
  func.func @transform_3(%arg0: i32) -> (i32, i32) {
    %c0_i32 = arith.constant 0 : i32
    %c0_i32_0 = arith.constant 0 : i32
    return %arg0, %c0_i32 : i32, i32
  }
}

module attributes {stable_mosaic.version = 11 : i64} {
  func.func @_conv_kernel(%arg0: i32, %arg1: memref<32x288xbf16, #tpu.memory_space<vmem>>, %arg2: memref<288x32xbf16, #tpu.memory_space<vmem>>, %arg3: memref<1x32xf32, #tpu.memory_space<vmem>>, %arg4: memref<32x32xf32, #tpu.memory_space<vmem>>) attributes {dimension_semantics = [#tpu.dimension_semantics<parallel>], iteration_bounds = array<i64: 1>, scalar_prefetch = 0 : i64, scratch_operands = 0 : i64, tpu.core_type = #tpu.core_type<tc>, window_params = [{transform_indices = @transform_0, window_bounds = array<i64: 32, 288>}, {pipeline_mode = #tpu.pipeline_mode<synchronous>, transform_indices = @transform_1, window_bounds = array<i64: 288, 32>}, {pipeline_mode = #tpu.pipeline_mode<synchronous>, transform_indices = @transform_2, window_bounds = array<i64: 1, 32>}, {transform_indices = @transform_3, window_bounds = array<i64: 32, 32>}]} {
    %c0 = arith.constant 0 : index
    %c0_0 = arith.constant 0 : index
    %0 = vector.load %arg1[%c0, %c0_0] : memref<32x288xbf16, #tpu.memory_space<vmem>>, vector<32x288xbf16>
    %c0_1 = arith.constant 0 : index
    %c0_2 = arith.constant 0 : index
    %1 = vector.load %arg2[%c0_1, %c0_2] : memref<288x32xbf16, #tpu.memory_space<vmem>>, vector<288x32xbf16>
    %cst = arith.constant dense<0.000000e+00> : vector<32x32xf32>
    %2 = tpu.matmul %0, %1, %cst {dimension_numbers = #tpu.dot_dimension_numbers<[1], [0], [0], [1], [0, 0, 1, 1], [], []>} : vector<32x288xbf16>, vector<288x32xbf16>, vector<32x32xf32> -> vector<32x32xf32>
    %c0_3 = arith.constant 0 : index
    %c0_4 = arith.constant 0 : index
    %3 = vector.load %arg3[%c0_3, %c0_4] : memref<1x32xf32, #tpu.memory_space<vmem>>, vector<1x32xf32>
    %4 = vector.broadcast %3 : vector<1x32xf32> to vector<32x32xf32>
    %5 = arith.addf %2, %4 : vector<32x32xf32>
    %c0_5 = arith.constant 0 : index
    %c0_6 = arith.constant 0 : index
    %6 = vector.load %arg4[%c0_5, %c0_6] : memref<32x32xf32, #tpu.memory_space<vmem>>, vector<32x32xf32>
    tpu.vector_store %arg4[%c0_5, %c0_6], %5 {strides = array<i32>} : memref<32x32xf32, #tpu.memory_space<vmem>>, vector<32x32xf32>,
    return
  }
  func.func @transform_0(%arg0: i32) -> (i32, i32) {
    %c0_i32 = arith.constant 0 : i32
    %c0_i32_0 = arith.constant 0 : i32
    return %arg0, %c0_i32 : i32, i32
  }
  func.func @transform_1(%arg0: i32) -> (i32, i32) {
    %c0_i32 = arith.constant 0 : i32
    %c0_i32_0 = arith.constant 0 : i32
    %c0_i32_1 = arith.constant 0 : i32
    return %c0_i32, %c0_i32_0 : i32, i32
  }
  func.func @transform_2(%arg0: i32) -> (i32, i32) {
    %c0_i32 = arith.constant 0 : i32
    %c0_i32_0 = arith.constant 0 : i32
    %c0_i32_1 = arith.constant 0 : i32
    return %c0_i32, %c0_i32_0 : i32, i32
  }
  func.func @transform_3(%arg0: i32) -> (i32, i32) {
    %c0_i32 = arith.constant 0 : i32
    %c0_i32_0 = arith.constant 0 : i32
    return %arg0, %c0_i32 : i32, i32
  }
}

module attributes {stable_mosaic.version = 11 : i64} {
  func.func @_conv_kernel(%arg0: i32, %arg1: memref<32x256xbf16, #tpu.memory_space<vmem>>, %arg2: memref<256x32xbf16, #tpu.memory_space<vmem>>, %arg3: memref<1x32xf32, #tpu.memory_space<vmem>>, %arg4: memref<32x32xf32, #tpu.memory_space<vmem>>) attributes {dimension_semantics = [#tpu.dimension_semantics<parallel>], iteration_bounds = array<i64: 1>, scalar_prefetch = 0 : i64, scratch_operands = 0 : i64, tpu.core_type = #tpu.core_type<tc>, window_params = [{transform_indices = @transform_0, window_bounds = array<i64: 32, 256>}, {pipeline_mode = #tpu.pipeline_mode<synchronous>, transform_indices = @transform_1, window_bounds = array<i64: 256, 32>}, {pipeline_mode = #tpu.pipeline_mode<synchronous>, transform_indices = @transform_2, window_bounds = array<i64: 1, 32>}, {transform_indices = @transform_3, window_bounds = array<i64: 32, 32>}]} {
    %c0 = arith.constant 0 : index
    %c0_0 = arith.constant 0 : index
    %0 = vector.load %arg1[%c0, %c0_0] : memref<32x256xbf16, #tpu.memory_space<vmem>>, vector<32x256xbf16>
    %c0_1 = arith.constant 0 : index
    %c0_2 = arith.constant 0 : index
    %1 = vector.load %arg2[%c0_1, %c0_2] : memref<256x32xbf16, #tpu.memory_space<vmem>>, vector<256x32xbf16>
    %cst = arith.constant dense<0.000000e+00> : vector<32x32xf32>
    %2 = tpu.matmul %0, %1, %cst {dimension_numbers = #tpu.dot_dimension_numbers<[1], [0], [0], [1], [0, 0, 1, 1], [], []>} : vector<32x256xbf16>, vector<256x32xbf16>, vector<32x32xf32> -> vector<32x32xf32>
    %c0_3 = arith.constant 0 : index
    %c0_4 = arith.constant 0 : index
    %3 = vector.load %arg3[%c0_3, %c0_4] : memref<1x32xf32, #tpu.memory_space<vmem>>, vector<1x32xf32>
    %4 = vector.broadcast %3 : vector<1x32xf32> to vector<32x32xf32>
    %5 = arith.addf %2, %4 : vector<32x32xf32>
    %cst_5 = arith.constant 0.000000e+00 : f32
    %6 = vector.broadcast %cst_5 : f32 to vector<32x32xf32>
    %7 = arith.maximumf %5, %6 : vector<32x32xf32>
    %c0_6 = arith.constant 0 : index
    %c0_7 = arith.constant 0 : index
    %8 = vector.load %arg4[%c0_6, %c0_7] : memref<32x32xf32, #tpu.memory_space<vmem>>, vector<32x32xf32>
    tpu.vector_store %arg4[%c0_6, %c0_7], %7 {strides = array<i32>} : memref<32x32xf32, #tpu.memory_space<vmem>>, vector<32x32xf32>,
    return
  }
  func.func @transform_0(%arg0: i32) -> (i32, i32) {
    %c0_i32 = arith.constant 0 : i32
    %c0_i32_0 = arith.constant 0 : i32
    return %arg0, %c0_i32 : i32, i32
  }
  func.func @transform_1(%arg0: i32) -> (i32, i32) {
    %c0_i32 = arith.constant 0 : i32
    %c0_i32_0 = arith.constant 0 : i32
    %c0_i32_1 = arith.constant 0 : i32
    return %c0_i32, %c0_i32_0 : i32, i32
  }
  func.func @transform_2(%arg0: i32) -> (i32, i32) {
    %c0_i32 = arith.constant 0 : i32
    %c0_i32_0 = arith.constant 0 : i32
    %c0_i32_1 = arith.constant 0 : i32
    return %c0_i32, %c0_i32_0 : i32, i32
  }
  func.func @transform_3(%arg0: i32) -> (i32, i32) {
    %c0_i32 = arith.constant 0 : i32
    %c0_i32_0 = arith.constant 0 : i32
    return %arg0, %c0_i32 : i32, i32
  }
}

module attributes {stable_mosaic.version = 11 : i64} {
  func.func @_res_layer_kernel(%arg0: i32, %arg1: memref<32x288xbf16, #tpu.memory_space<vmem>>, %arg2: memref<32x32xf32, #tpu.memory_space<vmem>>, %arg3: memref<288x16xbf16, #tpu.memory_space<vmem>>, %arg4: memref<16x32xbf16, #tpu.memory_space<vmem>>, %arg5: memref<32x32xf32, #tpu.memory_space<vmem>>) attributes {dimension_semantics = [#tpu.dimension_semantics<parallel>], iteration_bounds = array<i64: 1>, scalar_prefetch = 0 : i64, scratch_operands = 0 : i64, tpu.core_type = #tpu.core_type<tc>, window_params = [{transform_indices = @transform_0, window_bounds = array<i64: 32, 288>}, {transform_indices = @transform_1, window_bounds = array<i64: 32, 32>}, {pipeline_mode = #tpu.pipeline_mode<synchronous>, transform_indices = @transform_2, window_bounds = array<i64: 288, 16>}, {pipeline_mode = #tpu.pipeline_mode<synchronous>, transform_indices = @transform_3, window_bounds = array<i64: 16, 32>}, {transform_indices = @transform_4, window_bounds = array<i64: 32, 32>}]} {
    %c0 = arith.constant 0 : index
    %c0_0 = arith.constant 0 : index
    %0 = vector.load %arg4[%c0, %c0_0] : memref<16x32xbf16, #tpu.memory_space<vmem>>, vector<16x32xbf16>
    %c0_1 = arith.constant 0 : index
    %c0_2 = arith.constant 0 : index
    %1 = vector.load %arg1[%c0_1, %c0_2] : memref<32x288xbf16, #tpu.memory_space<vmem>>, vector<32x288xbf16>
    %c0_3 = arith.constant 0 : index
    %c0_4 = arith.constant 0 : index
    %2 = vector.load %arg3[%c0_3, %c0_4] : memref<288x16xbf16, #tpu.memory_space<vmem>>, vector<288x16xbf16>
    %cst = arith.constant dense<0.000000e+00> : vector<32x16xf32>
    %3 = tpu.matmul %1, %2, %cst {dimension_numbers = #tpu.dot_dimension_numbers<[1], [0], [0], [1], [0, 0, 1, 1], [], []>} : vector<32x288xbf16>, vector<288x16xbf16>, vector<32x16xf32> -> vector<32x16xf32>
    %cst_5 = arith.constant 0.000000e+00 : f32
    %4 = vector.broadcast %cst_5 : f32 to vector<32x16xf32>
    %5 = arith.maximumf %3, %4 : vector<32x16xf32>
    %6 = arith.truncf %5 : vector<32x16xf32> to vector<32x16xbf16>
    %c0_6 = arith.constant 0 : index
    %c0_7 = arith.constant 0 : index
    %7 = vector.load %arg2[%c0_6, %c0_7] : memref<32x32xf32, #tpu.memory_space<vmem>>, vector<32x32xf32>
    %cst_8 = arith.constant dense<0.000000e+00> : vector<32x32xf32>
    %8 = tpu.matmul %6, %0, %cst_8 {dimension_numbers = #tpu.dot_dimension_numbers<[1], [0], [0], [1], [0, 0, 1, 1], [], []>} : vector<32x16xbf16>, vector<16x32xbf16>, vector<32x32xf32> -> vector<32x32xf32>
    %9 = arith.addf %7, %8 : vector<32x32xf32>
    %c0_9 = arith.constant 0 : index
    %c0_10 = arith.constant 0 : index
    %10 = vector.load %arg5[%c0_9, %c0_10] : memref<32x32xf32, #tpu.memory_space<vmem>>, vector<32x32xf32>
    tpu.vector_store %arg5[%c0_9, %c0_10], %9 {strides = array<i32>} : memref<32x32xf32, #tpu.memory_space<vmem>>, vector<32x32xf32>,
    return
  }
  func.func @transform_0(%arg0: i32) -> (i32, i32) {
    %c0_i32 = arith.constant 0 : i32
    %c0_i32_0 = arith.constant 0 : i32
    return %arg0, %c0_i32 : i32, i32
  }
  func.func @transform_1(%arg0: i32) -> (i32, i32) {
    %c0_i32 = arith.constant 0 : i32
    %c0_i32_0 = arith.constant 0 : i32
    return %arg0, %c0_i32 : i32, i32
  }
  func.func @transform_2(%arg0: i32) -> (i32, i32) {
    %c0_i32 = arith.constant 0 : i32
    %c0_i32_0 = arith.constant 0 : i32
    %c0_i32_1 = arith.constant 0 : i32
    return %c0_i32, %c0_i32_0 : i32, i32
  }
  func.func @transform_3(%arg0: i32) -> (i32, i32) {
    %c0_i32 = arith.constant 0 : i32
    %c0_i32_0 = arith.constant 0 : i32
    %c0_i32_1 = arith.constant 0 : i32
    return %c0_i32, %c0_i32_0 : i32, i32
  }
  func.func @transform_4(%arg0: i32) -> (i32, i32) {
    %c0_i32 = arith.constant 0 : i32
    %c0_i32_0 = arith.constant 0 : i32
    return %arg0, %c0_i32 : i32, i32
  }
}

module attributes {stable_mosaic.version = 11 : i64} {
  func.func @_vq_kernel(%arg0: i32, %arg1: memref<32x32xf32, #tpu.memory_space<vmem>>, %arg2: memref<32x16xf32, #tpu.memory_space<vmem>>, %arg3: memref<1x16xf32, #tpu.memory_space<vmem>>, %arg4: memref<128x16xf32, #tpu.memory_space<vmem>>, %arg5: memref<1x128xf32, #tpu.memory_space<vmem>>, %arg6: memref<32x16xf32, #tpu.memory_space<vmem>>, %arg7: memref<1x1x128xf32, #tpu.memory_space<vmem>>, %arg8: memref<1x1x128xf32, #tpu.memory_space<vmem>>) attributes {dimension_semantics = [#tpu.dimension_semantics<parallel>], iteration_bounds = array<i64: 1>, scalar_prefetch = 0 : i64, scratch_operands = 0 : i64, tpu.core_type = #tpu.core_type<tc>, window_params = [{transform_indices = @transform_0, window_bounds = array<i64: 32, 32>}, {pipeline_mode = #tpu.pipeline_mode<synchronous>, transform_indices = @transform_1, window_bounds = array<i64: 32, 16>}, {pipeline_mode = #tpu.pipeline_mode<synchronous>, transform_indices = @transform_2, window_bounds = array<i64: 1, 16>}, {pipeline_mode = #tpu.pipeline_mode<synchronous>, transform_indices = @transform_3, window_bounds = array<i64: 128, 16>}, {pipeline_mode = #tpu.pipeline_mode<synchronous>, transform_indices = @transform_4, window_bounds = array<i64: 1, 128>}, {transform_indices = @transform_5, window_bounds = array<i64: 32, 16>}, {transform_indices = @transform_6, window_bounds = array<i64: 1, 1, 128>}, {transform_indices = @transform_7, window_bounds = array<i64: 1, 1, 128>}]} {
    %c0 = arith.constant 0 : index
    %c0_0 = arith.constant 0 : index
    %0 = vector.load %arg1[%c0, %c0_0] : memref<32x32xf32, #tpu.memory_space<vmem>>, vector<32x32xf32>
    %cst = arith.constant 0.000000e+00 : f32
    %1 = vector.broadcast %cst : f32 to vector<32x32xf32>
    %2 = arith.maximumf %0, %1 : vector<32x32xf32>
    %c0_1 = arith.constant 0 : index
    %c0_2 = arith.constant 0 : index
    %3 = vector.load %arg2[%c0_1, %c0_2] : memref<32x16xf32, #tpu.memory_space<vmem>>, vector<32x16xf32>
    %cst_3 = arith.constant dense<0.000000e+00> : vector<32x16xf32>
    %4 = tpu.matmul %2, %3, %cst_3 {dimension_numbers = #tpu.dot_dimension_numbers<[1], [0], [0], [1], [0, 0, 1, 1], [], []>} : vector<32x32xf32>, vector<32x16xf32>, vector<32x16xf32> -> vector<32x16xf32>
    %c0_4 = arith.constant 0 : index
    %c0_5 = arith.constant 0 : index
    %5 = vector.load %arg3[%c0_4, %c0_5] : memref<1x16xf32, #tpu.memory_space<vmem>>, vector<1x16xf32>
    %6 = vector.broadcast %5 : vector<1x16xf32> to vector<32x16xf32>
    %7 = arith.addf %4, %6 : vector<32x16xf32>
    %c0_6 = arith.constant 0 : index
    %c0_7 = arith.constant 0 : index
    %8 = vector.load %arg4[%c0_6, %c0_7] : memref<128x16xf32, #tpu.memory_space<vmem>>, vector<128x16xf32>
    %9 = arith.mulf %7, %7 : vector<32x16xf32>
    %cst_8 = arith.constant dense<0.000000e+00> : vector<32xf32>
    %10 = vector.multi_reduction <add>, %9, %cst_8 [1] : vector<32x16xf32> to vector<32xf32>
    %11 = vector.shape_cast %10 : vector<32xf32> to vector<32x1xf32>
    %cst_9 = arith.constant dense<0.000000e+00> : vector<32x128xf32>
    %12 = tpu.matmul %7, %8, %cst_9 {dimension_numbers = #tpu.dot_dimension_numbers<[1], [1], [0], [0], [0, 0, 1, 0], [], []>} : vector<32x16xf32>, vector<128x16xf32>, vector<32x128xf32> -> vector<32x128xf32>
    %c0_10 = arith.constant 0 : index
    %c0_11 = arith.constant 0 : index
    %13 = vector.load %arg5[%c0_10, %c0_11] : memref<1x128xf32, #tpu.memory_space<vmem>>, vector<1x128xf32>
    %14 = vector.broadcast %11 : vector<32x1xf32> to vector<32x128xf32>
    %15 = vector.broadcast %13 : vector<1x128xf32> to vector<32x128xf32>
    %16 = arith.addf %14, %15 : vector<32x128xf32>
    %cst_12 = arith.constant 2.000000e+00 : f32
    %17 = vector.broadcast %cst_12 : f32 to vector<32x128xf32>
    %18 = arith.mulf %17, %12 : vector<32x128xf32>
    %19 = arith.subf %16, %18 : vector<32x128xf32>
    %20 = tpu.iota {dimensions = array<i32: 1>} : vector<32x128xi32>
    %cst_13 = arith.constant dense<0x7F800000> : vector<32xf32>
    %21 = vector.multi_reduction <minimumf>, %19, %cst_13 [1] : vector<32x128xf32> to vector<32xf32>
    %22 = vector.shape_cast %21 : vector<32xf32> to vector<32x1xf32>
    %23 = vector.broadcast %22 : vector<32x1xf32> to vector<32x128xf32>
    %24 = arith.cmpf oeq, %19, %23 : vector<32x128xf32>
    %c128_i32 = arith.constant 128 : i32
    %25 = vector.broadcast %c128_i32 : i32 to vector<32x128xi32>
    %26 = arith.select %24, %20, %25 : vector<32x128xi1>, vector<32x128xi32>
    %cst_14 = arith.constant dense<2147483647> : vector<32xi32>
    %27 = vector.multi_reduction <minsi>, %26, %cst_14 [1] : vector<32x128xi32> to vector<32xi32>
    %28 = vector.shape_cast %27 : vector<32xi32> to vector<32x1xi32>
    %29 = vector.broadcast %28 : vector<32x1xi32> to vector<32x128xi32>
    %30 = arith.cmpi eq, %20, %29 : vector<32x128xi32>
    %31 = arith.extui %30 : vector<32x128xi1> to vector<32x128xi32>
    %32 = arith.sitofp %31 : vector<32x128xi32> to vector<32x128xf32>
    %cst_15 = arith.constant dense<0.000000e+00> : vector<32x16xf32>
    %33 = tpu.matmul %32, %8, %cst_15 {dimension_numbers = #tpu.dot_dimension_numbers<[1], [0], [0], [1], [0, 0, 1, 1], [], []>} : vector<32x128xf32>, vector<128x16xf32>, vector<32x16xf32> -> vector<32x16xf32>
    %34 = arith.subf %33, %7 : vector<32x16xf32>
    %cst_16 = arith.constant dense<0.000000e+00> : vector<128xf32>
    %35 = vector.multi_reduction <add>, %32, %cst_16 [0] : vector<32x128xf32> to vector<128xf32>
    %36 = vector.shape_cast %35 : vector<128xf32> to vector<1x128xf32>
    %c0_17 = arith.constant 0 : index
    %c0_18 = arith.constant 0 : index
    %37 = vector.load %arg6[%c0_17, %c0_18] : memref<32x16xf32, #tpu.memory_space<vmem>>, vector<32x16xf32>
    tpu.vector_store %arg6[%c0_17, %c0_18], %33 {strides = array<i32>} : memref<32x16xf32, #tpu.memory_space<vmem>>, vector<32x16xf32>,
    %38 = vector.shape_cast %36 : vector<1x128xf32> to vector<1x1x128xf32>
    %c0_19 = arith.constant 0 : index
    %c0_20 = arith.constant 0 : index
    %c0_21 = arith.constant 0 : index
    %39 = vector.load %arg7[%c0_19, %c0_20, %c0_21] : memref<1x1x128xf32, #tpu.memory_space<vmem>>, vector<1x1x128xf32>
    tpu.vector_store %arg7[%c0_19, %c0_20, %c0_21], %38 {strides = array<i32>} : memref<1x1x128xf32, #tpu.memory_space<vmem>>, vector<1x1x128xf32>,
    %cst_22 = arith.constant 0.000000e+00 : f32
    %40 = vector.broadcast %cst_22 : f32 to vector<1x1x128xf32>
    %41 = arith.mulf %34, %34 : vector<32x16xf32>
    %42 = vector.shape_cast %41 : vector<32x16xf32> to vector<1x32x16xf32>
    %cst_23 = arith.constant dense<0.000000e+00> : vector<1xf32>
    %43 = vector.multi_reduction <add>, %42, %cst_23 [1, 2] : vector<1x32x16xf32> to vector<1xf32>
    %44 = vector.shape_cast %43 : vector<1xf32> to vector<1x1x1xf32>
    %45 = vector.extract %44[0, 0, 0] : f32 from vector<1x1x1xf32>
    %46 = vector.broadcast %45 : f32 to vector<1x1x128xf32>
    %47 = arith.addf %40, %46 : vector<1x1x128xf32>
    %c0_24 = arith.constant 0 : index
    %c0_25 = arith.constant 0 : index
    %c0_26 = arith.constant 0 : index
    %48 = vector.load %arg8[%c0_24, %c0_25, %c0_26] : memref<1x1x128xf32, #tpu.memory_space<vmem>>, vector<1x1x128xf32>
    tpu.vector_store %arg8[%c0_24, %c0_25, %c0_26], %47 {strides = array<i32>} : memref<1x1x128xf32, #tpu.memory_space<vmem>>, vector<1x1x128xf32>,
    return
  }
  func.func @transform_0(%arg0: i32) -> (i32, i32) {
    %c0_i32 = arith.constant 0 : i32
    %c0_i32_0 = arith.constant 0 : i32
    return %arg0, %c0_i32 : i32, i32
  }
  func.func @transform_1(%arg0: i32) -> (i32, i32) {
    %c0_i32 = arith.constant 0 : i32
    %c0_i32_0 = arith.constant 0 : i32
    %c0_i32_1 = arith.constant 0 : i32
    return %c0_i32, %c0_i32_0 : i32, i32
  }
  func.func @transform_2(%arg0: i32) -> (i32, i32) {
    %c0_i32 = arith.constant 0 : i32
    %c0_i32_0 = arith.constant 0 : i32
    %c0_i32_1 = arith.constant 0 : i32
    return %c0_i32, %c0_i32_0 : i32, i32
  }
  func.func @transform_3(%arg0: i32) -> (i32, i32) {
    %c0_i32 = arith.constant 0 : i32
    %c0_i32_0 = arith.constant 0 : i32
    %c0_i32_1 = arith.constant 0 : i32
    return %c0_i32, %c0_i32_0 : i32, i32
  }
  func.func @transform_4(%arg0: i32) -> (i32, i32) {
    %c0_i32 = arith.constant 0 : i32
    %c0_i32_0 = arith.constant 0 : i32
    %c0_i32_1 = arith.constant 0 : i32
    return %c0_i32, %c0_i32_0 : i32, i32
  }
  func.func @transform_5(%arg0: i32) -> (i32, i32) {
    %c0_i32 = arith.constant 0 : i32
    %c0_i32_0 = arith.constant 0 : i32
    return %arg0, %c0_i32 : i32, i32
  }
  func.func @transform_6(%arg0: i32) -> (i32, i32, i32) {
    %c0_i32 = arith.constant 0 : i32
    %c0_i32_0 = arith.constant 0 : i32
    %c0_i32_1 = arith.constant 0 : i32
    return %arg0, %c0_i32, %c0_i32_0 : i32, i32, i32
  }
  func.func @transform_7(%arg0: i32) -> (i32, i32, i32) {
    %c0_i32 = arith.constant 0 : i32
    %c0_i32_0 = arith.constant 0 : i32
    %c0_i32_1 = arith.constant 0 : i32
    return %arg0, %c0_i32, %c0_i32_0 : i32, i32, i32
  }
}

module attributes {stable_mosaic.version = 11 : i64} {
  func.func @_conv_kernel(%arg0: i32, %arg1: memref<32x144xbf16, #tpu.memory_space<vmem>>, %arg2: memref<144x32xbf16, #tpu.memory_space<vmem>>, %arg3: memref<1x32xf32, #tpu.memory_space<vmem>>, %arg4: memref<32x32xf32, #tpu.memory_space<vmem>>) attributes {dimension_semantics = [#tpu.dimension_semantics<parallel>], iteration_bounds = array<i64: 1>, scalar_prefetch = 0 : i64, scratch_operands = 0 : i64, tpu.core_type = #tpu.core_type<tc>, window_params = [{transform_indices = @transform_0, window_bounds = array<i64: 32, 144>}, {pipeline_mode = #tpu.pipeline_mode<synchronous>, transform_indices = @transform_1, window_bounds = array<i64: 144, 32>}, {pipeline_mode = #tpu.pipeline_mode<synchronous>, transform_indices = @transform_2, window_bounds = array<i64: 1, 32>}, {transform_indices = @transform_3, window_bounds = array<i64: 32, 32>}]} {
    %c0 = arith.constant 0 : index
    %c0_0 = arith.constant 0 : index
    %0 = vector.load %arg1[%c0, %c0_0] : memref<32x144xbf16, #tpu.memory_space<vmem>>, vector<32x144xbf16>
    %c0_1 = arith.constant 0 : index
    %c0_2 = arith.constant 0 : index
    %1 = vector.load %arg2[%c0_1, %c0_2] : memref<144x32xbf16, #tpu.memory_space<vmem>>, vector<144x32xbf16>
    %cst = arith.constant dense<0.000000e+00> : vector<32x32xf32>
    %2 = tpu.matmul %0, %1, %cst {dimension_numbers = #tpu.dot_dimension_numbers<[1], [0], [0], [1], [0, 0, 1, 1], [], []>} : vector<32x144xbf16>, vector<144x32xbf16>, vector<32x32xf32> -> vector<32x32xf32>
    %c0_3 = arith.constant 0 : index
    %c0_4 = arith.constant 0 : index
    %3 = vector.load %arg3[%c0_3, %c0_4] : memref<1x32xf32, #tpu.memory_space<vmem>>, vector<1x32xf32>
    %4 = vector.broadcast %3 : vector<1x32xf32> to vector<32x32xf32>
    %5 = arith.addf %2, %4 : vector<32x32xf32>
    %c0_5 = arith.constant 0 : index
    %c0_6 = arith.constant 0 : index
    %6 = vector.load %arg4[%c0_5, %c0_6] : memref<32x32xf32, #tpu.memory_space<vmem>>, vector<32x32xf32>
    tpu.vector_store %arg4[%c0_5, %c0_6], %5 {strides = array<i32>} : memref<32x32xf32, #tpu.memory_space<vmem>>, vector<32x32xf32>,
    return
  }
  func.func @transform_0(%arg0: i32) -> (i32, i32) {
    %c0_i32 = arith.constant 0 : i32
    %c0_i32_0 = arith.constant 0 : i32
    return %arg0, %c0_i32 : i32, i32
  }
  func.func @transform_1(%arg0: i32) -> (i32, i32) {
    %c0_i32 = arith.constant 0 : i32
    %c0_i32_0 = arith.constant 0 : i32
    %c0_i32_1 = arith.constant 0 : i32
    return %c0_i32, %c0_i32_0 : i32, i32
  }
  func.func @transform_2(%arg0: i32) -> (i32, i32) {
    %c0_i32 = arith.constant 0 : i32
    %c0_i32_0 = arith.constant 0 : i32
    %c0_i32_1 = arith.constant 0 : i32
    return %c0_i32, %c0_i32_0 : i32, i32
  }
  func.func @transform_3(%arg0: i32) -> (i32, i32) {
    %c0_i32 = arith.constant 0 : i32
    %c0_i32_0 = arith.constant 0 : i32
    return %arg0, %c0_i32 : i32, i32
  }
}

module attributes {stable_mosaic.version = 11 : i64} {
  func.func @_conv_kernel(%arg0: i32, %arg1: memref<128x512xbf16, #tpu.memory_space<vmem>>, %arg2: memref<512x16xbf16, #tpu.memory_space<vmem>>, %arg3: memref<1x16xf32, #tpu.memory_space<vmem>>, %arg4: memref<128x16xf32, #tpu.memory_space<vmem>>) attributes {dimension_semantics = [#tpu.dimension_semantics<parallel>], iteration_bounds = array<i64: 1>, scalar_prefetch = 0 : i64, scratch_operands = 0 : i64, tpu.core_type = #tpu.core_type<tc>, window_params = [{transform_indices = @transform_0, window_bounds = array<i64: 128, 512>}, {pipeline_mode = #tpu.pipeline_mode<synchronous>, transform_indices = @transform_1, window_bounds = array<i64: 512, 16>}, {pipeline_mode = #tpu.pipeline_mode<synchronous>, transform_indices = @transform_2, window_bounds = array<i64: 1, 16>}, {transform_indices = @transform_3, window_bounds = array<i64: 128, 16>}]} {
    %c0 = arith.constant 0 : index
    %c0_0 = arith.constant 0 : index
    %0 = vector.load %arg1[%c0, %c0_0] : memref<128x512xbf16, #tpu.memory_space<vmem>>, vector<128x512xbf16>
    %c0_1 = arith.constant 0 : index
    %c0_2 = arith.constant 0 : index
    %1 = vector.load %arg2[%c0_1, %c0_2] : memref<512x16xbf16, #tpu.memory_space<vmem>>, vector<512x16xbf16>
    %cst = arith.constant dense<0.000000e+00> : vector<128x16xf32>
    %2 = tpu.matmul %0, %1, %cst {dimension_numbers = #tpu.dot_dimension_numbers<[1], [0], [0], [1], [0, 0, 1, 1], [], []>} : vector<128x512xbf16>, vector<512x16xbf16>, vector<128x16xf32> -> vector<128x16xf32>
    %c0_3 = arith.constant 0 : index
    %c0_4 = arith.constant 0 : index
    %3 = vector.load %arg3[%c0_3, %c0_4] : memref<1x16xf32, #tpu.memory_space<vmem>>, vector<1x16xf32>
    %4 = vector.broadcast %3 : vector<1x16xf32> to vector<128x16xf32>
    %5 = arith.addf %2, %4 : vector<128x16xf32>
    %cst_5 = arith.constant 0.000000e+00 : f32
    %6 = vector.broadcast %cst_5 : f32 to vector<128x16xf32>
    %7 = arith.maximumf %5, %6 : vector<128x16xf32>
    %c0_6 = arith.constant 0 : index
    %c0_7 = arith.constant 0 : index
    %8 = vector.load %arg4[%c0_6, %c0_7] : memref<128x16xf32, #tpu.memory_space<vmem>>, vector<128x16xf32>
    tpu.vector_store %arg4[%c0_6, %c0_7], %7 {strides = array<i32>} : memref<128x16xf32, #tpu.memory_space<vmem>>, vector<128x16xf32>,
    return
  }
  func.func @transform_0(%arg0: i32) -> (i32, i32) {
    %c0_i32 = arith.constant 0 : i32
    %c0_i32_0 = arith.constant 0 : i32
    return %arg0, %c0_i32 : i32, i32
  }
  func.func @transform_1(%arg0: i32) -> (i32, i32) {
    %c0_i32 = arith.constant 0 : i32
    %c0_i32_0 = arith.constant 0 : i32
    %c0_i32_1 = arith.constant 0 : i32
    return %c0_i32, %c0_i32_0 : i32, i32
  }
  func.func @transform_2(%arg0: i32) -> (i32, i32) {
    %c0_i32 = arith.constant 0 : i32
    %c0_i32_0 = arith.constant 0 : i32
    %c0_i32_1 = arith.constant 0 : i32
    return %c0_i32, %c0_i32_0 : i32, i32
  }
  func.func @transform_3(%arg0: i32) -> (i32, i32) {
    %c0_i32 = arith.constant 0 : i32
    %c0_i32_0 = arith.constant 0 : i32
    return %arg0, %c0_i32 : i32, i32
  }
}

module attributes {stable_mosaic.version = 11 : i64} {
  func.func @_conv_kernel(%arg0: i32, %arg1: memref<512x256xbf16, #tpu.memory_space<vmem>>, %arg2: memref<256x3xbf16, #tpu.memory_space<vmem>>, %arg3: memref<1x3xf32, #tpu.memory_space<vmem>>, %arg4: memref<512x3xf32, #tpu.memory_space<vmem>>) attributes {dimension_semantics = [#tpu.dimension_semantics<parallel>], iteration_bounds = array<i64: 1>, scalar_prefetch = 0 : i64, scratch_operands = 0 : i64, tpu.core_type = #tpu.core_type<tc>, window_params = [{transform_indices = @transform_0, window_bounds = array<i64: 512, 256>}, {pipeline_mode = #tpu.pipeline_mode<synchronous>, transform_indices = @transform_1, window_bounds = array<i64: 256, 3>}, {pipeline_mode = #tpu.pipeline_mode<synchronous>, transform_indices = @transform_2, window_bounds = array<i64: 1, 3>}, {transform_indices = @transform_3, window_bounds = array<i64: 512, 3>}]} {
    %c0 = arith.constant 0 : index
    %c0_0 = arith.constant 0 : index
    %0 = vector.load %arg1[%c0, %c0_0] : memref<512x256xbf16, #tpu.memory_space<vmem>>, vector<512x256xbf16>
    %c0_1 = arith.constant 0 : index
    %c0_2 = arith.constant 0 : index
    %1 = vector.load %arg2[%c0_1, %c0_2] : memref<256x3xbf16, #tpu.memory_space<vmem>>, vector<256x3xbf16>
    %cst = arith.constant dense<0.000000e+00> : vector<512x3xf32>
    %2 = tpu.matmul %0, %1, %cst {dimension_numbers = #tpu.dot_dimension_numbers<[1], [0], [0], [1], [0, 0, 1, 1], [], []>} : vector<512x256xbf16>, vector<256x3xbf16>, vector<512x3xf32> -> vector<512x3xf32>
    %c0_3 = arith.constant 0 : index
    %c0_4 = arith.constant 0 : index
    %3 = vector.load %arg3[%c0_3, %c0_4] : memref<1x3xf32, #tpu.memory_space<vmem>>, vector<1x3xf32>
    %4 = vector.broadcast %3 : vector<1x3xf32> to vector<512x3xf32>
    %5 = arith.addf %2, %4 : vector<512x3xf32>
    %c0_5 = arith.constant 0 : index
    %c0_6 = arith.constant 0 : index
    %6 = vector.load %arg4[%c0_5, %c0_6] : memref<512x3xf32, #tpu.memory_space<vmem>>, vector<512x3xf32>
    tpu.vector_store %arg4[%c0_5, %c0_6], %5 {strides = array<i32>} : memref<512x3xf32, #tpu.memory_space<vmem>>, vector<512x3xf32>,
    return
  }
  func.func @transform_0(%arg0: i32) -> (i32, i32) {
    %c0_i32 = arith.constant 0 : i32
    %c0_i32_0 = arith.constant 0 : i32
    return %arg0, %c0_i32 : i32, i32
  }
  func.func @transform_1(%arg0: i32) -> (i32, i32) {
    %c0_i32 = arith.constant 0 : i32
    %c0_i32_0 = arith.constant 0 : i32
    %c0_i32_1 = arith.constant 0 : i32
    return %c0_i32, %c0_i32_0 : i32, i32
  }
  func.func @transform_2(%arg0: i32) -> (i32, i32) {
    %c0_i32 = arith.constant 0 : i32
    %c0_i32_0 = arith.constant 0 : i32
    %c0_i32_1 = arith.constant 0 : i32
    return %c0_i32, %c0_i32_0 : i32, i32
  }
  func.func @transform_3(%arg0: i32) -> (i32, i32) {
    %c0_i32 = arith.constant 0 : i32
    %c0_i32_0 = arith.constant 0 : i32
    return %arg0, %c0_i32 : i32, i32
  }
}

</mosaic_0001>

<bundles_post_ra>
// kernel: vqvae_forward.11
= control target key start
LH: loop header
LB: loop body
LE: loop exit
PB: predicated region body
PF: predicated region fallthrough
CT: control target
= control target key end

     0   :  { %vm102_vm0 = vcmask 392192   ;;  %vm240_vm1 = vcmask 130048   ;;  %s459_s1 = inlined_call_operand.vmem [shape: bf16[48,16], index: 1, kind: input, shape index: {}]   ;;  %s460_s0 = inlined_call_operand.vmem [shape: bf16[128,48], index: 0, kind: input, shape index: {}]   ;;  %s461_s2 = inlined_call_operand.vmem [shape: f32[1,16], index: 2, kind: input, shape index: {}]   ;;  %s462_s3 = inlined_call_operand.vmem [shape: f32[128,16], index: 3, kind: output, shape index: {}]  }
   0x1   :  { %v320_v0 = vld [vmem:[%s459_s1] sm:$0xff]   ;;  %v321_v1 = vld [vmem:[%s459_s1 + $0x8] sm:$0xff]   ;;  %v322_v2 = vld [vmem:[%s459_s1 + $0x10] sm:$0xff]  }
   0x2   :  { %292 = vmatprep.subr.bf16.mxu0 %v320_v0  ;;  %314 = vmatprep.subr.bf16.mxu1 %v320_v0  ;;  %v323_v3 = vld [vmem:[%s460_s0] sm:$0xff]   ;;  %v325_v5 = vld [vmem:[%s460_s0 + $0x8] sm:$0xff]   ;;  %v327_v7 = vld [vmem:[%s460_s0 + $0x10] sm:$0xff]  }
   0x3   :  { %293 = vmatpush3.bf16.msra.mxu0 %v320_v0  ;;  %317 = vmatpush3.bf16.msra.mxu1 %v320_v0  ;;  %v324_v4 = vld [vmem:[%s460_s0 + $0x20] sm:$0xff]   ;;  %v326_v6 = vld [vmem:[%s460_s0 + $0x28] sm:$0xff]   ;;  %v328_v8 = vld [vmem:[%s460_s0 + $0x30] sm:$0xff]  }
   0x4   :  { %294 = vmatprep.subr.bf16.mxu0 %v321_v1  ;;  %315 = vmatprep.subr.bf16.mxu1 %v321_v1  ;;  %v329_v9 = vld [vmem:[%s460_s0 + $0x18] sm:$0xff]   ;;  %v261_v11 = vld [vmem:[%s461_s2] ss:$0 sm:$0xff] }
   0x5   :  { %298 = vmatprep.mubr.msk.bf16.mxu0 %vm102_vm0, %v323_v3  ;;  %306 = vmatprep.mubr.msk.bf16.mxu1 %vm102_vm0, %v324_v4  ;;  %v330_v10 = vld [vmem:[%s460_s0 + $0x38] sm:$0xff]  }
   0x7   :  { %295 = vmatpush3.bf16.msra.mxu0 %v321_v1  ;;  %318 = vmatpush3.bf16.msra.mxu1 %v321_v1 }
   0x8   :  { %296 = vmatprep.subr.bf16.mxu0 %v322_v2  ;;  %316 = vmatprep.subr.bf16.mxu1 %v322_v2 }
   0xb   :  { %297 = vmatpush3.bf16.msra.mxu0 %v322_v2  ;;  %319 = vmatpush3.bf16.msra.mxu1 %v322_v2 }
   0xe   :  { %299 = vmatmul.mubr.msk.bf16.vlgmr.msra.gmra.mrb[0].mxu0 %vm102_vm0, %v325_v5  ;;  %307 = vmatmul.mubr.msk.bf16.vlgmr.msra.gmra.mrb[0].mxu1 %vm102_vm0, %v326_v6 }
   0xf   :  { %302 = vmatprep.mubr.msk.bf16.mxu0 %vm102_vm0, %v327_v7  ;;  %310 = vmatprep.mubr.msk.bf16.mxu1 %vm102_vm0, %v328_v8 }
  0x16   :  { %303 = vmatmul.mubr.msk.bf16.gmra.mrb[4].mxu0 %vm102_vm0, %v329_v9  ;;  %311 = vmatmul.mubr.msk.bf16.gmra.mrb[4].mxu1 %vm102_vm0, %v330_v10 }
  0xe1   :  { %v300_v12 = vpop.f32.mrb[0].mxu0  ;;  %v308_v13 = vpop.f32.mrb[0].mxu1 }
  0xe2   :  { %v170_v14 = vadd.f32 %v300_v12, %v261_v11  ;;  %v202_v15 = vadd.f32 %v308_v13, %v261_v11  ;;  %v161_v16 = vpop.f32.mrb[1].mxu0  ;;  %v193_v17 = vpop.f32.mrb[1].mxu1 }
  0xe3   :  { %v162_v18 = vadd.f32 %v261_v11, %v161_v16  ;;  %v194_v19 = vadd.f32 %v261_v11, %v193_v17  ;;  %v301_v20 = vpop.f32.mrb[2].mxu0  ;;  %v309_v21 = vpop.f32.mrb[2].mxu1 }
  0xe4   :  { %v226_v22 = vmax.f32 %v170_v14, 0.0  ;;  %v234_v23 = vmax.f32 %v202_v15, 0.0  ;;  %v173_v24 = vadd.f32 %v301_v20, %v261_v11  ;;  %v205_v25 = vadd.f32 %v309_v21, %v261_v11  ;;  %v164_v26 = vpop.f32.mrb[3].mxu0  ;;  %v196_v27 = vpop.f32.mrb[3].mxu1 }
  0xe5   :  { %v224_v28 = vmax.f32 %v162_v18, 0.0  ;;  %v232_v29 = vmax.f32 %v194_v19, 0.0  ;;  %v165_v30 = vadd.f32 %v261_v11, %v164_v26  ;;  %v197_v31 = vadd.f32 %v261_v11, %v196_v27 }
  0xe6   :  { %243 = vst.msk [vmem:[%s462_s3 + $0x10] sm:$0xff] %vm240_vm1, %v226_v22  ;;  %251 = vst.msk [vmem:[%s462_s3 + $0x50] sm:$0xff] %vm240_vm1, %v234_v23  ;;  %v227_v32 = vmax.f32 %v173_v24, 0.0  ;;  %v235_v33 = vmax.f32 %v205_v25, 0.0 }
  0xe7   :  { %241 = vst.msk [vmem:[%s462_s3] sm:$0xff] %vm240_vm1, %v224_v28  ;;  %249 = vst.msk [vmem:[%s462_s3 + $0x40] sm:$0xff] %vm240_vm1, %v232_v29  ;;  %v225_v34 = vmax.f32 %v165_v30, 0.0  ;;  %v233_v35 = vmax.f32 %v197_v31, 0.0 }
  0xe8   :  { %244 = vst.msk [vmem:[%s462_s3 + $0x18] sm:$0xff] %vm240_vm1, %v227_v32  ;;  %252 = vst.msk [vmem:[%s462_s3 + $0x58] sm:$0xff] %vm240_vm1, %v235_v33 }
  0xe9   :  { %242 = vst.msk [vmem:[%s462_s3 + $0x8] sm:$0xff] %vm240_vm1, %v225_v34  ;;  %250 = vst.msk [vmem:[%s462_s3 + $0x48] sm:$0xff] %vm240_vm1, %v233_v35  ;;  %v304_v36 = vpop.f32.mrb[4].mxu0  ;;  %v312_v37 = vpop.f32.mrb[4].mxu1 }
  0xea   :  { %v186_v38 = vadd.f32 %v304_v36, %v261_v11  ;;  %v218_v39 = vadd.f32 %v312_v37, %v261_v11  ;;  %v177_v40 = vpop.f32.mrb[5].mxu0  ;;  %v209_v41 = vpop.f32.mrb[5].mxu1 }
  0xeb   :  { %v178_v42 = vadd.f32 %v261_v11, %v177_v40  ;;  %v210_v43 = vadd.f32 %v261_v11, %v209_v41  ;;  %v305_v44 = vpop.f32.mrb[6].mxu0  ;;  %v313_v45 = vpop.f32.mrb[6].mxu1 }
  0xec   :  { %v230_v46 = vmax.f32 %v186_v38, 0.0  ;;  %v238_v47 = vmax.f32 %v218_v39, 0.0  ;;  %v189_v48 = vadd.f32 %v305_v44, %v261_v11  ;;  %v221_v49 = vadd.f32 %v313_v45, %v261_v11  ;;  %v180_v50 = vpop.f32.mrb[7].mxu0  ;;  %v212_v51 = vpop.f32.mrb[7].mxu1 }
  0xed   :  { %v228_v52 = vmax.f32 %v178_v42, 0.0  ;;  %v236_v53 = vmax.f32 %v210_v43, 0.0  ;;  %v181_v54 = vadd.f32 %v261_v11, %v180_v50  ;;  %v213_v55 = vadd.f32 %v261_v11, %v212_v51 }
  0xee   :  { %247 = vst.msk [vmem:[%s462_s3 + $0x30] sm:$0xff] %vm240_vm1, %v230_v46  ;;  %255 = vst.msk [vmem:[%s462_s3 + $0x70] sm:$0xff] %vm240_vm1, %v238_v47  ;;  %v231_v56 = vmax.f32 %v189_v48, 0.0  ;;  %v239_v57 = vmax.f32 %v221_v49, 0.0 }
  0xef   :  { %245 = vst.msk [vmem:[%s462_s3 + $0x20] sm:$0xff] %vm240_vm1, %v228_v52  ;;  %253 = vst.msk [vmem:[%s462_s3 + $0x60] sm:$0xff] %vm240_vm1, %v236_v53  ;;  %v229_v58 = vmax.f32 %v181_v54, 0.0  ;;  %v237_v59 = vmax.f32 %v213_v55, 0.0 }
  0xf0   :  { %248 = vst.msk [vmem:[%s462_s3 + $0x38] sm:$0xff] %vm240_vm1, %v231_v56  ;;  %256 = vst.msk [vmem:[%s462_s3 + $0x78] sm:$0xff] %vm240_vm1, %v239_v57 }
  0xf1   :  { %246 = vst.msk [vmem:[%s462_s3 + $0x28] sm:$0xff] %vm240_vm1, %v229_v58  ;;  %254 = vst.msk [vmem:[%s462_s3 + $0x68] sm:$0xff] %vm240_vm1, %v237_v59 }

// kernel: vqvae_forward.13
= control target key start
LH: loop header
LB: loop body
LE: loop exit
PB: predicated region body
PF: predicated region fallthrough
CT: control target
= control target key end

     0   :  { %vm204_vm0 = vcmask 261120   ;;  %s523_s1 = inlined_call_operand.vmem [shape: bf16[288,32], index: 1, kind: input, shape index: {}]   ;;  %s524_s0 = inlined_call_operand.vmem [shape: bf16[32,288], index: 0, kind: input, shape index: {}]   ;;  %s525_s2 = inlined_call_operand.vmem [shape: f32[1,32], index: 2, kind: input, shape index: {}]   ;;  %s526_s3 = inlined_call_operand.vmem [shape: f32[32,32], index: 3, kind: output, shape index: {}]  }
   0x1   :  { %v384_v0 = vld [vmem:[%s523_s1 + $0x40] sm:$0xff]   ;;  %v386_v2 = vld [vmem:[%s523_s1 + $0x48] sm:$0xff]   ;;  %v388_v4 = vld [vmem:[%s523_s1 + $0x50] sm:$0xff]  }
   0x2   :  { %v385_v1 = vld [vmem:[%s523_s1] sm:$0xff]   ;;  %344 = vmatprep.subr.bf16.mxu0 %v384_v0  ;;  %v387_v3 = vld [vmem:[%s523_s1 + $0x8] sm:$0xff]   ;;  %v389_v5 = vld [vmem:[%s523_s1 + $0x10] sm:$0xff]  }
   0x3   :  { %345 = vmatpush3.bf16.msra.mxu0 %v385_v1  ;;  %v390_v6 = vld [vmem:[%s523_s1 + $0x58] sm:$0xff]   ;;  %v392_v8 = vld [vmem:[%s523_s1 + $0x60] sm:$0xff]   ;;  %v394_v11 = vld [vmem:[%s523_s1 + $0x68] sm:$0xff]  }
   0x4   :  { %346 = vmatprep.subr.bf16.mxu0 %v386_v2  ;;  %v391_v7 = vld [vmem:[%s523_s1 + $0x18] sm:$0xff]   ;;  %v393_v9 = vld [vmem:[%s523_s1 + $0x20] sm:$0xff]   ;;  %v395_v12 = vld [vmem:[%s523_s1 + $0x28] sm:$0xff]  }
   0x5   :  { %v399_v10 = vld [vmem:[%s523_s1 + $0x80] sm:$0xff]   ;;  %v396_v13 = vld [vmem:[%s523_s1 + $0x70] sm:$0xff]   ;;  %v404_v15 = vld [vmem:[%s523_s1 + $0x88] sm:$0xff]  }
   0x6   :  { %376 = vmatprep.subr.bf16.mxu1 %v399_v10  ;;  %v403_v14 = vld [vmem:[%s524_s0 + $0x4] ss:$12 sps:$4 sm:$0xff]   ;;  %v405_v16 = vld [vmem:[%s524_s0 + $0x8] ss:$12 sps:$4 sm:$0xff]   ;;  %v406_v17 = vld [vmem:[%s524_s0 + $0x20] ss:$12 sps:$4 sm:$0xff]  }
   0x7   :  { %347 = vmatpush3.bf16.msra.mxu0 %v387_v3  ;;  %377 = vmatpush3.bf16.msra.mxu1 %v399_v10  ;;  %v397_v18 = vld [vmem:[%s523_s1 + $0x30] sm:$0xff]   ;;  %v398_v19 = vld [vmem:[%s523_s1 + $0x78] sm:$0xff]   ;;  %v401_v21 = vld [vmem:[%s524_s0] ss:$12 sps:$4 sm:$0xff]  }
   0x8   :  { %348 = vmatprep.subr.bf16.mxu0 %v388_v4  ;;  %243 = vmatprep.mubr.bf16.mxu0 %v403_v14  ;;  %v400_v20 = vld [vmem:[%s523_s1 + $0x38] sm:$0xff]   ;;  %v317_v30 = vld [vmem:[%s525_s2] ss:$0 sm:$0xff] }
   0x9   :  { %378 = vmatprep.subr.bf16.mxu1 %v404_v15  ;;  %380 = vmatprep.mubr.msk.bf16.mxu1 %vm204_vm0, %v405_v16  ;;  %v407_v22 = vld [vmem:[%s524_s0 + $0x1c] ss:$12 sps:$4 sm:$0xff]   ;;  %v409_v23 = vld [vmem:[%s524_s0 + $0x18] ss:$12 sps:$4 sm:$0xff]  }
   0xb   :  { %349 = vmatpush3.bf16.msra.mxu0 %v389_v5  ;;  %379 = vmatpush3.bf16.msra.mxu1 %v404_v15 }
   0xc   :  { %350 = vmatprep.subr.bf16.mxu0 %v390_v6 }
   0xe   :  { %381 = vmatmul.mubr.msk.bf16.vlgmr.msra.gmra.mrb[0].mxu1 %vm204_vm0, %v406_v17 }
   0xf   :  { %351 = vmatpush3.bf16.msra.mxu0 %v391_v7 }
  0x10   :  { %352 = vmatprep.subr.bf16.mxu0 %v392_v8 }
  0x13   :  { %353 = vmatpush3.bf16.msra.mxu0 %v393_v9 }
  0x14   :  { %354 = vmatprep.subr.bf16.mxu0 %v394_v11 }
  0x17   :  { %355 = vmatpush3.bf16.msra.mxu0 %v395_v12 }
  0x18   :  { %356 = vmatprep.subr.bf16.mxu0 %v396_v13 }
  0x1b   :  { %357 = vmatpush3.bf16.msra.mxu0 %v397_v18 }
  0x1c   :  { %358 = vmatprep.subr.bf16.mxu0 %v398_v19 }
  0x1f   :  { %359 = vmatpush3.bf16.msra.mxu0 %v400_v20 }
  0x22   :  { %244 = vmatmul.mubr.bf16.vlgmr.msra.gmra.mrb[0].mxu0 %v401_v21 }
  0x23   :  { %251 = vmatprep.mubr.bf16.mxu0 %v407_v22 }
  0x2a   :  { %252 = vmatmul.mubr.bf16.gmra.mrb[4].mxu0 %v409_v23 }
  0xe1   :  { %v382_v24 = vpop.f32.mrb[0].mxu1 }
  0xe2   :  { %v294_v25 = vpop.f32.mrb[1].mxu1 }
  0xe3   :  { %v383_v26 = vpop.f32.mrb[2].mxu1 }
  0xe4   :  { %v297_v27 = vpop.f32.mrb[3].mxu1 }
  0xf5   :  { %v360_v28 = vpop.f32.mrb[0].mxu0 }
  0xf6   :  { %v361_v29 = vpop.f32.mrb[1].mxu0 }
  0xf7   :  { %v362_v31 = vadd.f32 %v361_v29, %v360_v28  ;;  %v363_v32 = vpop.f32.mrb[2].mxu0 }
  0xf8   :  { %v364_v33 = vpop.f32.mrb[3].mxu0 }
  0xf9   :  { %v365_v34 = vadd.f32 %v364_v33, %v363_v32  ;;  %v246_v35 = vadd.f32 %v362_v31, %v317_v30 }
  0xfb   :  { %v295_v36 = vadd.f32 %v294_v25, %v246_v35  ;;  %v249_v37 = vadd.f32 %v365_v34, %v317_v30 }
  0xfd   :  { %309 = vst.msk [vmem:[%s526_s3] sm:$0xff] %vm204_vm0, %v295_v36  ;;  %v298_v38 = vadd.f32 %v297_v27, %v249_v37  ;;  %v366_v39 = vpop.f32.mrb[4].mxu0 }
  0xfe   :  { %v367_v40 = vpop.f32.mrb[5].mxu0 }
  0xff   :  { %310 = vst.msk [vmem:[%s526_s3 + $0x8] sm:$0xff] %vm204_vm0, %v298_v38  ;;  %v368_v41 = vadd.f32 %v367_v40, %v366_v39  ;;  %v369_v42 = vpop.f32.mrb[6].mxu0 }
 0x100   :  { %v370_v43 = vpop.f32.mrb[7].mxu0 }
 0x101   :  { %v254_v44 = vadd.f32 %v368_v41, %v317_v30  ;;  %v371_v45 = vadd.f32 %v370_v43, %v369_v42 }
 0x103   :  { %v303_v46 = vadd.f32 %v382_v24, %v254_v44  ;;  %v257_v47 = vadd.f32 %v371_v45, %v317_v30 }
 0x105   :  { %311 = vst.msk [vmem:[%s526_s3 + $0x10] sm:$0xff] %vm204_vm0, %v303_v46  ;;  %v306_v48 = vadd.f32 %v383_v26, %v257_v47 }
 0x107   :  { %312 = vst.msk [vmem:[%s526_s3 + $0x18] sm:$0xff] %vm204_vm0, %v306_v48 }

// kernel: vqvae_forward.12
= control target key start
LH: loop header
LB: loop body
LE: loop exit
PB: predicated region body
PF: predicated region fallthrough
CT: control target
= control target key end

     0   :  { %vm227_vm0 = vcmask 261120   ;;  %s418_s1 = inlined_call_operand.vmem [shape: bf16[256,32], index: 1, kind: input, shape index: {}]   ;;  %s419_s0 = inlined_call_operand.vmem [shape: bf16[32,256], index: 0, kind: input, shape index: {}]   ;;  %s420_s2 = inlined_call_operand.vmem [shape: f32[1,32], index: 2, kind: input, shape index: {}]   ;;  %s421_s3 = inlined_call_operand.vmem [shape: f32[32,32], index: 3, kind: output, shape index: {}]  }
   0x1   :  { %v301_v0 = vld [vmem:[%s418_s1 + $0x40] sm:$0xff]   ;;  %v303_v2 = vld [vmem:[%s418_s1 + $0x48] sm:$0xff]   ;;  %v305_v4 = vld [vmem:[%s418_s1 + $0x50] sm:$0xff]  }
   0x2   :  { %v302_v1 = vld [vmem:[%s418_s1] sm:$0xff]   ;;  %257 = vmatprep.subr.bf16.mxu0 %v301_v0  ;;  %285 = vmatprep.subr.bf16.mxu1 %v301_v0  ;;  %v304_v3 = vld [vmem:[%s418_s1 + $0x8] sm:$0xff]   ;;  %v306_v5 = vld [vmem:[%s418_s1 + $0x10] sm:$0xff]  }
   0x3   :  { %258 = vmatpush3.bf16.msra.mxu0 %v302_v1  ;;  %293 = vmatpush3.bf16.msra.mxu1 %v302_v1  ;;  %v307_v6 = vld [vmem:[%s418_s1 + $0x58] sm:$0xff]   ;;  %v309_v8 = vld [vmem:[%s418_s1 + $0x60] sm:$0xff]   ;;  %v311_v10 = vld [vmem:[%s418_s1 + $0x68] sm:$0xff]  }
   0x4   :  { %259 = vmatprep.subr.bf16.mxu0 %v303_v2  ;;  %286 = vmatprep.subr.bf16.mxu1 %v303_v2  ;;  %v308_v7 = vld [vmem:[%s418_s1 + $0x18] sm:$0xff]   ;;  %v310_v9 = vld [vmem:[%s418_s1 + $0x20] sm:$0xff]   ;;  %v312_v13 = vld [vmem:[%s418_s1 + $0x28] sm:$0xff]  }
   0x5   :  { %v319_v11 = vld [vmem:[%s419_s0 + $0x4] ss:$8 sps:$4 sm:$0xff]   ;;  %v322_v12 = vld [vmem:[%s419_s0 + $0x14] ss:$8 sps:$4 sm:$0xff]   ;;  %v317_v18 = vld [vmem:[%s419_s0] ss:$8 sps:$4 sm:$0xff]  }
   0x6   :  { %v313_v14 = vld [vmem:[%s418_s1 + $0x70] sm:$0xff]   ;;  %206 = vmatprep.mubr.bf16.mxu0 %v319_v11  ;;  %214 = vmatprep.mubr.bf16.mxu1 %v322_v12  ;;  %v315_v16 = vld [vmem:[%s418_s1 + $0x78] sm:$0xff]   ;;  %v236_v22 = vld [vmem:[%s420_s2] ss:$0 sm:$0xff] }
   0x7   :  { %260 = vmatpush3.bf16.msra.mxu0 %v304_v3  ;;  %294 = vmatpush3.bf16.msra.mxu1 %v304_v3  ;;  %v314_v15 = vld [vmem:[%s418_s1 + $0x30] sm:$0xff]   ;;  %v316_v17 = vld [vmem:[%s418_s1 + $0x38] sm:$0xff]  }
   0x8   :  { %261 = vmatprep.subr.bf16.mxu0 %v305_v4  ;;  %287 = vmatprep.subr.bf16.mxu1 %v305_v4  ;;  %v320_v19 = vld [vmem:[%s419_s0 + $0x10] ss:$8 sps:$4 sm:$0xff]  }
   0xb   :  { %262 = vmatpush3.bf16.msra.mxu0 %v306_v5  ;;  %295 = vmatpush3.bf16.msra.mxu1 %v306_v5 }
   0xc   :  { %263 = vmatprep.subr.bf16.mxu0 %v307_v6  ;;  %288 = vmatprep.subr.bf16.mxu1 %v307_v6 }
   0xf   :  { %264 = vmatpush3.bf16.msra.mxu0 %v308_v7  ;;  %296 = vmatpush3.bf16.msra.mxu1 %v308_v7 }
  0x10   :  { %265 = vmatprep.subr.bf16.mxu0 %v309_v8  ;;  %289 = vmatprep.subr.bf16.mxu1 %v309_v8 }
  0x13   :  { %266 = vmatpush3.bf16.msra.mxu0 %v310_v9  ;;  %297 = vmatpush3.bf16.msra.mxu1 %v310_v9 }
  0x14   :  { %267 = vmatprep.subr.bf16.mxu0 %v311_v10  ;;  %290 = vmatprep.subr.bf16.mxu1 %v311_v10 }
  0x17   :  { %268 = vmatpush3.bf16.msra.mxu0 %v312_v13  ;;  %298 = vmatpush3.bf16.msra.mxu1 %v312_v13 }
  0x18   :  { %269 = vmatprep.subr.bf16.mxu0 %v313_v14  ;;  %291 = vmatprep.subr.bf16.mxu1 %v313_v14 }
  0x1b   :  { %270 = vmatpush3.bf16.msra.mxu0 %v314_v15  ;;  %299 = vmatpush3.bf16.msra.mxu1 %v314_v15 }
  0x1c   :  { %271 = vmatprep.subr.bf16.mxu0 %v315_v16  ;;  %292 = vmatprep.subr.bf16.mxu1 %v315_v16 }
  0x1f   :  { %272 = vmatpush3.bf16.msra.mxu0 %v316_v17  ;;  %300 = vmatpush3.bf16.msra.mxu1 %v316_v17 }
  0x22   :  { %207 = vmatmul.mubr.bf16.vlgmr.msra.gmra.mrb[0].mxu0 %v317_v18  ;;  %215 = vmatmul.mubr.bf16.vlgmr.msra.gmra.mrb[0].mxu1 %v320_v19 }
  0xf5   :  { %v273_v20 = vpop.f32.mrb[0].mxu0  ;;  %v279_v21 = vpop.f32.mrb[0].mxu1 }
  0xf6   :  { %v274_v23 = vpop.f32.mrb[1].mxu0  ;;  %v280_v24 = vpop.f32.mrb[1].mxu1 }
  0xf7   :  { %v275_v25 = vadd.f32 %v274_v23, %v273_v20  ;;  %v281_v26 = vadd.f32 %v280_v24, %v279_v21  ;;  %v276_v27 = vpop.f32.mrb[2].mxu0  ;;  %v282_v28 = vpop.f32.mrb[2].mxu1 }
  0xf8   :  { %v277_v29 = vpop.f32.mrb[3].mxu0  ;;  %v283_v30 = vpop.f32.mrb[3].mxu1 }
  0xf9   :  { %v209_v31 = vadd.f32 %v275_v25, %v236_v22  ;;  %v217_v32 = vadd.f32 %v281_v26, %v236_v22  ;;  %v278_v33 = vadd.f32 %v277_v29, %v276_v27  ;;  %v284_v34 = vadd.f32 %v283_v30, %v282_v28 }
  0xfb   :  { %v223_v35 = vmax.f32 %v209_v31, 0.0  ;;  %v225_v36 = vmax.f32 %v217_v32, 0.0  ;;  %v212_v37 = vadd.f32 %v278_v33, %v236_v22  ;;  %v220_v38 = vadd.f32 %v284_v34, %v236_v22 }
  0xfd   :  { %228 = vst.msk [vmem:[%s421_s3] sm:$0xff] %vm227_vm0, %v223_v35  ;;  %230 = vst.msk [vmem:[%s421_s3 + $0x10] sm:$0xff] %vm227_vm0, %v225_v36  ;;  %v224_v39 = vmax.f32 %v212_v37, 0.0  ;;  %v226_v40 = vmax.f32 %v220_v38, 0.0 }
  0xff   :  { %229 = vst.msk [vmem:[%s421_s3 + $0x8] sm:$0xff] %vm227_vm0, %v224_v39  ;;  %231 = vst.msk [vmem:[%s421_s3 + $0x18] sm:$0xff] %vm227_vm0, %v226_v40 }

// kernel: vqvae_forward.14
= control target key start
LH: loop header
LB: loop body
LE: loop exit
PB: predicated region body
PF: predicated region fallthrough
CT: control target
= control target key end

     0   :  { %vm202_vm0 = vcmask 261120   ;;  %vm323_vm1 = vcmask 130048   ;;  %s626_s2 = inlined_call_operand.vmem [shape: bf16[288,16], index: 2, kind: input, shape index: {}]   ;;  %s627_s0 = inlined_call_operand.vmem [shape: bf16[32,288], index: 0, kind: input, shape index: {}]   ;;  %s628_s3 = inlined_call_operand.vmem [shape: bf16[16,32], index: 3, kind: input, shape index: {}]   ;;  %s629_s1 = inlined_call_operand.vmem [shape: f32[32,32], index: 1, kind: input, shape index: {}]   ;;  %s630_s4 = inlined_call_operand.vmem [shape: f32[32,32], index: 4, kind: output, shape index: {}]  }
   0x1   :  { %v469_v0 = vld [vmem:[%s626_s2 + $0x40] sm:$0xff]   ;;  %v471_v2 = vld [vmem:[%s626_s2 + $0x48] sm:$0xff]   ;;  %v473_v4 = vld [vmem:[%s626_s2 + $0x50] sm:$0xff]  }
   0x2   :  { %v470_v1 = vld [vmem:[%s626_s2] sm:$0xff]   ;;  %420 = vmatprep.subr.bf16.mxu0 %v469_v0  ;;  %v472_v3 = vld [vmem:[%s626_s2 + $0x8] sm:$0xff]   ;;  %v474_v5 = vld [vmem:[%s626_s2 + $0x10] sm:$0xff]  }
   0x3   :  { %421 = vmatpush3.bf16.msra.mxu0 %v470_v1  ;;  %v475_v6 = vld [vmem:[%s626_s2 + $0x58] sm:$0xff]   ;;  %v477_v8 = vld [vmem:[%s626_s2 + $0x60] sm:$0xff]   ;;  %v479_v11 = vld [vmem:[%s626_s2 + $0x68] sm:$0xff]  }
   0x4   :  { %422 = vmatprep.subr.bf16.mxu0 %v471_v2  ;;  %v476_v7 = vld [vmem:[%s626_s2 + $0x18] sm:$0xff]   ;;  %v483_v9 = vld [vmem:[%s626_s2 + $0x80] sm:$0xff]   ;;  %v480_v12 = vld [vmem:[%s626_s2 + $0x28] sm:$0xff]  }
   0x5   :  { %v478_v10 = vld [vmem:[%s626_s2 + $0x20] sm:$0xff]   ;;  %455 = vmatprep.subr.bf16.mxu1 %v483_v9  ;;  %v486_v13 = vld [vmem:[%s626_s2 + $0x88] sm:$0xff]   ;;  %v481_v14 = vld [vmem:[%s626_s2 + $0x70] sm:$0xff]  }
   0x6   :  { %456 = vmatpush3.bf16.msra.mxu1 %v483_v9  ;;  %v489_v15 = vld [vmem:[%s627_s0 + $0x4] ss:$12 sps:$4 sm:$0xff]   ;;  %v490_v16 = vld [vmem:[%s627_s0 + $0x8] ss:$12 sps:$4 sm:$0xff]   ;;  %v491_v17 = vld [vmem:[%s627_s0 + $0x20] ss:$12 sps:$4 sm:$0xff]  }
   0x7   :  { %423 = vmatpush3.bf16.msra.mxu0 %v472_v3  ;;  %457 = vmatprep.subr.bf16.mxu1 %v486_v13  ;;  %v482_v18 = vld [vmem:[%s626_s2 + $0x30] sm:$0xff]   ;;  %v484_v19 = vld [vmem:[%s626_s2 + $0x78] sm:$0xff]   ;;  %v487_v21 = vld [vmem:[%s627_s0] ss:$12 sps:$4 sm:$0xff]  }
   0x8   :  { %424 = vmatprep.subr.bf16.mxu0 %v473_v4  ;;  %241 = vmatprep.mubr.bf16.mxu0 %v489_v15  ;;  %v485_v20 = vld [vmem:[%s626_s2 + $0x38] sm:$0xff]   ;;  %v495_v24 = vld [vmem:[%s628_s3] sm:$0xff]   ;;  %v315_v51 = vld [vmem:[%s629_s1 + $0x10] sm:$0xff] }
   0x9   :  { %459 = vmatprep.mubr.msk.bf16.mxu1 %vm202_vm0, %v490_v16  ;;  %v492_v22 = vld [vmem:[%s627_s0 + $0x1c] ss:$12 sps:$4 sm:$0xff]   ;;  %v494_v23 = vld [vmem:[%s627_s0 + $0x18] ss:$12 sps:$4 sm:$0xff]  }
   0xa   :  { %458 = vmatpush3.bf16.msra.mxu1 %v486_v13  ;;  %v313_v52 = vld [vmem:[%s629_s1] sm:$0xff]  ;;  %v316_v54 = vld [vmem:[%s629_s1 + $0x18] sm:$0xff]  ;;  %v314_v57 = vld [vmem:[%s629_s1 + $0x8] sm:$0xff] }
   0xb   :  { %425 = vmatpush3.bf16.msra.mxu0 %v474_v5  ;;  %463 = vmatprep.subr.bf16.mxu1 %v495_v24 }
   0xc   :  { %426 = vmatprep.subr.bf16.mxu0 %v475_v6 }
   0xd   :  { %460 = vmatmul.mubr.msk.bf16.vlgmr.msra.gmra.mrb[0].mxu1 %vm202_vm0, %v491_v17 }
   0xe   :  { %464 = vmatpush3.bf16.msra.mxu1 %v495_v24 }
   0xf   :  { %427 = vmatpush3.bf16.msra.mxu0 %v476_v7 }
  0x10   :  { %428 = vmatprep.subr.bf16.mxu0 %v477_v8 }
  0x13   :  { %429 = vmatpush3.bf16.msra.mxu0 %v478_v10 }
  0x14   :  { %430 = vmatprep.subr.bf16.mxu0 %v479_v11 }
  0x17   :  { %431 = vmatpush3.bf16.msra.mxu0 %v480_v12 }
  0x18   :  { %432 = vmatprep.subr.bf16.mxu0 %v481_v14 }
  0x1b   :  { %433 = vmatpush3.bf16.msra.mxu0 %v482_v18 }
  0x1c   :  { %434 = vmatprep.subr.bf16.mxu0 %v484_v19 }
  0x1f   :  { %435 = vmatpush3.bf16.msra.mxu0 %v485_v20 }
  0x22   :  { %242 = vmatmul.mubr.bf16.vlgmr.msra.gmra.mrb[0].mxu0 %v487_v21 }
  0x23   :  { %249 = vmatprep.mubr.bf16.mxu0 %v492_v22 }
  0x2a   :  { %250 = vmatmul.mubr.bf16.gmra.mrb[4].mxu0 %v494_v23 }
  0xe0   :  { %v461_v25 = vpop.f32.mrb[0].mxu1 }
  0xe1   :  { %v292_v26 = vpop.f32.mrb[1].mxu1 }
  0xe2   :  { %v462_v27 = vpop.f32.mrb[2].mxu1 }
  0xe3   :  { %v295_v28 = vpop.f32.mrb[3].mxu1 }
  0xf5   :  { %v436_v29 = vpop.f32.mrb[0].mxu0 }
  0xf6   :  { %v437_v30 = vpop.f32.mrb[1].mxu0 }
  0xf7   :  { %v438_v31 = vadd.f32 %v437_v30, %v436_v29  ;;  %v439_v32 = vpop.f32.mrb[2].mxu0 }
  0xf8   :  { %v440_v33 = vpop.f32.mrb[3].mxu0 }
  0xf9   :  { %v441_v34 = vadd.f32 %v440_v33, %v439_v32  ;;  %v293_v35 = vadd.f32 %v438_v31, %v292_v26 }
  0xfb   :  { %v296_v36 = vadd.f32 %v441_v34, %v295_v28  ;;  %v307_v37 = vmax.f32 %v293_v35, 0.0 }
  0xfd   :  { %v308_v38 = vmax.f32 %v296_v36, 0.0  ;;  %v442_v39 = vpop.f32.mrb[4].mxu0 }
  0xfe   :  { %v443_v40 = vpop.f32.mrb[5].mxu0 }
  0xff   :  { %v311_v41 = vpack.c.bf16 %v308_v38, %v307_v37  ;;  %v444_v42 = vadd.f32 %v443_v40, %v442_v39  ;;  %v445_v43 = vpop.f32.mrb[6].mxu0 }
 0x100   :  { %v446_v44 = vpop.f32.mrb[7].mxu0 }
 0x101   :  { %v301_v45 = vadd.f32 %v461_v25, %v444_v42  ;;  %v447_v46 = vadd.f32 %v446_v44, %v445_v43  ;;  %465 = vmatprep.mubr.msk.bf16.mxu1 %vm323_vm1, %v311_v41 }
 0x103   :  { %v304_v47 = vadd.f32 %v462_v27, %v447_v46  ;;  %v309_v48 = vmax.f32 %v301_v45, 0.0 }
 0x105   :  { %v310_v49 = vmax.f32 %v304_v47, 0.0 }
 0x107   :  { %v312_v50 = vpack.c.bf16 %v310_v49, %v309_v48 }
 0x109   :  { %466 = vmatmul.mubr.msk.bf16.vlgmr.msra.gmra.mrb[4].mxu1 %vm323_vm1, %v312_v50 }
 0x1dc   :  { %v467_v53 = vpop.f32.mrb[4].mxu1 }
 0x1dd   :  { %v381_v55 = vadd.f32 %v467_v53, %v315_v51  ;;  %v364_v56 = vpop.f32.mrb[5].mxu1 }
 0x1de   :  { %v379_v58 = vadd.f32 %v364_v56, %v313_v52  ;;  %v468_v59 = vpop.f32.mrb[6].mxu1 }
 0x1df   :  { %385 = vst.msk [vmem:[%s630_s4 + $0x10] sm:$0xff] %vm202_vm0, %v381_v55  ;;  %v382_v60 = vadd.f32 %v468_v59, %v316_v54  ;;  %v367_v61 = vpop.f32.mrb[7].mxu1 }
 0x1e0   :  { %383 = vst.msk [vmem:[%s630_s4] sm:$0xff] %vm202_vm0, %v379_v58  ;;  %v380_v62 = vadd.f32 %v367_v61, %v314_v57 }
 0x1e1   :  { %386 = vst.msk [vmem:[%s630_s4 + $0x18] sm:$0xff] %vm202_vm0, %v382_v60 }
 0x1e2   :  { %384 = vst.msk [vmem:[%s630_s4 + $0x8] sm:$0xff] %vm202_vm0, %v380_v62 }

// kernel: vqvae_forward.17
= control target key start
LH: loop header
LB: loop body
LE: loop exit
PB: predicated region body
PF: predicated region fallthrough
CT: control target
= control target key end

     0   :  { %v231_v0 = vmov 0   ;;  %vm116_vm0 = vcmask 130048   ;;  %vm172_vm1 = vcmask 261120   ;;  %s306_s1 = inlined_call_operand.vmem [shape: bf16[144,32], index: 1, kind: input, shape index: {}]   ;;  %s307_s0 = inlined_call_operand.vmem [shape: bf16[32,144], index: 0, kind: input, shape index: {}]   ;;  %s308_s2 = inlined_call_operand.vmem [shape: f32[1,32], index: 2, kind: input, shape index: {}]   ;;  %s309_s3 = inlined_call_operand.vmem [shape: f32[32,32], index: 3, kind: output, shape index: {}]  }
   0x1   :  { %123 = vmatprep.subr.bf16.mxu0 %v231_v0  ;;  %197 = vmatprep.subr.bf16.mxu1 %v231_v0  ;;  %v216_v1 = vld [vmem:[%s306_s1] sm:$0xff]   ;;  %v217_v2 = vld [vmem:[%s306_s1 + $0x8] sm:$0xff]   ;;  %v218_v3 = vld [vmem:[%s306_s1 + $0x10] sm:$0xff]  }
   0x2   :  { %124 = vmatpush1.bf16.msra.mxu0 %v216_v1  ;;  %206 = vmatpush1.bf16.msra.mxu1 %v216_v1  ;;  %v219_v4 = vld [vmem:[%s306_s1 + $0x18] sm:$0xff]   ;;  %v227_v5 = vld [vmem:[%s307_s0 + $0x4] ss:$8 sps:$4 sm:$0xff]   ;;  %v222_v9 = vld [vmem:[%s306_s1 + $0x30] sm:$0xff]  }
   0x3   :  { %125 = vmatprep.subr.bf16.mxu0 %v231_v0  ;;  %198 = vmatprep.subr.bf16.mxu1 %v231_v0  ;;  %v230_v6 = vld [vmem:[%s307_s0 + $0x14] ss:$8 sps:$4 sm:$0xff]   ;;  %v220_v7 = vld [vmem:[%s306_s1 + $0x20] sm:$0xff]   ;;  %v221_v8 = vld [vmem:[%s306_s1 + $0x28] sm:$0xff]  }
   0x4   :  { %195 = vmatprep.mubr.msk.bf16.mxu0 %vm116_vm0, %v227_v5  ;;  %196 = vmatprep.mubr.msk.bf16.mxu1 %vm116_vm0, %v230_v6  ;;  %v223_v10 = vld [vmem:[%s306_s1 + $0x38] sm:$0xff]   ;;  %v224_v11 = vld [vmem:[%s306_s1 + $0x40] sm:$0xff]  }
   0x5   :  { %v225_v12 = vld [vmem:[%s307_s0] ss:$8 sps:$4 sm:$0xff]   ;;  %v228_v13 = vld [vmem:[%s307_s0 + $0x10] ss:$8 sps:$4 sm:$0xff]  }
   0x6   :  { %126 = vmatpush1.bf16.msra.mxu0 %v217_v2  ;;  %207 = vmatpush1.bf16.msra.mxu1 %v217_v2  ;;  %v181_v14 = vld [vmem:[%s308_s2] ss:$0 sm:$0xff] }
   0x7   :  { %127 = vmatprep.subr.bf16.mxu0 %v231_v0  ;;  %199 = vmatprep.subr.bf16.mxu1 %v231_v0 }
   0xa   :  { %128 = vmatpush1.bf16.msra.mxu0 %v218_v3  ;;  %208 = vmatpush1.bf16.msra.mxu1 %v218_v3 }
   0xb   :  { %129 = vmatprep.subr.bf16.mxu0 %v231_v0  ;;  %200 = vmatprep.subr.bf16.mxu1 %v231_v0 }
   0xe   :  { %130 = vmatpush1.bf16.msra.mxu0 %v219_v4  ;;  %209 = vmatpush1.bf16.msra.mxu1 %v219_v4 }
   0xf   :  { %131 = vmatprep.subr.bf16.mxu0 %v231_v0  ;;  %201 = vmatprep.subr.bf16.mxu1 %v231_v0 }
  0x12   :  { %132 = vmatpush1.bf16.msra.mxu0 %v220_v7  ;;  %210 = vmatpush1.bf16.msra.mxu1 %v220_v7 }
  0x13   :  { %133 = vmatprep.subr.bf16.mxu0 %v231_v0  ;;  %202 = vmatprep.subr.bf16.mxu1 %v231_v0 }
  0x16   :  { %134 = vmatpush1.bf16.msra.mxu0 %v221_v8  ;;  %211 = vmatpush1.bf16.msra.mxu1 %v221_v8 }
  0x17   :  { %135 = vmatprep.subr.bf16.mxu0 %v231_v0  ;;  %203 = vmatprep.subr.bf16.mxu1 %v231_v0 }
  0x1a   :  { %136 = vmatpush1.bf16.msra.mxu0 %v222_v9  ;;  %212 = vmatpush1.bf16.msra.mxu1 %v222_v9 }
  0x1b   :  { %137 = vmatprep.subr.bf16.mxu0 %v231_v0  ;;  %204 = vmatprep.subr.bf16.mxu1 %v231_v0 }
  0x1e   :  { %138 = vmatpush1.bf16.msra.mxu0 %v223_v10  ;;  %213 = vmatpush1.bf16.msra.mxu1 %v223_v10 }
  0x1f   :  { %139 = vmatprep.subr.bf16.mxu0 %v231_v0  ;;  %205 = vmatprep.subr.bf16.mxu1 %v231_v0 }
  0x22   :  { %140 = vmatpush1.bf16.msra.mxu0 %v224_v11  ;;  %214 = vmatpush1.bf16.msra.mxu1 %v224_v11 }
  0x25   :  { %156 = vmatmul.mubr.bf16.vlgmr.msra.gmra.mrb[0].mxu0 %v225_v12  ;;  %164 = vmatmul.mubr.bf16.vlgmr.msra.gmra.mrb[0].mxu1 %v228_v13 }
  0xf8   :  { %v157_v15 = vpop.f32.mrb[0].mxu0  ;;  %v165_v16 = vpop.f32.mrb[0].mxu1 }
  0xf9   :  { %v158_v17 = vadd.f32 %v181_v14, %v157_v15  ;;  %v166_v18 = vadd.f32 %v181_v14, %v165_v16  ;;  %v159_v19 = vpop.f32.mrb[1].mxu0  ;;  %v167_v20 = vpop.f32.mrb[1].mxu1 }
  0xfa   :  { %v160_v21 = vpop.f32.mrb[2].mxu0  ;;  %v168_v22 = vpop.f32.mrb[2].mxu1 }
  0xfb   :  { %173 = vst.msk [vmem:[%s309_s3] sm:$0xff] %vm172_vm1, %v158_v17  ;;  %175 = vst.msk [vmem:[%s309_s3 + $0x10] sm:$0xff] %vm172_vm1, %v166_v18  ;;  %v161_v23 = vadd.f32 %v181_v14, %v160_v21  ;;  %v169_v24 = vadd.f32 %v181_v14, %v168_v22  ;;  %v162_v25 = vpop.f32.mrb[3].mxu0  ;;  %v170_v26 = vpop.f32.mrb[3].mxu1 }
  0xfd   :  { %174 = vst.msk [vmem:[%s309_s3 + $0x8] sm:$0xff] %vm172_vm1, %v161_v23  ;;  %176 = vst.msk [vmem:[%s309_s3 + $0x18] sm:$0xff] %vm172_vm1, %v169_v24 }

// kernel: vqvae_forward.16
= control target key start
LH: loop header
LB: loop body
LE: loop exit
PB: predicated region body
PF: predicated region fallthrough
CT: control target
= control target key end

     0   :  { %vm160_vm0 = vcmask 130048   ;;  %vm42_vm1 = vcmask 261120   ;;  %s1055_s1 = inlined_call_operand.vmem [shape: f32[32,16], index: 1, kind: input, shape index: {}]   ;;  %s1056_s0 = inlined_call_operand.vmem [shape: f32[32,32], index: 0, kind: input, shape index: {}]   ;;  %s1057_s3 = inlined_call_operand.vmem [shape: f32[128,16], index: 3, kind: input, shape index: {}]   ;;  %s1058_s2 = inlined_call_operand.vmem [shape: f32[1,16], index: 2, kind: input, shape index: {}]   ;;  %s1059_s4 = inlined_call_operand.vmem [shape: f32[1,128], index: 4, kind: input, shape index: {}]   ;;  %s1060_s6 = inlined_call_operand.vmem [shape: f32[1,1,128], index: 6, kind: output, shape index: {1}]   ;;  %s1061_s5 = inlined_call_operand.vmem [shape: f32[32,16], index: 5, kind: output, shape index: {0}]   ;;  %s1062_s7 = inlined_call_operand.vmem [shape: f32[1,1,128], index: 7, kind: output, shape index: {2}]  }
   0x1   :  { %v31_v0 = vld [vmem:[%s1055_s1] sm:$0xff]  ;;  %v32_v1 = vld [vmem:[%s1055_s1 + $0x8] sm:$0xff]  ;;  %v33_v2 = vld [vmem:[%s1055_s1 + $0x10] sm:$0xff] }
   0x2   :  { %v733_v3 = vpack.c.bf16 %v32_v1, %v31_v0  ;;  %v34_v4 = vld [vmem:[%s1055_s1 + $0x18] sm:$0xff]  ;;  %v23_v5 = vld [vmem:[%s1056_s0] sm:$0xff]  ;;  %v141_v9 = vld [vmem:[%s1057_s3 + $0x8] sm:$0xff] }
   0x3   :  { %v737_v6 = vpack.c.bf16 %v34_v4, %v33_v2  ;;  %v27_v7 = vmax.f32 %v23_v5, 0.0  ;;  %v140_v8 = vld [vmem:[%s1057_s3] sm:$0xff]  ;;  %vm890_vm2 = vmpackc.low %vm160_vm0, %vm160_vm0  ;;  %v142_v11 = vld [vmem:[%s1057_s3 + $0x10] sm:$0xff] }
   0x4   :  { %734 = vmatprep.subr.bf16.mxu0 %v733_v3  ;;  %v24_v12 = vld [vmem:[%s1056_s0 + $0x8] sm:$0xff]  ;;  %v741_v13 = vpack.c.bf16 %v141_v9, %v140_v8  ;;  %v143_v14 = vld [vmem:[%s1057_s3 + $0x18] sm:$0xff]  ;;  %v25_v15 = vld [vmem:[%s1056_s0 + $0x10] sm:$0xff] }
   0x5   :  { %736 = vmatpush3.bf16.msra.mxu0 %v733_v3  ;;  %651 = vmatprep.mubr.msk.f32.mxu0 %vm42_vm1, %v27_v7  ;;  %v747_v16 = vpack.c.bf16 %v143_v14, %v142_v11  ;;  %v28_v17 = vmax.f32 %v24_v12, 0.0  ;;  %v29_v18 = vmax.f32 %v25_v15, 0.0  ;;  %v26_v19 = vld [vmem:[%s1056_s0 + $0x18] sm:$0xff]  ;;  %v144_v20 = vld [vmem:[%s1057_s3 + $0x20] sm:$0xff]  ;;  %v145_v21 = vld [vmem:[%s1057_s3 + $0x28] sm:$0xff] }
   0x6   :  { %738 = vmatprep.subr.bf16.mxu0 %v737_v6  ;;  %743 = vmatprep.subr.msk.bf16.mxu1 %vm890_vm2, %v741_v13  ;;  %v30_v22 = vmax.f32 %v26_v19, 0.0  ;;  %v753_v23 = vpack.c.bf16 %v145_v21, %v144_v20  ;;  %v146_v24 = vld [vmem:[%s1057_s3 + $0x30] sm:$0xff]  ;;  %v147_v25 = vld [vmem:[%s1057_s3 + $0x38] sm:$0xff]  ;;  %v148_v27 = vld [vmem:[%s1057_s3 + $0x40] sm:$0xff] }
   0x7   :  { %746 = vmatpush3.bf16.xpose.msk.msra.mxu1 %vm890_vm2, %v741_v13  ;;  %v759_v26 = vpack.c.bf16 %v147_v25, %v146_v24  ;;  %v149_v28 = vld [vmem:[%s1057_s3 + $0x48] sm:$0xff]  ;;  %v150_v30 = vld [vmem:[%s1057_s3 + $0x50] sm:$0xff]  ;;  %v151_v31 = vld [vmem:[%s1057_s3 + $0x58] sm:$0xff] }
   0x8   :  { %749 = vmatprep.subr.msk.bf16.mxu1 %vm890_vm2, %v747_v16  ;;  %v765_v29 = vpack.c.bf16 %v149_v28, %v148_v27  ;;  %v771_v32 = vpack.c.bf16 %v151_v31, %v150_v30  ;;  %v152_v33 = vld [vmem:[%s1057_s3 + $0x60] sm:$0xff]  ;;  %v153_v34 = vld [vmem:[%s1057_s3 + $0x68] sm:$0xff]  ;;  %v154_v36 = vld [vmem:[%s1057_s3 + $0x70] sm:$0xff] }
   0x9   :  { %740 = vmatpush3.bf16.msra.mxu0 %v737_v6  ;;  %v777_v35 = vpack.c.bf16 %v153_v34, %v152_v33  ;;  %v155_v37 = vld [vmem:[%s1057_s3 + $0x78] sm:$0xff]  ;;  %v561_v39 = vld [vmem:[%s1058_s2] ss:$0 sm:$0xff] }
   0xa   :  { %790 = vmatprep.subr.bf16.mxu0 %v741_v13  ;;  %v783_v38 = vpack.c.bf16 %v155_v37, %v154_v36  ;;  %v586_v59 = vld [vmem:[%s1059_s4] ss:$0 sm:$0xff] }
   0xc   :  { %652 = vmatmul.mubr.msk.f32.vlgmr.msra.gmra.mrb[0].mxu0 %vm42_vm1, %v28_v17 }
   0xd   :  { %654 = vmatprep.mubr.msk.f32.mxu0 %vm42_vm1, %v29_v18  ;;  %792 = vmatpush3.bf16.msra.mxu0 %v741_v13  ;;  %v337_v13 = vlaneseq }
   0xe   :  { %794 = vmatprep.subr.bf16.mxu0 %v747_v16 }
   0xf   :  { %752 = vmatpush3.bf16.xpose.msk.msra.mxu1 %vm890_vm2, %v747_v16  ;;  %v1015_v14 = vand.u32 127, %v337_v13 }
  0x10   :  { %655 = vmatmul.mubr.msk.f32.gmra.mrb[2].mxu0 %vm42_vm1, %v30_v22  ;;  %755 = vmatprep.subr.msk.bf16.mxu1 %vm890_vm2, %v753_v23 }
  0x11   :  { %796 = vmatpush3.bf16.msra.mxu0 %v747_v16 }
  0x12   :  { %798 = vmatprep.subr.bf16.mxu0 %v753_v23 }
  0x15   :  { %800 = vmatpush3.bf16.msra.mxu0 %v753_v23 }
  0x16   :  { %802 = vmatprep.subr.bf16.mxu0 %v759_v26 }
  0x17   :  { %758 = vmatpush3.bf16.xpose.msk.msra.mxu1 %vm890_vm2, %v753_v23 }
  0x18   :  { %761 = vmatprep.subr.msk.bf16.mxu1 %vm890_vm2, %v759_v26 }
  0x19   :  { %804 = vmatpush3.bf16.msra.mxu0 %v759_v26 }
  0x1a   :  { %806 = vmatprep.subr.bf16.mxu0 %v765_v29 }
  0x1d   :  { %808 = vmatpush3.bf16.msra.mxu0 %v765_v29 }
  0x1e   :  { %810 = vmatprep.subr.bf16.mxu0 %v771_v32 }
  0x1f   :  { %764 = vmatpush3.bf16.xpose.msk.msra.mxu1 %vm890_vm2, %v759_v26 }
  0x20   :  { %767 = vmatprep.subr.msk.bf16.mxu1 %vm890_vm2, %v765_v29 }
  0x21   :  { %812 = vmatpush3.bf16.msra.mxu0 %v771_v32 }
  0x22   :  { %814 = vmatprep.subr.bf16.mxu0 %v777_v35 }
  0x25   :  { %816 = vmatpush3.bf16.msra.mxu0 %v777_v35 }
  0x26   :  { %818 = vmatprep.subr.bf16.mxu0 %v783_v38 }
  0x27   :  { %770 = vmatpush3.bf16.xpose.msk.msra.mxu1 %vm890_vm2, %v765_v29 }
  0x28   :  { %773 = vmatprep.subr.msk.bf16.mxu1 %vm890_vm2, %v771_v32 }
  0x29   :  { %820 = vmatpush3.bf16.msra.mxu0 %v783_v38 }
  0x2f   :  { %776 = vmatpush3.bf16.xpose.msk.msra.mxu1 %vm890_vm2, %v771_v32 }
  0x30   :  { %779 = vmatprep.subr.msk.bf16.mxu1 %vm890_vm2, %v777_v35 }
  0x37   :  { %782 = vmatpush3.bf16.xpose.msk.msra.mxu1 %vm890_vm2, %v777_v35 }
  0x38   :  { %785 = vmatprep.subr.msk.bf16.mxu1 %vm890_vm2, %v783_v38 }
  0x3f   :  { %788 = vmatpush3.bf16.xpose.msk.msra.mxu1 %vm890_vm2, %v783_v38 }
  0xdf   :  { %v653_v40 = vpop.f32.mrb[0].mxu0 }
  0xe0   :  { %v121_v41 = vpop.f32.mrb[1].mxu0  ;;  %v984_v42 = vadd.f32 %v653_v40, %v561_v39 }
  0xe1   :  { %v986_v43 = vadd.f32 %v561_v39, %v121_v41 }
  0xe2   :  { %v157_v50 = vmul.f32 %v984_v42, %v984_v42 }
  0xe3   :  { %v656_v44 = vpop.f32.mrb[2].mxu0  ;;  %689 = vmatprep.mubr.msk.f32.mxu1 %vm160_vm0, %v986_v43  ;;  %v156_v45 = vmul.f32 %v986_v43, %v986_v43 }
  0xe4   :  { %v131_v46 = vpop.f32.mrb[3].mxu0  ;;  %690 = vmatmul.mubr.msk.f32.vlgmr.msra.gmra.mrb[0].mxu1 %vm160_vm0, %v984_v42  ;;  %v994_v47 = vadd.f32 %v656_v44, %v561_v39  ;;  %v164_v53 = vsel %vm160_vm0, %v157_v50, 0.0 }
  0xe5   :  { %v996_v48 = vadd.f32 %v561_v39, %v131_v46  ;;  %v161_v49 = vsel %vm160_vm0, %v156_v45, 0.0 }
  0xe6   :  { %162 = vadd.xlane.f32.xlu0 %v161_v49  ;;  %v159_v54 = vmul.f32 %v994_v47, %v994_v47 }
  0xe7   :  { %692 = vmatprep.mubr.msk.f32.mxu1 %vm160_vm0, %v996_v48  ;;  %v158_v51 = vmul.f32 %v996_v48, %v996_v48 }
  0xe8   :  { %693 = vmatmul.mubr.msk.f32.gmra.mrb[2].mxu1 %vm160_vm0, %v994_v47  ;;  %v170_v55 = vsel %vm160_vm0, %v159_v54, 0.0 }
  0xe9   :  { %v167_v52 = vsel %vm160_vm0, %v158_v51, 0.0 }
  0xea   :  { %168 = vadd.xlane.f32.xlu1 %v167_v52  ;;  %165 = vadd.xlane.f32.xlu0 %v164_v53 }
  0xee   :  { %171 = vadd.xlane.f32.xlu1 %v170_v55 }
 0x173   :  { %v163_v56 = vpop.xlane.xlu0 %162 }
 0x174   :  { %v325_v0 = vadd.f32 %v586_v59, %v163_v56 }
 0x177   :  { %v169_v57 = vpop.xlane.xlu1 %168  ;;  %v166_v58 = vpop.xlane.xlu0 %165 }
 0x178   :  { %v326_v61 = vadd.f32 %v586_v59, %v166_v58  ;;  %v327_v9 = vadd.f32 %v586_v59, %v169_v57 }
 0x17b   :  { %v172_v1 = vpop.xlane.xlu1 %171 }
 0x17c   :  { %v328_v6 = vadd.f32 %v586_v59, %v172_v1 }
 0x1b7   :  { %v691_v60 = vpop.f32.mrb[0].mxu1 }
 0x1b8   :  { %v330_v62 = vmul.f32 2.0, %v691_v60  ;;  %v299_v63 = vpop.f32.mrb[1].mxu1 }
 0x1b9   :  { %v329_v2 = vmul.f32 2.0, %v299_v63 }
 0x1ba   :  { %v334_v3 = vsub.f32 %v326_v61, %v330_v62 }
 0x1bb   :  { %v694_v4 = vpop.f32.mrb[2].mxu1  ;;  %v333_v5 = vsub.f32 %v325_v0, %v329_v2 }
 0x1bc   :  { %v332_v7 = vmul.f32 2.0, %v694_v4  ;;  %v309_v8 = vpop.f32.mrb[3].mxu1  ;;  %341 = vmin.xlane.f32.xlu1 %v334_v3  ;;  %v825_v4 = vmov 0.0  }
 0x1bd   :  { %v331_v10 = vmul.f32 2.0, %v309_v8  ;;  %339 = vmin.xlane.f32.xlu0 %v333_v5 }
 0x1be   :  { %v336_v11 = vsub.f32 %v328_v6, %v332_v7 }
 0x1bf   :  { %v335_v12 = vsub.f32 %v327_v9, %v331_v10  ;;  %v826_v9 = vmov 1.0  }
 0x1c0   :  { %345 = vmin.xlane.f32.xlu1 %v336_v11 }
 0x1c1   :  { %343 = vmin.xlane.f32.xlu0 %v335_v12 }
 0x249   :  { %v342_v15 = vpop.xlane.xlu1 %341 }
 0x24a   :  { %vm348_vm3 = vcmp.eq.f32.partialorder %v334_v3, %v342_v15  ;;  %v340_v16 = vpop.xlane.xlu0 %339 }
 0x24b   :  { %v352_v17 = vsel %vm348_vm3, %v1015_v14, 128  ;;  %vm347_vm4 = vcmp.eq.f32.partialorder %v333_v5, %v340_v16 }
 0x24c   :  { %v351_v18 = vsel %vm347_vm4, %v1015_v14, 128  ;;  %v370_v19 = vshra.s32 %v352_v17, 16  ;;  %v369_v31 = vand.u32 65535, %v352_v17 }
 0x24d   :  { %v346_v20 = vpop.xlane.xlu1 %345  ;;  %v356_v21 = vshra.s32 %v351_v18, 16  ;;  %v355_v32 = vand.u32 65535, %v351_v18 }
 0x24e   :  { %vm350_vm5 = vcmp.eq.f32.partialorder %v336_v11, %v346_v20  ;;  %v344_v22 = vpop.xlane.xlu0 %343  ;;  %v372_v23 = vcvt.s32.f32 %v370_v19  ;;  %v371_v35 = vcvt.s32.f32 %v369_v31 }
 0x24f   :  { %v354_v24 = vsel %vm350_vm5, %v1015_v14, 128  ;;  %vm349_vm6 = vcmp.eq.f32.partialorder %v335_v12, %v344_v22  ;;  %v358_v25 = vcvt.s32.f32 %v356_v21  ;;  %v357_v38 = vcvt.s32.f32 %v355_v32 }
 0x250   :  { %v353_v26 = vsel %vm349_vm6, %v1015_v14, 128  ;;  %373 = vmin.xlane.f32.xlu1 %v372_v23  ;;  %v398_v27 = vshra.s32 %v354_v24, 16  ;;  %v397_v33 = vand.u32 65535, %v354_v24 }
 0x251   :  { %359 = vmin.xlane.f32.xlu0 %v358_v25  ;;  %v384_v28 = vshra.s32 %v353_v26, 16  ;;  %v383_v36 = vand.u32 65535, %v353_v26 }
 0x252   :  { %v400_v29 = vcvt.s32.f32 %v398_v27  ;;  %v399_v44 = vcvt.s32.f32 %v397_v33 }
 0x253   :  { %v386_v30 = vcvt.s32.f32 %v384_v28  ;;  %v385_v46 = vcvt.s32.f32 %v383_v36 }
 0x254   :  { %401 = vmin.xlane.f32.xlu1 %v400_v29 }
 0x255   :  { %387 = vmin.xlane.f32.xlu0 %v386_v30 }
 0x2dd   :  { %v374_v34 = vpop.xlane.xlu1 %373 }
 0x2de   :  { %v360_v37 = vpop.xlane.xlu0 %359  ;;  %vm375_vm7 = vcmp.eq.f32.partialorder %v372_v23, %v374_v34  ;;  %v380_v51 = vcvt.f32.s32 %v374_v34 }
 0x2df   :  { %v376_v39 = vsel %vm375_vm7, %v371_v35, inf  ;;  %vm361_vm8 = vcmp.eq.f32.partialorder %v358_v25, %v360_v37  ;;  %v366_v52 = vcvt.f32.s32 %v360_v37 }
 0x2e0   :  { %377 = vmin.xlane.f32.xlu1 %v376_v39  ;;  %v362_v40 = vsel %vm361_vm8, %v357_v38, inf  ;;  %v381_v54 = vshll.u32 %v380_v51, 16 }
 0x2e1   :  { %v402_v41 = vpop.xlane.xlu1 %401  ;;  %363 = vmin.xlane.f32.xlu0 %v362_v40  ;;  %v367_v58 = vshll.u32 %v366_v52, 16 }
 0x2e2   :  { %v388_v45 = vpop.xlane.xlu0 %387  ;;  %vm403_vm9 = vcmp.eq.f32.partialorder %v400_v29, %v402_v41  ;;  %v408_v55 = vcvt.f32.s32 %v402_v41 }
 0x2e3   :  { %v404_v49 = vsel %vm403_vm9, %v399_v44, inf  ;;  %vm389_vm10 = vcmp.eq.f32.partialorder %v386_v30, %v388_v45  ;;  %v394_v59 = vcvt.f32.s32 %v388_v45 }
 0x2e4   :  { %405 = vmin.xlane.f32.xlu1 %v404_v49  ;;  %v390_v50 = vsel %vm389_vm10, %v385_v46, inf  ;;  %v409_v0 = vshll.u32 %v408_v55, 16 }
 0x2e5   :  { %391 = vmin.xlane.f32.xlu0 %v390_v50  ;;  %v395_v3 = vshll.u32 %v394_v59, 16 }
 0x36d   :  { %v378_v53 = vpop.xlane.xlu1 %377 }
 0x36e   :  { %v379_v56 = vcvt.f32.s32 %v378_v53  ;;  %v364_v57 = vpop.xlane.xlu0 %363 }
 0x36f   :  { %v365_v60 = vcvt.f32.s32 %v364_v57 }
 0x370   :  { %v382_v61 = vadd.s32 %v381_v54, %v379_v56 }
 0x371   :  { %v368_v62 = vadd.s32 %v367_v58, %v365_v60  ;;  %v406_v63 = vpop.xlane.xlu1 %405 }
 0x372   :  { %vm412_vm11 = vcmp.eq.s32.totalorder %v1015_v14, %v382_v61  ;;  %v407_v1 = vcvt.f32.s32 %v406_v63  ;;  %v392_v2 = vpop.xlane.xlu0 %391 }
 0x373   :  { %v588_v5 = vsel %vm412_vm11, 1.0, %v825_v4  ;;  %v393_v6 = vcvt.f32.s32 %v392_v2  ;;  %vm411_vm12 = vcmp.eq.s32.totalorder %v1015_v14, %v368_v62 }
 0x374   :  { %v410_v7 = vadd.s32 %v409_v0, %v407_v1  ;;  %v587_v8 = vsel %vm411_vm12, 1.0, %v825_v4  ;;  %727 = vmatprep.mubr.msk.f32.mxu0 %vm411_vm12, %v826_v9 }
 0x375   :  { %v396_v10 = vadd.s32 %v395_v3, %v393_v6  ;;  %v512_v11 = vadd.f32 %v588_v5, %v587_v8  ;;  %728 = vmatmul.mubr.msk.f32.vlgmr.msra.gmra.mrb[4].mxu0 %vm412_vm11, %v826_v9 }
 0x376   :  { %vm414_vm14 = vcmp.eq.s32.totalorder %v1015_v14, %v410_v7 }
 0x377   :  { %vm413_vm13 = vcmp.eq.s32.totalorder %v1015_v14, %v396_v10  ;;  %v590_v15 = vsel %vm414_vm14, 1.0, %v825_v4 }
 0x378   :  { %v589_v12 = vsel %vm413_vm13, 1.0, %v825_v4  ;;  %730 = vmatprep.mubr.msk.f32.mxu0 %vm413_vm13, %v826_v9 }
 0x379   :  { %v513_v13 = vadd.f32 %v589_v12, %v512_v11  ;;  %731 = vmatmul.mubr.msk.f32.gmra.mrb[6].mxu0 %vm414_vm14, %v826_v9 }
 0x37b   :  { %v514_v16 = vadd.f32 %v590_v15, %v513_v13 }
 0x37d   :  { %v515_v17 = vrot.slane %v514_v16, 4 }
 0x37f   :  { %v516_v18 = vadd.f32 %v515_v17, %v514_v16 }
 0x381   :  { %v517_v19 = vrot.slane %v516_v18, 2 }
 0x383   :  { %v518_v20 = vadd.f32 %v517_v19, %v516_v18 }
 0x385   :  { %v519_v21 = vrot.slane %v518_v20, 1 }
 0x387   :  { %v520_v22 = vadd.f32 %v519_v21, %v518_v20 }
 0x389   :  { %525 = vst [vmem:[%s1060_s6] sm:$0x1] %v520_v22 }
 0x448   :  { %v729_v23 = vpop.f32.mrb[4].mxu0 }
 0x449   :  { %v509_v24 = vsub.f32 %v729_v23, %v984_v42  ;;  %522 = vst.msk [vmem:[%s1061_s5 + $0x8] sm:$0xff] %vm160_vm0, %v729_v23  ;;  %v489_v14 = vpop.f32.mrb[5].mxu0 }
 0x44a   :  { %v508_v25 = vsub.f32 %v489_v14, %v986_v43  ;;  %521 = vst.msk [vmem:[%s1061_s5] sm:$0xff] %vm160_vm0, %v489_v14 }
 0x44b   :  { %v527_v26 = vmul.f32 %v509_v24, %v509_v24 }
 0x44c   :  { %v526_v27 = vmul.f32 %v508_v25, %v508_v25  ;;  %v732_v28 = vpop.f32.mrb[6].mxu0 }
 0x44d   :  { %v531_v29 = vsel %vm160_vm0, %v527_v26, 0.0  ;;  %v511_v42 = vsub.f32 %v732_v28, %v994_v47  ;;  %524 = vst.msk [vmem:[%s1061_s5 + $0x18] sm:$0xff] %vm160_vm0, %v732_v28  ;;  %v499_v30 = vpop.f32.mrb[7].mxu0 }
 0x44e   :  { %v530_v43 = vsel %vm160_vm0, %v526_v27, 0.0  ;;  %v510_v31 = vsub.f32 %v499_v30, %v996_v48  ;;  %523 = vst.msk [vmem:[%s1061_s5 + $0x10] sm:$0xff] %vm160_vm0, %v499_v30 }
 0x44f   :  { %v532_v32 = vadd.f32 %v531_v29, %v530_v43  ;;  %v529_v33 = vmul.f32 %v511_v42, %v511_v42 }
 0x450   :  { %v528_v34 = vmul.f32 %v510_v31, %v510_v31 }
 0x451   :  { %v535_v36 = vsel %vm160_vm0, %v529_v33, 0.0 }
 0x452   :  { %v533_v47 = vsel %vm160_vm0, %v528_v34, 0.0 }
 0x453   :  { %v534_v35 = vadd.f32 %v533_v47, %v532_v32 }
 0x455   :  { %v536_v37 = vadd.f32 %v535_v36, %v534_v35 }
 0x457   :  { %537 = vadd.xlane.f32.xlu0 %v536_v37 }
 0x4e4   :  { %v538_v38 = vpop.xlane.xlu0 %537 }
 0x4e5   :  { %v539_v39 = vrot.slane %v538_v38, 4 }
 0x4e7   :  { %v540_v40 = vadd.f32 %v539_v39, %v538_v38 }
 0x4e9   :  { %v541_v41 = vrot.slane %v540_v40, 2 }
 0x4eb   :  { %v542_v48 = vadd.f32 %v541_v41, %v540_v40 }
 0x4ed   :  { %v543_v44 = vrot.slane %v542_v48, 1 }
 0x4ef   :  { %v544_v45 = vadd.f32 %v543_v44, %v542_v48 }
 0x4f1   :  { %821 = vpush %v544_v45 }
 0x522   :  { %s822_s9 = spop %821 }
 0x523   :  { %v546_v46 = vstv %s822_s9 }
 0x524   :  { %548 = vst [vmem:[%s1062_s7] sm:$0x1] %v546_v46 }

// kernel: vqvae_forward.20
= control target key start
LH: loop header
LB: loop body
LE: loop exit
PB: predicated region body
PF: predicated region fallthrough
CT: control target
= control target key end

     0   :  { %vm680_vm0 = vcmask 130048   ;;  %s1271_s1 = inlined_call_operand.vmem [shape: bf16[512,16], index: 1, kind: input, shape index: {}]   ;;  %s1272_s0 = inlined_call_operand.vmem [shape: bf16[128,512], index: 0, kind: input, shape index: {}]   ;;  %s1273_s2 = inlined_call_operand.vmem [shape: f32[1,16], index: 2, kind: input, shape index: {}]   ;;  %s1274_s3 = inlined_call_operand.vmem [shape: f32[128,16], index: 3, kind: output, shape index: {}]  }
   0x1   :  { %v894_v0 = vld [vmem:[%s1271_s1 + $0x40] sm:$0xff]   ;;  %v898_v4 = vld [vmem:[%s1271_s1 + $0x48] sm:$0xff]   ;;  %v902_v8 = vld [vmem:[%s1271_s1 + $0x50] sm:$0xff]  }
   0x2   :  { %v895_v1 = vld [vmem:[%s1271_s1 + $0xc0] sm:$0xff]   ;;  %766 = vmatprep.subr.bf16.mxu0 %v894_v0  ;;  %v899_v5 = vld [vmem:[%s1271_s1 + $0xc8] sm:$0xff]   ;;  %v903_v9 = vld [vmem:[%s1271_s1 + $0xd0] sm:$0xff]  }
   0x3   :  { %v896_v2 = vld [vmem:[%s1271_s1] sm:$0xff]   ;;  %830 = vmatprep.subr.bf16.mxu1 %v895_v1  ;;  %v900_v6 = vld [vmem:[%s1271_s1 + $0x8] sm:$0xff]   ;;  %v904_v10 = vld [vmem:[%s1271_s1 + $0x10] sm:$0xff]  }
   0x4   :  { %v897_v3 = vld [vmem:[%s1271_s1 + $0x80] sm:$0xff]   ;;  %767 = vmatpush3.bf16.msra.mxu0 %v896_v2  ;;  %v901_v7 = vld [vmem:[%s1271_s1 + $0x88] sm:$0xff]   ;;  %v905_v11 = vld [vmem:[%s1271_s1 + $0x90] sm:$0xff]  }
   0x5   :  { %831 = vmatpush3.bf16.msra.mxu1 %v897_v3  ;;  %768 = vmatprep.subr.bf16.mxu0 %v898_v4  ;;  %v906_v12 = vld [vmem:[%s1271_s1 + $0x58] sm:$0xff]   ;;  %v910_v16 = vld [vmem:[%s1271_s1 + $0x60] sm:$0xff]   ;;  %v914_v20 = vld [vmem:[%s1271_s1 + $0x68] sm:$0xff]  }
   0x6   :  { %832 = vmatprep.subr.bf16.mxu1 %v899_v5  ;;  %v907_v13 = vld [vmem:[%s1271_s1 + $0xd8] sm:$0xff]   ;;  %v911_v17 = vld [vmem:[%s1271_s1 + $0xe0] sm:$0xff]   ;;  %v915_v21 = vld [vmem:[%s1271_s1 + $0xe8] sm:$0xff]  }
   0x7   :  { %v908_v14 = vld [vmem:[%s1271_s1 + $0x18] sm:$0xff]   ;;  %v912_v18 = vld [vmem:[%s1271_s1 + $0x20] sm:$0xff]   ;;  %v916_v22 = vld [vmem:[%s1271_s1 + $0x28] sm:$0xff]  }
   0x8   :  { %769 = vmatpush3.bf16.msra.mxu0 %v900_v6  ;;  %v909_v15 = vld [vmem:[%s1271_s1 + $0x98] sm:$0xff]   ;;  %v913_v19 = vld [vmem:[%s1271_s1 + $0xa0] sm:$0xff]   ;;  %v917_v23 = vld [vmem:[%s1271_s1 + $0xa8] sm:$0xff]  }
   0x9   :  { %833 = vmatpush3.bf16.msra.mxu1 %v901_v7  ;;  %770 = vmatprep.subr.bf16.mxu0 %v902_v8  ;;  %v918_v24 = vld [vmem:[%s1271_s1 + $0x70] sm:$0xff]   ;;  %v922_v28 = vld [vmem:[%s1271_s1 + $0x78] sm:$0xff]   ;;  %v1189_v2 = vld [vmem:[%s1273_s2] ss:$0 sm:$0xff] }
   0xa   :  { %834 = vmatprep.subr.bf16.mxu1 %v903_v9  ;;  %v919_v25 = vld [vmem:[%s1271_s1 + $0xf0] sm:$0xff]   ;;  %v923_v29 = vld [vmem:[%s1271_s1 + $0xf8] sm:$0xff]  }
   0xb   :  { %v920_v26 = vld [vmem:[%s1271_s1 + $0x30] sm:$0xff]   ;;  %v924_v30 = vld [vmem:[%s1271_s1 + $0x38] sm:$0xff]  }
   0xc   :  { %771 = vmatpush3.bf16.msra.mxu0 %v904_v10  ;;  %v921_v27 = vld [vmem:[%s1271_s1 + $0xb0] sm:$0xff]   ;;  %v925_v31 = vld [vmem:[%s1271_s1 + $0xb8] sm:$0xff]  }
   0xd   :  { %835 = vmatpush3.bf16.msra.mxu1 %v905_v11  ;;  %772 = vmatprep.subr.bf16.mxu0 %v906_v12  ;;  %v926_v32 = vld [vmem:[%s1272_s0] ss:$16 sps:$4 sm:$0xff]   ;;  %v928_v33 = vld [vmem:[%s1272_s0 + $0x4] ss:$16 sps:$4 sm:$0xff]   ;;  %v929_v34 = vld [vmem:[%s1272_s0 + $0x8] ss:$16 sps:$4 sm:$0xff]  }
   0xe   :  { %836 = vmatprep.subr.bf16.mxu1 %v907_v13  ;;  %v931_v35 = vld [vmem:[%s1272_s0 + $0xc] ss:$16 sps:$4 sm:$0xff]   ;;  %502 = vmatprep.mubr.bf16.mxu0 %v928_v33  ;;  %v932_v36 = vld [vmem:[%s1272_s0 + $0x24] ss:$16 sps:$4 sm:$0xff]   ;;  %v936_v38 = vld [vmem:[%s1272_s0 + $0x20] ss:$16 sps:$4 sm:$0xff]  }
   0xf   :  { %599 = vmatprep.mubr.bf16.mxu1 %v931_v35  ;;  %v934_v37 = vld [vmem:[%s1272_s0 + $0x2c] ss:$16 sps:$4 sm:$0xff]   ;;  %v937_v39 = vld [vmem:[%s1272_s0 + $0x28] ss:$16 sps:$4 sm:$0xff]   ;;  %v938_v40 = vld [vmem:[%s1272_s0 + $0x44] ss:$16 sps:$4 sm:$0xff]  }
  0x10   :  { %773 = vmatpush3.bf16.msra.mxu0 %v908_v14  ;;  %v940_v41 = vld [vmem:[%s1272_s0 + $0x4c] ss:$16 sps:$4 sm:$0xff]   ;;  %v942_v42 = vld [vmem:[%s1272_s0 + $0x40] ss:$16 sps:$4 sm:$0xff]   ;;  %v943_v43 = vld [vmem:[%s1272_s0 + $0x48] ss:$16 sps:$4 sm:$0xff]  }
  0x11   :  { %837 = vmatpush3.bf16.msra.mxu1 %v909_v15  ;;  %774 = vmatprep.subr.bf16.mxu0 %v910_v16  ;;  %v944_v44 = vld [vmem:[%s1272_s0 + $0x64] ss:$16 sps:$4 sm:$0xff]   ;;  %v946_v45 = vld [vmem:[%s1272_s0 + $0x6c] ss:$16 sps:$4 sm:$0xff]   ;;  %v948_v46 = vld [vmem:[%s1272_s0 + $0x60] ss:$16 sps:$4 sm:$0xff]  }
  0x12   :  { %838 = vmatprep.subr.bf16.mxu1 %v911_v17  ;;  %v949_v47 = vld [vmem:[%s1272_s0 + $0x68] ss:$16 sps:$4 sm:$0xff]   ;;  %v950_v48 = vld [vmem:[%s1272_s0 + $0x84] ss:$16 sps:$4 sm:$0xff]   ;;  %v952_v49 = vld [vmem:[%s1272_s0 + $0x8c] ss:$16 sps:$4 sm:$0xff]  }
  0x13   :  { %v954_v50 = vld [vmem:[%s1272_s0 + $0x80] ss:$16 sps:$4 sm:$0xff]   ;;  %v955_v51 = vld [vmem:[%s1272_s0 + $0x88] ss:$16 sps:$4 sm:$0xff]   ;;  %v956_v52 = vld [vmem:[%s1272_s0 + $0xa4] ss:$16 sps:$4 sm:$0xff]  }
  0x14   :  { %775 = vmatpush3.bf16.msra.mxu0 %v912_v18  ;;  %v958_v53 = vld [vmem:[%s1272_s0 + $0xac] ss:$16 sps:$4 sm:$0xff]   ;;  %v960_v54 = vld [vmem:[%s1272_s0 + $0xa0] ss:$16 sps:$4 sm:$0xff]   ;;  %v961_v55 = vld [vmem:[%s1272_s0 + $0xa8] ss:$16 sps:$4 sm:$0xff]  }
  0x15   :  { %839 = vmatpush3.bf16.msra.mxu1 %v913_v19  ;;  %776 = vmatprep.subr.bf16.mxu0 %v914_v20  ;;  %v962_v56 = vld [vmem:[%s1272_s0 + $0xc4] ss:$16 sps:$4 sm:$0xff]   ;;  %v964_v57 = vld [vmem:[%s1272_s0 + $0xcc] ss:$16 sps:$4 sm:$0xff]   ;;  %v966_v58 = vld [vmem:[%s1272_s0 + $0xc0] ss:$16 sps:$4 sm:$0xff]  }
  0x16   :  { %840 = vmatprep.subr.bf16.mxu1 %v915_v21  ;;  %v967_v59 = vld [vmem:[%s1272_s0 + $0xc8] ss:$16 sps:$4 sm:$0xff]   ;;  %v968_v60 = vld [vmem:[%s1272_s0 + $0xe4] ss:$16 sps:$4 sm:$0xff]   ;;  %v970_v61 = vld [vmem:[%s1272_s0 + $0xec] ss:$16 sps:$4 sm:$0xff]  }
  0x17   :  { %v972_v62 = vld [vmem:[%s1272_s0 + $0xe0] ss:$16 sps:$4 sm:$0xff]   ;;  %v973_v63 = vld [vmem:[%s1272_s0 + $0xe8] ss:$16 sps:$4 sm:$0xff]  }
  0x18   :  { %777 = vmatpush3.bf16.msra.mxu0 %v916_v22 }
  0x19   :  { %841 = vmatpush3.bf16.msra.mxu1 %v917_v23  ;;  %778 = vmatprep.subr.bf16.mxu0 %v918_v24 }
  0x1a   :  { %842 = vmatprep.subr.bf16.mxu1 %v919_v25 }
  0x1c   :  { %779 = vmatpush3.bf16.msra.mxu0 %v920_v26 }
  0x1d   :  { %843 = vmatpush3.bf16.msra.mxu1 %v921_v27  ;;  %780 = vmatprep.subr.bf16.mxu0 %v922_v28 }
  0x1e   :  { %844 = vmatprep.subr.bf16.mxu1 %v923_v29 }
  0x20   :  { %781 = vmatpush3.bf16.msra.mxu0 %v924_v30 }
  0x21   :  { %845 = vmatpush3.bf16.msra.mxu1 %v925_v31 }
  0x23   :  { %503 = vmatmul.mubr.bf16.vlgmr.msra.gmra.mrb[0].mxu0 %v926_v32 }
  0x24   :  { %600 = vmatmul.mubr.bf16.vlgmr.msra.gmra.mrb[0].mxu1 %v929_v34  ;;  %510 = vmatprep.mubr.bf16.mxu0 %v932_v36 }
  0x25   :  { %607 = vmatprep.mubr.bf16.mxu1 %v934_v37 }
  0x2b   :  { %511 = vmatmul.mubr.bf16.gmra.mrb[4].mxu0 %v936_v38 }
  0x2c   :  { %608 = vmatmul.mubr.bf16.gmra.mrb[4].mxu1 %v937_v39  ;;  %518 = vmatprep.mubr.bf16.mxu0 %v938_v40 }
  0x2d   :  { %615 = vmatprep.mubr.bf16.mxu1 %v940_v41 }
  0x33   :  { %519 = vmatmul.mubr.bf16.gmra.mrb[8].mxu0 %v942_v42 }
  0x34   :  { %616 = vmatmul.mubr.bf16.gmra.mrb[8].mxu1 %v943_v43  ;;  %526 = vmatprep.mubr.bf16.mxu0 %v944_v44 }
  0x35   :  { %623 = vmatprep.mubr.bf16.mxu1 %v946_v45 }
  0x3b   :  { %527 = vmatmul.mubr.bf16.gmra.mrb[12].mxu0 %v948_v46 }
  0x3c   :  { %624 = vmatmul.mubr.bf16.gmra.mrb[12].mxu1 %v949_v47  ;;  %534 = vmatprep.mubr.bf16.mxu0 %v950_v48 }
  0x3d   :  { %631 = vmatprep.mubr.bf16.mxu1 %v952_v49 }
  0x43   :  { %535 = vmatmul.mubr.bf16.gmra.mrb[16].mxu0 %v954_v50 }
  0x44   :  { %632 = vmatmul.mubr.bf16.gmra.mrb[16].mxu1 %v955_v51  ;;  %542 = vmatprep.mubr.bf16.mxu0 %v956_v52 }
  0x45   :  { %639 = vmatprep.mubr.bf16.mxu1 %v958_v53 }
  0x4b   :  { %543 = vmatmul.mubr.bf16.gmra.mrb[20].mxu0 %v960_v54 }
  0x4c   :  { %640 = vmatmul.mubr.bf16.gmra.mrb[20].mxu1 %v961_v55  ;;  %550 = vmatprep.mubr.bf16.mxu0 %v962_v56 }
  0x4d   :  { %647 = vmatprep.mubr.bf16.mxu1 %v964_v57 }
  0x53   :  { %551 = vmatmul.mubr.bf16.gmra.mrb[24].mxu0 %v966_v58 }
  0x54   :  { %648 = vmatmul.mubr.bf16.gmra.mrb[24].mxu1 %v967_v59  ;;  %558 = vmatprep.mubr.bf16.mxu0 %v968_v60 }
  0x55   :  { %655 = vmatprep.mubr.bf16.mxu1 %v970_v61 }
  0x5b   :  { %559 = vmatmul.mubr.bf16.gmra.mrb[28].mxu0 %v972_v62 }
  0x5c   :  { %656 = vmatmul.mubr.bf16.gmra.mrb[28].mxu1 %v973_v63 }
  0xf6   :  { %v782_v0 = vpop.f32.mrb[0].mxu0 }
  0xf7   :  { %v846_v1 = vpop.f32.mrb[0].mxu1  ;;  %v783_v3 = vpop.f32.mrb[1].mxu0 }
  0xf8   :  { %v784_v4 = vadd.f32 %v783_v3, %v782_v0  ;;  %v847_v5 = vpop.f32.mrb[1].mxu1  ;;  %v785_v6 = vpop.f32.mrb[2].mxu0 }
  0xf9   :  { %v848_v7 = vadd.f32 %v847_v5, %v846_v1  ;;  %v849_v8 = vpop.f32.mrb[2].mxu1  ;;  %v786_v9 = vpop.f32.mrb[3].mxu0 }
  0xfa   :  { %v505_v10 = vadd.f32 %v784_v4, %v1189_v2  ;;  %v787_v11 = vadd.f32 %v786_v9, %v785_v6  ;;  %v850_v12 = vpop.f32.mrb[3].mxu1 }
  0xfb   :  { %v851_v13 = vadd.f32 %v850_v12, %v849_v8 }
  0xfc   :  { %v602_v14 = vadd.f32 %v848_v7, %v505_v10  ;;  %v508_v15 = vadd.f32 %v787_v11, %v1189_v2 }
  0xfe   :  { %v664_v16 = vmax.f32 %v602_v14, 0.0  ;;  %v605_v17 = vadd.f32 %v851_v13, %v508_v15  ;;  %v788_v18 = vpop.f32.mrb[4].mxu0 }
  0xff   :  { %v852_v19 = vpop.f32.mrb[4].mxu1  ;;  %v789_v20 = vpop.f32.mrb[5].mxu0 }
 0x100   :  { %681 = vst.msk [vmem:[%s1274_s3] sm:$0xff] %vm680_vm0, %v664_v16  ;;  %v665_v21 = vmax.f32 %v605_v17, 0.0  ;;  %v790_v22 = vadd.f32 %v789_v20, %v788_v18  ;;  %v853_v23 = vpop.f32.mrb[5].mxu1  ;;  %v791_v24 = vpop.f32.mrb[6].mxu0 }
 0x101   :  { %v854_v25 = vadd.f32 %v853_v23, %v852_v19  ;;  %v855_v26 = vpop.f32.mrb[6].mxu1  ;;  %v792_v27 = vpop.f32.mrb[7].mxu0 }
 0x102   :  { %682 = vst.msk [vmem:[%s1274_s3 + $0x8] sm:$0xff] %vm680_vm0, %v665_v21  ;;  %v513_v28 = vadd.f32 %v790_v22, %v1189_v2  ;;  %v793_v29 = vadd.f32 %v792_v27, %v791_v24  ;;  %v856_v30 = vpop.f32.mrb[7].mxu1 }
 0x103   :  { %v857_v31 = vadd.f32 %v856_v30, %v855_v26 }
 0x104   :  { %v610_v32 = vadd.f32 %v854_v25, %v513_v28  ;;  %v516_v33 = vadd.f32 %v793_v29, %v1189_v2 }
 0x106   :  { %v666_v34 = vmax.f32 %v610_v32, 0.0  ;;  %v613_v35 = vadd.f32 %v857_v31, %v516_v33  ;;  %v794_v36 = vpop.f32.mrb[8].mxu0 }
 0x107   :  { %v858_v37 = vpop.f32.mrb[8].mxu1  ;;  %v795_v38 = vpop.f32.mrb[9].mxu0 }
 0x108   :  { %683 = vst.msk [vmem:[%s1274_s3 + $0x10] sm:$0xff] %vm680_vm0, %v666_v34  ;;  %v667_v39 = vmax.f32 %v613_v35, 0.0  ;;  %v796_v40 = vadd.f32 %v795_v38, %v794_v36  ;;  %v859_v41 = vpop.f32.mrb[9].mxu1  ;;  %v797_v42 = vpop.f32.mrb[10].mxu0 }
 0x109   :  { %v860_v43 = vadd.f32 %v859_v41, %v858_v37  ;;  %v861_v44 = vpop.f32.mrb[10].mxu1  ;;  %v798_v45 = vpop.f32.mrb[11].mxu0 }
 0x10a   :  { %684 = vst.msk [vmem:[%s1274_s3 + $0x18] sm:$0xff] %vm680_vm0, %v667_v39  ;;  %v521_v46 = vadd.f32 %v796_v40, %v1189_v2  ;;  %v799_v47 = vadd.f32 %v798_v45, %v797_v42  ;;  %v862_v48 = vpop.f32.mrb[11].mxu1 }
 0x10b   :  { %v863_v49 = vadd.f32 %v862_v48, %v861_v44 }
 0x10c   :  { %v618_v50 = vadd.f32 %v860_v43, %v521_v46  ;;  %v524_v51 = vadd.f32 %v799_v47, %v1189_v2 }
 0x10e   :  { %v668_v52 = vmax.f32 %v618_v50, 0.0  ;;  %v621_v53 = vadd.f32 %v863_v49, %v524_v51  ;;  %v800_v54 = vpop.f32.mrb[12].mxu0 }
 0x10f   :  { %v864_v55 = vpop.f32.mrb[12].mxu1  ;;  %v801_v56 = vpop.f32.mrb[13].mxu0 }
 0x110   :  { %685 = vst.msk [vmem:[%s1274_s3 + $0x20] sm:$0xff] %vm680_vm0, %v668_v52  ;;  %v669_v57 = vmax.f32 %v621_v53, 0.0  ;;  %v802_v58 = vadd.f32 %v801_v56, %v800_v54  ;;  %v865_v59 = vpop.f32.mrb[13].mxu1  ;;  %v803_v60 = vpop.f32.mrb[14].mxu0 }
 0x111   :  { %v866_v61 = vadd.f32 %v865_v59, %v864_v55  ;;  %v867_v62 = vpop.f32.mrb[14].mxu1  ;;  %v804_v63 = vpop.f32.mrb[15].mxu0 }
 0x112   :  { %686 = vst.msk [vmem:[%s1274_s3 + $0x28] sm:$0xff] %vm680_vm0, %v669_v57  ;;  %v529_v0 = vadd.f32 %v802_v58, %v1189_v2  ;;  %v805_v1 = vadd.f32 %v804_v63, %v803_v60  ;;  %v868_v3 = vpop.f32.mrb[15].mxu1 }
 0x113   :  { %v869_v4 = vadd.f32 %v868_v3, %v867_v62 }
 0x114   :  { %v626_v5 = vadd.f32 %v866_v61, %v529_v0  ;;  %v532_v6 = vadd.f32 %v805_v1, %v1189_v2 }
 0x116   :  { %v670_v7 = vmax.f32 %v626_v5, 0.0  ;;  %v629_v8 = vadd.f32 %v869_v4, %v532_v6  ;;  %v806_v9 = vpop.f32.mrb[16].mxu0 }
 0x117   :  { %v870_v10 = vpop.f32.mrb[16].mxu1  ;;  %v807_v11 = vpop.f32.mrb[17].mxu0 }
 0x118   :  { %687 = vst.msk [vmem:[%s1274_s3 + $0x30] sm:$0xff] %vm680_vm0, %v670_v7  ;;  %v671_v12 = vmax.f32 %v629_v8, 0.0  ;;  %v808_v13 = vadd.f32 %v807_v11, %v806_v9  ;;  %v871_v14 = vpop.f32.mrb[17].mxu1  ;;  %v809_v15 = vpop.f32.mrb[18].mxu0 }
 0x119   :  { %v872_v16 = vadd.f32 %v871_v14, %v870_v10  ;;  %v873_v17 = vpop.f32.mrb[18].mxu1  ;;  %v810_v18 = vpop.f32.mrb[19].mxu0 }
 0x11a   :  { %688 = vst.msk [vmem:[%s1274_s3 + $0x38] sm:$0xff] %vm680_vm0, %v671_v12  ;;  %v537_v19 = vadd.f32 %v808_v13, %v1189_v2  ;;  %v811_v20 = vadd.f32 %v810_v18, %v809_v15  ;;  %v874_v21 = vpop.f32.mrb[19].mxu1 }
 0x11b   :  { %v875_v22 = vadd.f32 %v874_v21, %v873_v17 }
 0x11c   :  { %v634_v23 = vadd.f32 %v872_v16, %v537_v19  ;;  %v540_v24 = vadd.f32 %v811_v20, %v1189_v2 }
 0x11e   :  { %v672_v25 = vmax.f32 %v634_v23, 0.0  ;;  %v637_v26 = vadd.f32 %v875_v22, %v540_v24  ;;  %v812_v27 = vpop.f32.mrb[20].mxu0 }
 0x11f   :  { %v876_v28 = vpop.f32.mrb[20].mxu1  ;;  %v813_v29 = vpop.f32.mrb[21].mxu0 }
 0x120   :  { %689 = vst.msk [vmem:[%s1274_s3 + $0x40] sm:$0xff] %vm680_vm0, %v672_v25  ;;  %v673_v30 = vmax.f32 %v637_v26, 0.0  ;;  %v814_v31 = vadd.f32 %v813_v29, %v812_v27  ;;  %v877_v32 = vpop.f32.mrb[21].mxu1  ;;  %v815_v33 = vpop.f32.mrb[22].mxu0 }
 0x121   :  { %v878_v34 = vadd.f32 %v877_v32, %v876_v28  ;;  %v879_v35 = vpop.f32.mrb[22].mxu1  ;;  %v816_v36 = vpop.f32.mrb[23].mxu0 }
 0x122   :  { %690 = vst.msk [vmem:[%s1274_s3 + $0x48] sm:$0xff] %vm680_vm0, %v673_v30  ;;  %v545_v37 = vadd.f32 %v814_v31, %v1189_v2  ;;  %v817_v38 = vadd.f32 %v816_v36, %v815_v33  ;;  %v880_v39 = vpop.f32.mrb[23].mxu1 }
 0x123   :  { %v881_v40 = vadd.f32 %v880_v39, %v879_v35 }
 0x124   :  { %v642_v41 = vadd.f32 %v878_v34, %v545_v37  ;;  %v548_v42 = vadd.f32 %v817_v38, %v1189_v2 }
 0x126   :  { %v674_v43 = vmax.f32 %v642_v41, 0.0  ;;  %v645_v44 = vadd.f32 %v881_v40, %v548_v42  ;;  %v818_v45 = vpop.f32.mrb[24].mxu0 }
 0x127   :  { %v882_v46 = vpop.f32.mrb[24].mxu1  ;;  %v819_v47 = vpop.f32.mrb[25].mxu0 }
 0x128   :  { %691 = vst.msk [vmem:[%s1274_s3 + $0x50] sm:$0xff] %vm680_vm0, %v674_v43  ;;  %v675_v48 = vmax.f32 %v645_v44, 0.0  ;;  %v820_v49 = vadd.f32 %v819_v47, %v818_v45  ;;  %v883_v50 = vpop.f32.mrb[25].mxu1  ;;  %v821_v51 = vpop.f32.mrb[26].mxu0 }
 0x129   :  { %v884_v52 = vadd.f32 %v883_v50, %v882_v46  ;;  %v885_v53 = vpop.f32.mrb[26].mxu1  ;;  %v822_v54 = vpop.f32.mrb[27].mxu0 }
 0x12a   :  { %692 = vst.msk [vmem:[%s1274_s3 + $0x58] sm:$0xff] %vm680_vm0, %v675_v48  ;;  %v553_v55 = vadd.f32 %v820_v49, %v1189_v2  ;;  %v823_v56 = vadd.f32 %v822_v54, %v821_v51  ;;  %v886_v57 = vpop.f32.mrb[27].mxu1 }
 0x12b   :  { %v887_v58 = vadd.f32 %v886_v57, %v885_v53 }
 0x12c   :  { %v650_v59 = vadd.f32 %v884_v52, %v553_v55  ;;  %v556_v60 = vadd.f32 %v823_v56, %v1189_v2 }
 0x12e   :  { %v676_v61 = vmax.f32 %v650_v59, 0.0  ;;  %v653_v62 = vadd.f32 %v887_v58, %v556_v60  ;;  %v824_v63 = vpop.f32.mrb[28].mxu0 }
 0x12f   :  { %v888_v0 = vpop.f32.mrb[28].mxu1  ;;  %v825_v1 = vpop.f32.mrb[29].mxu0 }
 0x130   :  { %693 = vst.msk [vmem:[%s1274_s3 + $0x60] sm:$0xff] %vm680_vm0, %v676_v61  ;;  %v677_v3 = vmax.f32 %v653_v62, 0.0  ;;  %v826_v4 = vadd.f32 %v825_v1, %v824_v63  ;;  %v889_v5 = vpop.f32.mrb[29].mxu1  ;;  %v827_v6 = vpop.f32.mrb[30].mxu0 }
 0x131   :  { %v890_v7 = vadd.f32 %v889_v5, %v888_v0  ;;  %v891_v8 = vpop.f32.mrb[30].mxu1  ;;  %v828_v9 = vpop.f32.mrb[31].mxu0 }
 0x132   :  { %694 = vst.msk [vmem:[%s1274_s3 + $0x68] sm:$0xff] %vm680_vm0, %v677_v3  ;;  %v561_v10 = vadd.f32 %v826_v4, %v1189_v2  ;;  %v829_v11 = vadd.f32 %v828_v9, %v827_v6  ;;  %v892_v12 = vpop.f32.mrb[31].mxu1 }
 0x133   :  { %v893_v13 = vadd.f32 %v892_v12, %v891_v8 }
 0x134   :  { %v658_v14 = vadd.f32 %v890_v7, %v561_v10  ;;  %v564_v15 = vadd.f32 %v829_v11, %v1189_v2 }
 0x136   :  { %v678_v16 = vmax.f32 %v658_v14, 0.0  ;;  %v661_v17 = vadd.f32 %v893_v13, %v564_v15 }
 0x138   :  { %695 = vst.msk [vmem:[%s1274_s3 + $0x70] sm:$0xff] %vm680_vm0, %v678_v16  ;;  %v679_v18 = vmax.f32 %v661_v17, 0.0 }
 0x13a   :  { %696 = vst.msk [vmem:[%s1274_s3 + $0x78] sm:$0xff] %vm680_vm0, %v679_v18 }

// kernel: vqvae_forward.21
= control target key start
LH: loop header
LB: loop body
LE: loop exit
PB: predicated region body
PF: predicated region fallthrough
CT: control target
= control target key end

     0   :  { %v1118_v0 = vmov 0   ;;  %vm823_vm0 = vcmask 23552   ;;  %s1736_s1 = inlined_call_operand.vmem [shape: bf16[256,3], index: 1, kind: input, shape index: {}]   ;;  %s1737_s0 = inlined_call_operand.vmem [shape: bf16[512,256], index: 0, kind: input, shape index: {}]   ;;  %s1738_s2 = inlined_call_operand.vmem [shape: f32[1,3], index: 2, kind: input, shape index: {}]   ;;  %s1739_s3 = inlined_call_operand.vmem [shape: f32[512,3], index: 3, kind: output, shape index: {}]  }
   0x1   :  { %534 = vmatprep.subr.bf16.mxu0 %v1118_v0  ;;  %973 = vmatprep.subr.bf16.mxu1 %v1118_v0  ;;  %v1006_v1 = vld [vmem:[%s1736_s1] sm:$0xff]   ;;  %v1007_v2 = vld [vmem:[%s1736_s1 + $0x8] sm:$0xff]   ;;  %v1008_v3 = vld [vmem:[%s1736_s1 + $0x10] sm:$0xff]  }
   0x2   :  { %535 = vmatpush1.bf16.msra.mxu0 %v1006_v1  ;;  %989 = vmatpush1.bf16.msra.mxu1 %v1006_v1  ;;  %v1009_v4 = vld [vmem:[%s1736_s1 + $0x18] sm:$0xff]   ;;  %v1010_v5 = vld [vmem:[%s1736_s1 + $0x20] sm:$0xff]   ;;  %v1011_v7 = vld [vmem:[%s1736_s1 + $0x28] sm:$0xff]  }
   0x3   :  { %536 = vmatprep.subr.bf16.mxu0 %v1118_v0  ;;  %974 = vmatprep.subr.bf16.mxu1 %v1118_v0  ;;  %v1024_v6 = vld [vmem:[%s1737_s0 + $0x4] ss:$8 sps:$4 sm:$0xff]   ;;  %v1012_v9 = vld [vmem:[%s1736_s1 + $0x30] sm:$0xff]   ;;  %v1013_v10 = vld [vmem:[%s1736_s1 + $0x38] sm:$0xff]  }
   0x4   :  { %v1027_v8 = vld [vmem:[%s1737_s0 + $0x104] ss:$8 sps:$4 sm:$0xff]   ;;  %566 = vmatprep.mubr.bf16.mxu0 %v1024_v6  ;;  %v1016_v13 = vld [vmem:[%s1736_s1 + $0x50] sm:$0xff]   ;;  %v1017_v14 = vld [vmem:[%s1736_s1 + $0x58] sm:$0xff]  }
   0x5   :  { %694 = vmatprep.mubr.bf16.mxu1 %v1027_v8  ;;  %v1014_v11 = vld [vmem:[%s1736_s1 + $0x40] sm:$0xff]   ;;  %v1015_v12 = vld [vmem:[%s1736_s1 + $0x48] sm:$0xff]   ;;  %v1020_v17 = vld [vmem:[%s1736_s1 + $0x70] sm:$0xff]  }
   0x6   :  { %537 = vmatpush1.bf16.msra.mxu0 %v1007_v2  ;;  %990 = vmatpush1.bf16.msra.mxu1 %v1007_v2  ;;  %v1018_v15 = vld [vmem:[%s1736_s1 + $0x60] sm:$0xff]   ;;  %v1019_v16 = vld [vmem:[%s1736_s1 + $0x68] sm:$0xff]   ;;  %v1021_v18 = vld [vmem:[%s1736_s1 + $0x78] sm:$0xff]  }
   0x7   :  { %538 = vmatprep.subr.bf16.mxu0 %v1118_v0  ;;  %975 = vmatprep.subr.bf16.mxu1 %v1118_v0  ;;  %v1022_v19 = vld [vmem:[%s1737_s0] ss:$8 sps:$4 sm:$0xff]   ;;  %v1028_v21 = vld [vmem:[%s1737_s0 + $0x14] ss:$8 sps:$4 sm:$0xff]   ;;  %v1032_v23 = vld [vmem:[%s1737_s0 + $0x10] ss:$8 sps:$4 sm:$0xff]  }
   0x8   :  { %v1025_v20 = vld [vmem:[%s1737_s0 + $0x100] ss:$8 sps:$4 sm:$0xff]   ;;  %v1030_v22 = vld [vmem:[%s1737_s0 + $0x114] ss:$8 sps:$4 sm:$0xff]   ;;  %v1033_v24 = vld [vmem:[%s1737_s0 + $0x110] ss:$8 sps:$4 sm:$0xff]  }
   0x9   :  { %v1034_v25 = vld [vmem:[%s1737_s0 + $0x24] ss:$8 sps:$4 sm:$0xff]   ;;  %v1038_v27 = vld [vmem:[%s1737_s0 + $0x20] ss:$8 sps:$4 sm:$0xff]   ;;  %v1040_v29 = vld [vmem:[%s1737_s0 + $0x34] ss:$8 sps:$4 sm:$0xff]  }
   0xa   :  { %539 = vmatpush1.bf16.msra.mxu0 %v1008_v3  ;;  %991 = vmatpush1.bf16.msra.mxu1 %v1008_v3  ;;  %v1036_v26 = vld [vmem:[%s1737_s0 + $0x124] ss:$8 sps:$4 sm:$0xff]   ;;  %v1039_v28 = vld [vmem:[%s1737_s0 + $0x120] ss:$8 sps:$4 sm:$0xff]   ;;  %v1042_v30 = vld [vmem:[%s1737_s0 + $0x134] ss:$8 sps:$4 sm:$0xff]  }
   0xb   :  { %540 = vmatprep.subr.bf16.mxu0 %v1118_v0  ;;  %976 = vmatprep.subr.bf16.mxu1 %v1118_v0  ;;  %v1044_v31 = vld [vmem:[%s1737_s0 + $0x30] ss:$8 sps:$4 sm:$0xff]   ;;  %v1046_v33 = vld [vmem:[%s1737_s0 + $0x44] ss:$8 sps:$4 sm:$0xff]   ;;  %v1050_v35 = vld [vmem:[%s1737_s0 + $0x40] ss:$8 sps:$4 sm:$0xff]  }
   0xc   :  { %v1045_v32 = vld [vmem:[%s1737_s0 + $0x130] ss:$8 sps:$4 sm:$0xff]   ;;  %v1048_v34 = vld [vmem:[%s1737_s0 + $0x144] ss:$8 sps:$4 sm:$0xff]   ;;  %v1051_v36 = vld [vmem:[%s1737_s0 + $0x140] ss:$8 sps:$4 sm:$0xff]  }
   0xd   :  { %v1052_v37 = vld [vmem:[%s1737_s0 + $0x54] ss:$8 sps:$4 sm:$0xff]   ;;  %v1056_v39 = vld [vmem:[%s1737_s0 + $0x50] ss:$8 sps:$4 sm:$0xff]   ;;  %v1058_v41 = vld [vmem:[%s1737_s0 + $0x64] ss:$8 sps:$4 sm:$0xff]  }
   0xe   :  { %541 = vmatpush1.bf16.msra.mxu0 %v1009_v4  ;;  %992 = vmatpush1.bf16.msra.mxu1 %v1009_v4  ;;  %v1054_v38 = vld [vmem:[%s1737_s0 + $0x154] ss:$8 sps:$4 sm:$0xff]   ;;  %v1057_v40 = vld [vmem:[%s1737_s0 + $0x150] ss:$8 sps:$4 sm:$0xff]   ;;  %v1060_v42 = vld [vmem:[%s1737_s0 + $0x164] ss:$8 sps:$4 sm:$0xff]  }
   0xf   :  { %542 = vmatprep.subr.bf16.mxu0 %v1118_v0  ;;  %977 = vmatprep.subr.bf16.mxu1 %v1118_v0  ;;  %v1062_v43 = vld [vmem:[%s1737_s0 + $0x60] ss:$8 sps:$4 sm:$0xff]   ;;  %v1064_v45 = vld [vmem:[%s1737_s0 + $0x74] ss:$8 sps:$4 sm:$0xff]   ;;  %v1068_v47 = vld [vmem:[%s1737_s0 + $0x70] ss:$8 sps:$4 sm:$0xff]  }
  0x10   :  { %v1063_v44 = vld [vmem:[%s1737_s0 + $0x160] ss:$8 sps:$4 sm:$0xff]   ;;  %v1066_v46 = vld [vmem:[%s1737_s0 + $0x174] ss:$8 sps:$4 sm:$0xff]   ;;  %v1069_v48 = vld [vmem:[%s1737_s0 + $0x170] ss:$8 sps:$4 sm:$0xff]  }
  0x11   :  { %v1070_v49 = vld [vmem:[%s1737_s0 + $0x84] ss:$8 sps:$4 sm:$0xff]   ;;  %v1074_v51 = vld [vmem:[%s1737_s0 + $0x80] ss:$8 sps:$4 sm:$0xff]   ;;  %v1076_v53 = vld [vmem:[%s1737_s0 + $0x94] ss:$8 sps:$4 sm:$0xff]  }
  0x12   :  { %543 = vmatpush1.bf16.msra.mxu0 %v1010_v5  ;;  %993 = vmatpush1.bf16.msra.mxu1 %v1010_v5  ;;  %v1072_v50 = vld [vmem:[%s1737_s0 + $0x184] ss:$8 sps:$4 sm:$0xff]   ;;  %v1075_v52 = vld [vmem:[%s1737_s0 + $0x180] ss:$8 sps:$4 sm:$0xff]   ;;  %v1078_v54 = vld [vmem:[%s1737_s0 + $0x194] ss:$8 sps:$4 sm:$0xff]  }
  0x13   :  { %544 = vmatprep.subr.bf16.mxu0 %v1118_v0  ;;  %978 = vmatprep.subr.bf16.mxu1 %v1118_v0  ;;  %v1080_v55 = vld [vmem:[%s1737_s0 + $0x90] ss:$8 sps:$4 sm:$0xff]   ;;  %v1082_v57 = vld [vmem:[%s1737_s0 + $0xa4] ss:$8 sps:$4 sm:$0xff]   ;;  %v1086_v59 = vld [vmem:[%s1737_s0 + $0xa0] ss:$8 sps:$4 sm:$0xff]  }
  0x14   :  { %v1081_v56 = vld [vmem:[%s1737_s0 + $0x190] ss:$8 sps:$4 sm:$0xff]   ;;  %v1084_v58 = vld [vmem:[%s1737_s0 + $0x1a4] ss:$8 sps:$4 sm:$0xff]   ;;  %v1087_v60 = vld [vmem:[%s1737_s0 + $0x1a0] ss:$8 sps:$4 sm:$0xff]  }
  0x15   :  { %v1088_v61 = vld [vmem:[%s1737_s0 + $0xb4] ss:$8 sps:$4 sm:$0xff]   ;;  %v1092_v63 = vld [vmem:[%s1737_s0 + $0xb0] ss:$8 sps:$4 sm:$0xff]   ;;  %v1094_v1 = vld [vmem:[%s1737_s0 + $0xc4] ss:$8 sps:$4 sm:$0xff]  }
  0x16   :  { %545 = vmatpush1.bf16.msra.mxu0 %v1011_v7  ;;  %994 = vmatpush1.bf16.msra.mxu1 %v1011_v7  ;;  %v1090_v62 = vld [vmem:[%s1737_s0 + $0x1b4] ss:$8 sps:$4 sm:$0xff]   ;;  %v1096_v2 = vld [vmem:[%s1737_s0 + $0x1c4] ss:$8 sps:$4 sm:$0xff]   ;;  %v1098_v3 = vld [vmem:[%s1737_s0 + $0xc0] ss:$8 sps:$4 sm:$0xff]  }
  0x17   :  { %546 = vmatprep.subr.bf16.mxu0 %v1118_v0  ;;  %979 = vmatprep.subr.bf16.mxu1 %v1118_v0  ;;  %v1099_v4 = vld [vmem:[%s1737_s0 + $0x1c0] ss:$8 sps:$4 sm:$0xff]   ;;  %v1100_v5 = vld [vmem:[%s1737_s0 + $0xd4] ss:$8 sps:$4 sm:$0xff]   ;;  %v1104_v7 = vld [vmem:[%s1737_s0 + $0xd0] ss:$8 sps:$4 sm:$0xff]  }
  0x18   :  { %v1102_v6 = vld [vmem:[%s1737_s0 + $0x1d4] ss:$8 sps:$4 sm:$0xff]   ;;  %v1105_v8 = vld [vmem:[%s1737_s0 + $0x1d0] ss:$8 sps:$4 sm:$0xff]  }
  0x1a   :  { %547 = vmatpush1.bf16.msra.mxu0 %v1012_v9  ;;  %995 = vmatpush1.bf16.msra.mxu1 %v1012_v9  ;;  %v1106_v9 = vld [vmem:[%s1737_s0 + $0xe4] ss:$8 sps:$4 sm:$0xff]  }
  0x1b   :  { %548 = vmatprep.subr.bf16.mxu0 %v1118_v0  ;;  %980 = vmatprep.subr.bf16.mxu1 %v1118_v0 }
  0x1e   :  { %549 = vmatpush1.bf16.msra.mxu0 %v1013_v10  ;;  %996 = vmatpush1.bf16.msra.mxu1 %v1013_v10  ;;  %v1108_v10 = vld [vmem:[%s1737_s0 + $0x1e4] ss:$8 sps:$4 sm:$0xff]  }
  0x1f   :  { %550 = vmatprep.subr.bf16.mxu0 %v1118_v0  ;;  %981 = vmatprep.subr.bf16.mxu1 %v1118_v0 }
  0x22   :  { %551 = vmatpush1.bf16.msra.mxu0 %v1014_v11  ;;  %997 = vmatpush1.bf16.msra.mxu1 %v1014_v11  ;;  %v1110_v11 = vld [vmem:[%s1737_s0 + $0xe0] ss:$8 sps:$4 sm:$0xff]  }
  0x23   :  { %552 = vmatprep.subr.bf16.mxu0 %v1118_v0  ;;  %982 = vmatprep.subr.bf16.mxu1 %v1118_v0 }
  0x26   :  { %553 = vmatpush1.bf16.msra.mxu0 %v1015_v12  ;;  %998 = vmatpush1.bf16.msra.mxu1 %v1015_v12  ;;  %v1111_v12 = vld [vmem:[%s1737_s0 + $0x1e0] ss:$8 sps:$4 sm:$0xff]  }
  0x27   :  { %554 = vmatprep.subr.bf16.mxu0 %v1118_v0  ;;  %983 = vmatprep.subr.bf16.mxu1 %v1118_v0 }
  0x2a   :  { %555 = vmatpush1.bf16.msra.mxu0 %v1016_v13  ;;  %999 = vmatpush1.bf16.msra.mxu1 %v1016_v13  ;;  %v1112_v13 = vld [vmem:[%s1737_s0 + $0xf4] ss:$8 sps:$4 sm:$0xff]  }
  0x2b   :  { %556 = vmatprep.subr.bf16.mxu0 %v1118_v0  ;;  %984 = vmatprep.subr.bf16.mxu1 %v1118_v0 }
  0x2e   :  { %557 = vmatpush1.bf16.msra.mxu0 %v1017_v14  ;;  %1000 = vmatpush1.bf16.msra.mxu1 %v1017_v14  ;;  %v1114_v14 = vld [vmem:[%s1737_s0 + $0x1f4] ss:$8 sps:$4 sm:$0xff]  }
  0x2f   :  { %558 = vmatprep.subr.bf16.mxu0 %v1118_v0  ;;  %985 = vmatprep.subr.bf16.mxu1 %v1118_v0 }
  0x32   :  { %559 = vmatpush1.bf16.msra.mxu0 %v1018_v15  ;;  %1001 = vmatpush1.bf16.msra.mxu1 %v1018_v15  ;;  %v1116_v15 = vld [vmem:[%s1737_s0 + $0xf0] ss:$8 sps:$4 sm:$0xff]  }
  0x33   :  { %560 = vmatprep.subr.bf16.mxu0 %v1118_v0  ;;  %986 = vmatprep.subr.bf16.mxu1 %v1118_v0 }
  0x36   :  { %561 = vmatpush1.bf16.msra.mxu0 %v1019_v16  ;;  %1002 = vmatpush1.bf16.msra.mxu1 %v1019_v16  ;;  %v1117_v16 = vld [vmem:[%s1737_s0 + $0x1f0] ss:$8 sps:$4 sm:$0xff]  }
  0x37   :  { %562 = vmatprep.subr.bf16.mxu0 %v1118_v0  ;;  %987 = vmatprep.subr.bf16.mxu1 %v1118_v0 }
  0x3a   :  { %563 = vmatpush1.bf16.msra.mxu0 %v1020_v17  ;;  %1003 = vmatpush1.bf16.msra.mxu1 %v1020_v17  ;;  %v1414_v17 = vld [vmem:[%s1738_s2] ss:$0 sm:$0xff] }
  0x3b   :  { %564 = vmatprep.subr.bf16.mxu0 %v1118_v0  ;;  %988 = vmatprep.subr.bf16.mxu1 %v1118_v0  ;;  %v1093_v0 = vld [vmem:[%s1737_s0 + $0x1b0] ss:$8 sps:$4 sm:$0xff]  }
  0x3e   :  { %565 = vmatpush1.bf16.msra.mxu0 %v1021_v18  ;;  %1004 = vmatpush1.bf16.msra.mxu1 %v1021_v18 }
  0x41   :  { %567 = vmatmul.mubr.bf16.vlgmr.msra.gmra.mrb[0].mxu0 %v1022_v19  ;;  %695 = vmatmul.mubr.bf16.vlgmr.msra.gmra.mrb[0].mxu1 %v1025_v20 }
  0x42   :  { %574 = vmatprep.mubr.bf16.mxu0 %v1028_v21  ;;  %702 = vmatprep.mubr.bf16.mxu1 %v1030_v22 }
  0x49   :  { %575 = vmatmul.mubr.bf16.gmra.mrb[4].mxu0 %v1032_v23  ;;  %703 = vmatmul.mubr.bf16.gmra.mrb[4].mxu1 %v1033_v24 }
  0x4a   :  { %582 = vmatprep.mubr.bf16.mxu0 %v1034_v25  ;;  %710 = vmatprep.mubr.bf16.mxu1 %v1036_v26 }
  0x51   :  { %583 = vmatmul.mubr.bf16.gmra.mrb[8].mxu0 %v1038_v27  ;;  %711 = vmatmul.mubr.bf16.gmra.mrb[8].mxu1 %v1039_v28 }
  0x52   :  { %590 = vmatprep.mubr.bf16.mxu0 %v1040_v29  ;;  %718 = vmatprep.mubr.bf16.mxu1 %v1042_v30 }
  0x59   :  { %591 = vmatmul.mubr.bf16.gmra.mrb[12].mxu0 %v1044_v31  ;;  %719 = vmatmul.mubr.bf16.gmra.mrb[12].mxu1 %v1045_v32 }
  0x5a   :  { %598 = vmatprep.mubr.bf16.mxu0 %v1046_v33  ;;  %726 = vmatprep.mubr.bf16.mxu1 %v1048_v34 }
  0x61   :  { %599 = vmatmul.mubr.bf16.gmra.mrb[16].mxu0 %v1050_v35  ;;  %727 = vmatmul.mubr.bf16.gmra.mrb[16].mxu1 %v1051_v36 }
  0x62   :  { %606 = vmatprep.mubr.bf16.mxu0 %v1052_v37  ;;  %734 = vmatprep.mubr.bf16.mxu1 %v1054_v38 }
  0x69   :  { %607 = vmatmul.mubr.bf16.gmra.mrb[20].mxu0 %v1056_v39  ;;  %735 = vmatmul.mubr.bf16.gmra.mrb[20].mxu1 %v1057_v40 }
  0x6a   :  { %614 = vmatprep.mubr.bf16.mxu0 %v1058_v41  ;;  %742 = vmatprep.mubr.bf16.mxu1 %v1060_v42 }
  0x71   :  { %615 = vmatmul.mubr.bf16.gmra.mrb[24].mxu0 %v1062_v43  ;;  %743 = vmatmul.mubr.bf16.gmra.mrb[24].mxu1 %v1063_v44 }
  0x72   :  { %622 = vmatprep.mubr.bf16.mxu0 %v1064_v45  ;;  %750 = vmatprep.mubr.bf16.mxu1 %v1066_v46 }
  0x79   :  { %623 = vmatmul.mubr.bf16.gmra.mrb[28].mxu0 %v1068_v47  ;;  %751 = vmatmul.mubr.bf16.gmra.mrb[28].mxu1 %v1069_v48 }
  0x7a   :  { %630 = vmatprep.mubr.bf16.mxu0 %v1070_v49  ;;  %758 = vmatprep.mubr.bf16.mxu1 %v1072_v50 }
  0x81   :  { %631 = vmatmul.mubr.bf16.gmra.mrb[32].mxu0 %v1074_v51  ;;  %759 = vmatmul.mubr.bf16.gmra.mrb[32].mxu1 %v1075_v52 }
  0x82   :  { %638 = vmatprep.mubr.bf16.mxu0 %v1076_v53  ;;  %766 = vmatprep.mubr.bf16.mxu1 %v1078_v54 }
  0x89   :  { %639 = vmatmul.mubr.bf16.gmra.mrb[36].mxu0 %v1080_v55  ;;  %767 = vmatmul.mubr.bf16.gmra.mrb[36].mxu1 %v1081_v56 }
  0x8a   :  { %646 = vmatprep.mubr.bf16.mxu0 %v1082_v57  ;;  %774 = vmatprep.mubr.bf16.mxu1 %v1084_v58 }
  0x91   :  { %647 = vmatmul.mubr.bf16.gmra.mrb[40].mxu0 %v1086_v59  ;;  %775 = vmatmul.mubr.bf16.gmra.mrb[40].mxu1 %v1087_v60 }
  0x92   :  { %654 = vmatprep.mubr.bf16.mxu0 %v1088_v61  ;;  %782 = vmatprep.mubr.bf16.mxu1 %v1090_v62 }
  0x99   :  { %655 = vmatmul.mubr.bf16.gmra.mrb[44].mxu0 %v1092_v63  ;;  %783 = vmatmul.mubr.bf16.gmra.mrb[44].mxu1 %v1093_v0 }
  0x9a   :  { %662 = vmatprep.mubr.bf16.mxu0 %v1094_v1  ;;  %790 = vmatprep.mubr.bf16.mxu1 %v1096_v2 }
  0xa1   :  { %663 = vmatmul.mubr.bf16.gmra.mrb[48].mxu0 %v1098_v3  ;;  %791 = vmatmul.mubr.bf16.gmra.mrb[48].mxu1 %v1099_v4 }
  0xa2   :  { %670 = vmatprep.mubr.bf16.mxu0 %v1100_v5  ;;  %798 = vmatprep.mubr.bf16.mxu1 %v1102_v6 }
  0xa9   :  { %671 = vmatmul.mubr.bf16.gmra.mrb[52].mxu0 %v1104_v7  ;;  %799 = vmatmul.mubr.bf16.gmra.mrb[52].mxu1 %v1105_v8 }
  0xaa   :  { %678 = vmatprep.mubr.bf16.mxu0 %v1106_v9  ;;  %806 = vmatprep.mubr.bf16.mxu1 %v1108_v10 }
  0xb1   :  { %679 = vmatmul.mubr.bf16.gmra.mrb[56].mxu0 %v1110_v11  ;;  %807 = vmatmul.mubr.bf16.gmra.mrb[56].mxu1 %v1111_v12 }
  0xb2   :  { %686 = vmatprep.mubr.bf16.mxu0 %v1112_v13  ;;  %814 = vmatprep.mubr.bf16.mxu1 %v1114_v14 }
  0xb9   :  { %687 = vmatmul.mubr.bf16.gmra.mrb[60].mxu0 %v1116_v15  ;;  %815 = vmatmul.mubr.bf16.gmra.mrb[60].mxu1 %v1117_v16 }
 0x114   :  { %v568_v18 = vpop.f32.mrb[0].mxu0  ;;  %v696_v19 = vpop.f32.mrb[0].mxu1 }
 0x115   :  { %v569_v20 = vadd.f32 %v1414_v17, %v568_v18  ;;  %v697_v21 = vadd.f32 %v1414_v17, %v696_v19  ;;  %v570_v22 = vpop.f32.mrb[1].mxu0  ;;  %v698_v23 = vpop.f32.mrb[1].mxu1 }
 0x116   :  { %v571_v24 = vpop.f32.mrb[2].mxu0  ;;  %v699_v25 = vpop.f32.mrb[2].mxu1 }
 0x117   :  { %824 = vst.msk [vmem:[%s1739_s3] sm:$0xff] %vm823_vm0, %v569_v20  ;;  %856 = vst.msk [vmem:[%s1739_s3 + $0x100] sm:$0xff] %vm823_vm0, %v697_v21  ;;  %v572_v26 = vadd.f32 %v1414_v17, %v571_v24  ;;  %v700_v27 = vadd.f32 %v1414_v17, %v699_v25  ;;  %v573_v28 = vpop.f32.mrb[3].mxu0  ;;  %v701_v29 = vpop.f32.mrb[3].mxu1 }
 0x119   :  { %825 = vst.msk [vmem:[%s1739_s3 + $0x8] sm:$0xff] %vm823_vm0, %v572_v26  ;;  %857 = vst.msk [vmem:[%s1739_s3 + $0x108] sm:$0xff] %vm823_vm0, %v700_v27 }
 0x11c   :  { %v576_v30 = vpop.f32.mrb[4].mxu0  ;;  %v704_v31 = vpop.f32.mrb[4].mxu1 }
 0x11d   :  { %v577_v32 = vadd.f32 %v1414_v17, %v576_v30  ;;  %v705_v33 = vadd.f32 %v1414_v17, %v704_v31  ;;  %v578_v34 = vpop.f32.mrb[5].mxu0  ;;  %v706_v35 = vpop.f32.mrb[5].mxu1 }
 0x11e   :  { %v579_v36 = vpop.f32.mrb[6].mxu0  ;;  %v707_v37 = vpop.f32.mrb[6].mxu1 }
 0x11f   :  { %826 = vst.msk [vmem:[%s1739_s3 + $0x10] sm:$0xff] %vm823_vm0, %v577_v32  ;;  %858 = vst.msk [vmem:[%s1739_s3 + $0x110] sm:$0xff] %vm823_vm0, %v705_v33  ;;  %v580_v38 = vadd.f32 %v1414_v17, %v579_v36  ;;  %v708_v39 = vadd.f32 %v1414_v17, %v707_v37  ;;  %v581_v40 = vpop.f32.mrb[7].mxu0  ;;  %v709_v41 = vpop.f32.mrb[7].mxu1 }
 0x121   :  { %827 = vst.msk [vmem:[%s1739_s3 + $0x18] sm:$0xff] %vm823_vm0, %v580_v38  ;;  %859 = vst.msk [vmem:[%s1739_s3 + $0x118] sm:$0xff] %vm823_vm0, %v708_v39 }
 0x124   :  { %v584_v42 = vpop.f32.mrb[8].mxu0  ;;  %v712_v43 = vpop.f32.mrb[8].mxu1 }
 0x125   :  { %v585_v44 = vadd.f32 %v1414_v17, %v584_v42  ;;  %v713_v45 = vadd.f32 %v1414_v17, %v712_v43  ;;  %v586_v46 = vpop.f32.mrb[9].mxu0  ;;  %v714_v47 = vpop.f32.mrb[9].mxu1 }
 0x126   :  { %v587_v48 = vpop.f32.mrb[10].mxu0  ;;  %v715_v49 = vpop.f32.mrb[10].mxu1 }
 0x127   :  { %828 = vst.msk [vmem:[%s1739_s3 + $0x20] sm:$0xff] %vm823_vm0, %v585_v44  ;;  %860 = vst.msk [vmem:[%s1739_s3 + $0x120] sm:$0xff] %vm823_vm0, %v713_v45  ;;  %v588_v50 = vadd.f32 %v1414_v17, %v587_v48  ;;  %v716_v51 = vadd.f32 %v1414_v17, %v715_v49  ;;  %v589_v52 = vpop.f32.mrb[11].mxu0  ;;  %v717_v53 = vpop.f32.mrb[11].mxu1 }
 0x129   :  { %829 = vst.msk [vmem:[%s1739_s3 + $0x28] sm:$0xff] %vm823_vm0, %v588_v50  ;;  %861 = vst.msk [vmem:[%s1739_s3 + $0x128] sm:$0xff] %vm823_vm0, %v716_v51 }
 0x12c   :  { %v592_v54 = vpop.f32.mrb[12].mxu0  ;;  %v720_v55 = vpop.f32.mrb[12].mxu1 }
 0x12d   :  { %v593_v56 = vadd.f32 %v1414_v17, %v592_v54  ;;  %v721_v57 = vadd.f32 %v1414_v17, %v720_v55  ;;  %v594_v58 = vpop.f32.mrb[13].mxu0  ;;  %v722_v59 = vpop.f32.mrb[13].mxu1 }
 0x12e   :  { %v595_v60 = vpop.f32.mrb[14].mxu0  ;;  %v723_v61 = vpop.f32.mrb[14].mxu1 }
 0x12f   :  { %830 = vst.msk [vmem:[%s1739_s3 + $0x30] sm:$0xff] %vm823_vm0, %v593_v56  ;;  %862 = vst.msk [vmem:[%s1739_s3 + $0x130] sm:$0xff] %vm823_vm0, %v721_v57  ;;  %v596_v62 = vadd.f32 %v1414_v17, %v595_v60  ;;  %v724_v63 = vadd.f32 %v1414_v17, %v723_v61  ;;  %v597_v0 = vpop.f32.mrb[15].mxu0  ;;  %v725_v1 = vpop.f32.mrb[15].mxu1 }
 0x131   :  { %831 = vst.msk [vmem:[%s1739_s3 + $0x38] sm:$0xff] %vm823_vm0, %v596_v62  ;;  %863 = vst.msk [vmem:[%s1739_s3 + $0x138] sm:$0xff] %vm823_vm0, %v724_v63 }
 0x134   :  { %v600_v2 = vpop.f32.mrb[16].mxu0  ;;  %v728_v3 = vpop.f32.mrb[16].mxu1 }
 0x135   :  { %v601_v4 = vadd.f32 %v1414_v17, %v600_v2  ;;  %v729_v5 = vadd.f32 %v1414_v17, %v728_v3  ;;  %v602_v6 = vpop.f32.mrb[17].mxu0  ;;  %v730_v7 = vpop.f32.mrb[17].mxu1 }
 0x136   :  { %v603_v8 = vpop.f32.mrb[18].mxu0  ;;  %v731_v9 = vpop.f32.mrb[18].mxu1 }
 0x137   :  { %832 = vst.msk [vmem:[%s1739_s3 + $0x40] sm:$0xff] %vm823_vm0, %v601_v4  ;;  %864 = vst.msk [vmem:[%s1739_s3 + $0x140] sm:$0xff] %vm823_vm0, %v729_v5  ;;  %v604_v10 = vadd.f32 %v1414_v17, %v603_v8  ;;  %v732_v11 = vadd.f32 %v1414_v17, %v731_v9  ;;  %v605_v12 = vpop.f32.mrb[19].mxu0  ;;  %v733_v13 = vpop.f32.mrb[19].mxu1 }
 0x139   :  { %833 = vst.msk [vmem:[%s1739_s3 + $0x48] sm:$0xff] %vm823_vm0, %v604_v10  ;;  %865 = vst.msk [vmem:[%s1739_s3 + $0x148] sm:$0xff] %vm823_vm0, %v732_v11 }
 0x13c   :  { %v608_v14 = vpop.f32.mrb[20].mxu0  ;;  %v736_v15 = vpop.f32.mrb[20].mxu1 }
 0x13d   :  { %v609_v16 = vadd.f32 %v1414_v17, %v608_v14  ;;  %v737_v18 = vadd.f32 %v1414_v17, %v736_v15  ;;  %v610_v19 = vpop.f32.mrb[21].mxu0  ;;  %v738_v20 = vpop.f32.mrb[21].mxu1 }
 0x13e   :  { %v611_v21 = vpop.f32.mrb[22].mxu0  ;;  %v739_v22 = vpop.f32.mrb[22].mxu1 }
 0x13f   :  { %834 = vst.msk [vmem:[%s1739_s3 + $0x50] sm:$0xff] %vm823_vm0, %v609_v16  ;;  %866 = vst.msk [vmem:[%s1739_s3 + $0x150] sm:$0xff] %vm823_vm0, %v737_v18  ;;  %v612_v23 = vadd.f32 %v1414_v17, %v611_v21  ;;  %v740_v24 = vadd.f32 %v1414_v17, %v739_v22  ;;  %v613_v25 = vpop.f32.mrb[23].mxu0  ;;  %v741_v26 = vpop.f32.mrb[23].mxu1 }
 0x141   :  { %835 = vst.msk [vmem:[%s1739_s3 + $0x58] sm:$0xff] %vm823_vm0, %v612_v23  ;;  %867 = vst.msk [vmem:[%s1739_s3 + $0x158] sm:$0xff] %vm823_vm0, %v740_v24 }
 0x144   :  { %v616_v27 = vpop.f32.mrb[24].mxu0  ;;  %v744_v28 = vpop.f32.mrb[24].mxu1 }
 0x145   :  { %v617_v29 = vadd.f32 %v1414_v17, %v616_v27  ;;  %v745_v30 = vadd.f32 %v1414_v17, %v744_v28  ;;  %v618_v31 = vpop.f32.mrb[25].mxu0  ;;  %v746_v32 = vpop.f32.mrb[25].mxu1 }
 0x146   :  { %v619_v33 = vpop.f32.mrb[26].mxu0  ;;  %v747_v34 = vpop.f32.mrb[26].mxu1 }
 0x147   :  { %836 = vst.msk [vmem:[%s1739_s3 + $0x60] sm:$0xff] %vm823_vm0, %v617_v29  ;;  %868 = vst.msk [vmem:[%s1739_s3 + $0x160] sm:$0xff] %vm823_vm0, %v745_v30  ;;  %v620_v35 = vadd.f32 %v1414_v17, %v619_v33  ;;  %v748_v36 = vadd.f32 %v1414_v17, %v747_v34  ;;  %v621_v37 = vpop.f32.mrb[27].mxu0  ;;  %v749_v38 = vpop.f32.mrb[27].mxu1 }
 0x149   :  { %837 = vst.msk [vmem:[%s1739_s3 + $0x68] sm:$0xff] %vm823_vm0, %v620_v35  ;;  %869 = vst.msk [vmem:[%s1739_s3 + $0x168] sm:$0xff] %vm823_vm0, %v748_v36 }
 0x14c   :  { %v624_v39 = vpop.f32.mrb[28].mxu0  ;;  %v752_v40 = vpop.f32.mrb[28].mxu1 }
 0x14d   :  { %v625_v41 = vadd.f32 %v1414_v17, %v624_v39  ;;  %v753_v42 = vadd.f32 %v1414_v17, %v752_v40  ;;  %v626_v43 = vpop.f32.mrb[29].mxu0  ;;  %v754_v44 = vpop.f32.mrb[29].mxu1 }
 0x14e   :  { %v627_v45 = vpop.f32.mrb[30].mxu0  ;;  %v755_v46 = vpop.f32.mrb[30].mxu1 }
 0x14f   :  { %838 = vst.msk [vmem:[%s1739_s3 + $0x70] sm:$0xff] %vm823_vm0, %v625_v41  ;;  %870 = vst.msk [vmem:[%s1739_s3 + $0x170] sm:$0xff] %vm823_vm0, %v753_v42  ;;  %v628_v47 = vadd.f32 %v1414_v17, %v627_v45  ;;  %v756_v48 = vadd.f32 %v1414_v17, %v755_v46  ;;  %v629_v49 = vpop.f32.mrb[31].mxu0  ;;  %v757_v50 = vpop.f32.mrb[31].mxu1 }
 0x151   :  { %839 = vst.msk [vmem:[%s1739_s3 + $0x78] sm:$0xff] %vm823_vm0, %v628_v47  ;;  %871 = vst.msk [vmem:[%s1739_s3 + $0x178] sm:$0xff] %vm823_vm0, %v756_v48 }
 0x154   :  { %v632_v51 = vpop.f32.mrb[32].mxu0  ;;  %v760_v52 = vpop.f32.mrb[32].mxu1 }
 0x155   :  { %v633_v53 = vadd.f32 %v1414_v17, %v632_v51  ;;  %v761_v54 = vadd.f32 %v1414_v17, %v760_v52  ;;  %v634_v55 = vpop.f32.mrb[33].mxu0  ;;  %v762_v56 = vpop.f32.mrb[33].mxu1 }
 0x156   :  { %v635_v57 = vpop.f32.mrb[34].mxu0  ;;  %v763_v58 = vpop.f32.mrb[34].mxu1 }
 0x157   :  { %840 = vst.msk [vmem:[%s1739_s3 + $0x80] sm:$0xff] %vm823_vm0, %v633_v53  ;;  %872 = vst.msk [vmem:[%s1739_s3 + $0x180] sm:$0xff] %vm823_vm0, %v761_v54  ;;  %v636_v59 = vadd.f32 %v1414_v17, %v635_v57  ;;  %v764_v60 = vadd.f32 %v1414_v17, %v763_v58  ;;  %v637_v61 = vpop.f32.mrb[35].mxu0  ;;  %v765_v62 = vpop.f32.mrb[35].mxu1 }
 0x159   :  { %841 = vst.msk [vmem:[%s1739_s3 + $0x88] sm:$0xff] %vm823_vm0, %v636_v59  ;;  %873 = vst.msk [vmem:[%s1739_s3 + $0x188] sm:$0xff] %vm823_vm0, %v764_v60 }
 0x15c   :  { %v640_v63 = vpop.f32.mrb[36].mxu0  ;;  %v768_v0 = vpop.f32.mrb[36].mxu1 }
 0x15d   :  { %v641_v1 = vadd.f32 %v1414_v17, %v640_v63  ;;  %v769_v2 = vadd.f32 %v1414_v17, %v768_v0  ;;  %v642_v3 = vpop.f32.mrb[37].mxu0  ;;  %v770_v4 = vpop.f32.mrb[37].mxu1 }
 0x15e   :  { %v643_v5 = vpop.f32.mrb[38].mxu0  ;;  %v771_v6 = vpop.f32.mrb[38].mxu1 }
 0x15f   :  { %842 = vst.msk [vmem:[%s1739_s3 + $0x90] sm:$0xff] %vm823_vm0, %v641_v1  ;;  %874 = vst.msk [vmem:[%s1739_s3 + $0x190] sm:$0xff] %vm823_vm0, %v769_v2  ;;  %v644_v7 = vadd.f32 %v1414_v17, %v643_v5  ;;  %v772_v8 = vadd.f32 %v1414_v17, %v771_v6  ;;  %v645_v9 = vpop.f32.mrb[39].mxu0  ;;  %v773_v10 = vpop.f32.mrb[39].mxu1 }
 0x161   :  { %843 = vst.msk [vmem:[%s1739_s3 + $0x98] sm:$0xff] %vm823_vm0, %v644_v7  ;;  %875 = vst.msk [vmem:[%s1739_s3 + $0x198] sm:$0xff] %vm823_vm0, %v772_v8 }
 0x164   :  { %v648_v11 = vpop.f32.mrb[40].mxu0  ;;  %v776_v12 = vpop.f32.mrb[40].mxu1 }
 0x165   :  { %v649_v13 = vadd.f32 %v1414_v17, %v648_v11  ;;  %v777_v14 = vadd.f32 %v1414_v17, %v776_v12  ;;  %v650_v15 = vpop.f32.mrb[41].mxu0  ;;  %v778_v16 = vpop.f32.mrb[41].mxu1 }
 0x166   :  { %v651_v18 = vpop.f32.mrb[42].mxu0  ;;  %v779_v19 = vpop.f32.mrb[42].mxu1 }
 0x167   :  { %844 = vst.msk [vmem:[%s1739_s3 + $0xa0] sm:$0xff] %vm823_vm0, %v649_v13  ;;  %876 = vst.msk [vmem:[%s1739_s3 + $0x1a0] sm:$0xff] %vm823_vm0, %v777_v14  ;;  %v652_v20 = vadd.f32 %v1414_v17, %v651_v18  ;;  %v780_v21 = vadd.f32 %v1414_v17, %v779_v19  ;;  %v653_v22 = vpop.f32.mrb[43].mxu0  ;;  %v781_v23 = vpop.f32.mrb[43].mxu1 }
 0x169   :  { %845 = vst.msk [vmem:[%s1739_s3 + $0xa8] sm:$0xff] %vm823_vm0, %v652_v20  ;;  %877 = vst.msk [vmem:[%s1739_s3 + $0x1a8] sm:$0xff] %vm823_vm0, %v780_v21 }
 0x16c   :  { %v656_v24 = vpop.f32.mrb[44].mxu0  ;;  %v784_v25 = vpop.f32.mrb[44].mxu1 }
 0x16d   :  { %v657_v26 = vadd.f32 %v1414_v17, %v656_v24  ;;  %v785_v27 = vadd.f32 %v1414_v17, %v784_v25  ;;  %v658_v28 = vpop.f32.mrb[45].mxu0  ;;  %v786_v29 = vpop.f32.mrb[45].mxu1 }
 0x16e   :  { %v659_v30 = vpop.f32.mrb[46].mxu0  ;;  %v787_v31 = vpop.f32.mrb[46].mxu1 }
 0x16f   :  { %846 = vst.msk [vmem:[%s1739_s3 + $0xb0] sm:$0xff] %vm823_vm0, %v657_v26  ;;  %878 = vst.msk [vmem:[%s1739_s3 + $0x1b0] sm:$0xff] %vm823_vm0, %v785_v27  ;;  %v660_v32 = vadd.f32 %v1414_v17, %v659_v30  ;;  %v788_v33 = vadd.f32 %v1414_v17, %v787_v31  ;;  %v661_v34 = vpop.f32.mrb[47].mxu0  ;;  %v789_v35 = vpop.f32.mrb[47].mxu1 }
 0x171   :  { %847 = vst.msk [vmem:[%s1739_s3 + $0xb8] sm:$0xff] %vm823_vm0, %v660_v32  ;;  %879 = vst.msk [vmem:[%s1739_s3 + $0x1b8] sm:$0xff] %vm823_vm0, %v788_v33 }
 0x174   :  { %v664_v36 = vpop.f32.mrb[48].mxu0  ;;  %v792_v37 = vpop.f32.mrb[48].mxu1 }
 0x175   :  { %v665_v38 = vadd.f32 %v1414_v17, %v664_v36  ;;  %v793_v39 = vadd.f32 %v1414_v17, %v792_v37  ;;  %v666_v40 = vpop.f32.mrb[49].mxu0  ;;  %v794_v41 = vpop.f32.mrb[49].mxu1 }
 0x176   :  { %v667_v42 = vpop.f32.mrb[50].mxu0  ;;  %v795_v43 = vpop.f32.mrb[50].mxu1 }
 0x177   :  { %848 = vst.msk [vmem:[%s1739_s3 + $0xc0] sm:$0xff] %vm823_vm0, %v665_v38  ;;  %880 = vst.msk [vmem:[%s1739_s3 + $0x1c0] sm:$0xff] %vm823_vm0, %v793_v39  ;;  %v668_v44 = vadd.f32 %v1414_v17, %v667_v42  ;;  %v796_v45 = vadd.f32 %v1414_v17, %v795_v43  ;;  %v669_v46 = vpop.f32.mrb[51].mxu0  ;;  %v797_v47 = vpop.f32.mrb[51].mxu1 }
 0x179   :  { %849 = vst.msk [vmem:[%s1739_s3 + $0xc8] sm:$0xff] %vm823_vm0, %v668_v44  ;;  %881 = vst.msk [vmem:[%s1739_s3 + $0x1c8] sm:$0xff] %vm823_vm0, %v796_v45 }
 0x17c   :  { %v672_v48 = vpop.f32.mrb[52].mxu0  ;;  %v800_v49 = vpop.f32.mrb[52].mxu1 }
 0x17d   :  { %v673_v50 = vadd.f32 %v1414_v17, %v672_v48  ;;  %v801_v51 = vadd.f32 %v1414_v17, %v800_v49  ;;  %v674_v52 = vpop.f32.mrb[53].mxu0  ;;  %v802_v53 = vpop.f32.mrb[53].mxu1 }
 0x17e   :  { %v675_v54 = vpop.f32.mrb[54].mxu0  ;;  %v803_v55 = vpop.f32.mrb[54].mxu1 }
 0x17f   :  { %850 = vst.msk [vmem:[%s1739_s3 + $0xd0] sm:$0xff] %vm823_vm0, %v673_v50  ;;  %882 = vst.msk [vmem:[%s1739_s3 + $0x1d0] sm:$0xff] %vm823_vm0, %v801_v51  ;;  %v676_v56 = vadd.f32 %v1414_v17, %v675_v54  ;;  %v804_v57 = vadd.f32 %v1414_v17, %v803_v55  ;;  %v677_v58 = vpop.f32.mrb[55].mxu0  ;;  %v805_v59 = vpop.f32.mrb[55].mxu1 }
 0x181   :  { %851 = vst.msk [vmem:[%s1739_s3 + $0xd8] sm:$0xff] %vm823_vm0, %v676_v56  ;;  %883 = vst.msk [vmem:[%s1739_s3 + $0x1d8] sm:$0xff] %vm823_vm0, %v804_v57 }
 0x184   :  { %v680_v60 = vpop.f32.mrb[56].mxu0  ;;  %v808_v61 = vpop.f32.mrb[56].mxu1 }
 0x185   :  { %v681_v62 = vadd.f32 %v1414_v17, %v680_v60  ;;  %v809_v63 = vadd.f32 %v1414_v17, %v808_v61  ;;  %v682_v0 = vpop.f32.mrb[57].mxu0  ;;  %v810_v1 = vpop.f32.mrb[57].mxu1 }
 0x186   :  { %v683_v2 = vpop.f32.mrb[58].mxu0  ;;  %v811_v3 = vpop.f32.mrb[58].mxu1 }
 0x187   :  { %852 = vst.msk [vmem:[%s1739_s3 + $0xe0] sm:$0xff] %vm823_vm0, %v681_v62  ;;  %884 = vst.msk [vmem:[%s1739_s3 + $0x1e0] sm:$0xff] %vm823_vm0, %v809_v63  ;;  %v684_v4 = vadd.f32 %v1414_v17, %v683_v2  ;;  %v812_v5 = vadd.f32 %v1414_v17, %v811_v3  ;;  %v685_v6 = vpop.f32.mrb[59].mxu0  ;;  %v813_v7 = vpop.f32.mrb[59].mxu1 }
 0x189   :  { %853 = vst.msk [vmem:[%s1739_s3 + $0xe8] sm:$0xff] %vm823_vm0, %v684_v4  ;;  %885 = vst.msk [vmem:[%s1739_s3 + $0x1e8] sm:$0xff] %vm823_vm0, %v812_v5 }
 0x18c   :  { %v688_v8 = vpop.f32.mrb[60].mxu0  ;;  %v816_v9 = vpop.f32.mrb[60].mxu1 }
 0x18d   :  { %v689_v10 = vadd.f32 %v1414_v17, %v688_v8  ;;  %v817_v11 = vadd.f32 %v1414_v17, %v816_v9  ;;  %v690_v12 = vpop.f32.mrb[61].mxu0  ;;  %v818_v13 = vpop.f32.mrb[61].mxu1 }
 0x18e   :  { %v691_v14 = vpop.f32.mrb[62].mxu0  ;;  %v819_v15 = vpop.f32.mrb[62].mxu1 }
 0x18f   :  { %854 = vst.msk [vmem:[%s1739_s3 + $0xf0] sm:$0xff] %vm823_vm0, %v689_v10  ;;  %886 = vst.msk [vmem:[%s1739_s3 + $0x1f0] sm:$0xff] %vm823_vm0, %v817_v11  ;;  %v692_v16 = vadd.f32 %v1414_v17, %v691_v14  ;;  %v820_v18 = vadd.f32 %v1414_v17, %v819_v15  ;;  %v693_v19 = vpop.f32.mrb[63].mxu0  ;;  %v821_v20 = vpop.f32.mrb[63].mxu1 }
 0x191   :  { %855 = vst.msk [vmem:[%s1739_s3 + $0xf8] sm:$0xff] %vm823_vm0, %v692_v16  ;;  %887 = vst.msk [vmem:[%s1739_s3 + $0x1f8] sm:$0xff] %vm823_vm0, %v820_v18 }

</bundles_post_ra>
